<compile_context>
chip_gen: v6e
topology: v6e:2x2x1
jax: 0.10.0
libtpu: 0.0.40
codegen_flags: <defaults>
</compile_context>

<pallas_src>
import jax
import jax.numpy as jnp
from jax.experimental import pallas as pl
from jax.experimental.pallas import tpu as pltpu

EMBED_DIM = 128     # embed_dim (module default; lane-aligned gate slices)
NUM_LAYERS = 3      # num_layers
NUM_ITEMS = 512     # num_items (multiple of 128 -> unmasked vst on the output)
PAD_VALUE = 0
SEQ_LEN = 200       # token sequence length for the demo run (non-multiple of TB)
TB = 128            # token-block rows per grid step


def rnn_recommender_kernel(x_ref,
                           w1_ref, b1_ref,
                           w2_ref, b2_ref,
                           w3_ref, b3_ref,
                           wo_ref, bo_ref,
                           out_ref):
    """Fused 3-layer single-step LSTM + output projection + log_softmax.

    x_ref : (TB, E)   bf16  embedded tokens for this block
    wK_ref: (E, 3E)   bf16  layer-K input->gate weights, gate order [i | g | o]
                            (forget gate dropped: c_prev == 0, seq_len == 1)
    bK_ref: (1, 3E)   f32   layer-K combined bias (b_ih + b_hh), same packing
    wo_ref: (E, N)    bf16  output projection weight
    bo_ref: (1, N)    f32   output projection bias
    out_ref:(TB, N)   f32   log-softmax item scores
    """
    E = EMBED_DIM
    h = x_ref[...]                                           # (TB, E) bf16

    for w_ref, b_ref in ((w1_ref, b1_ref), (w2_ref, b2_ref), (w3_ref, b3_ref)):
        # bf16 x bf16 on the MXU, f32 accumulation.
        gates = jnp.dot(h, w_ref[...], preferred_element_type=jnp.float32)
        gates = gates + b_ref[...]                           # (TB, 3E) f32
        i_g = jax.nn.sigmoid(gates[:, 0 * E:1 * E])          # input gate
        g_g = jnp.tanh(gates[:, 1 * E:2 * E])                # cell candidate
        o_g = jax.nn.sigmoid(gates[:, 2 * E:3 * E])          # output gate
        c = i_g * g_g                                        # c = f*0 + i*g
        h = (o_g * jnp.tanh(c)).astype(jnp.bfloat16)         # (TB, E)

    logits = jnp.dot(h, wo_ref[...], preferred_element_type=jnp.float32)
    logits = logits + bo_ref[...]                            # (TB, N) f32

    # log_softmax over dim=1 (numerically stable), full N tile resident.
    # TODO(synk): at realistic num_items (tens of thousands) tile N with an
    # "arbitrary" grid axis + online logsumexp and set vmem_limit_bytes (v7x).
    m = jnp.max(logits, axis=1, keepdims=True)
    shifted = logits - m
    lse = jnp.log(jnp.sum(jnp.exp(shifted), axis=1, keepdims=True))
    out_ref[...] = (shifted - lse).astype(out_ref.dtype)


def init_params(key):
    """Deterministic synthetic parameters matching the module's shapes."""
    ks = jax.random.split(key, 4 * NUM_LAYERS + 3)
    k_it = iter(ks)

    def u(k, shape, scale):
        return jax.random.uniform(k, shape, jnp.float32, -scale, scale)

    params = {}
    # nn.Embedding(num_items, E, padding_idx=0): zero out the pad row.
    emb = jax.random.normal(next(k_it), (NUM_ITEMS, EMBED_DIM), jnp.float32)
    params["embedding"] = emb.at[PAD_VALUE].set(0.0)

    bound = 1.0 / (EMBED_DIM ** 0.5)
    E = EMBED_DIM
    for layer in range(NUM_LAYERS):
        # torch weight_ih_l{k}: (4E, E), gate order (i, f, g, o).
        # Stored transposed -> (E, 4E), then the forget-gate block is dropped
        # (it multiplies c_prev == 0), leaving (E, 3E) packed [i | g | o].
        w_ih = u(next(k_it), (EMBED_DIM, 4 * EMBED_DIM), bound)
        # weight_hh_l{k} exists in the module but multiplies h_prev == 0, so it
        # does not appear in the forward math (sampled for parity only).
        _w_hh = u(next(k_it), (EMBED_DIM, 4 * EMBED_DIM), bound)
        b_ih = u(next(k_it), (4 * EMBED_DIM,), bound)
        b_hh = u(next(k_it), (4 * EMBED_DIM,), bound)
        b = b_ih + b_hh

        w_igo = jnp.concatenate(
            [w_ih[:, 0 * E:1 * E], w_ih[:, 2 * E:3 * E], w_ih[:, 3 * E:4 * E]],
            axis=1)
        b_igo = jnp.concatenate(
            [b[0 * E:1 * E], b[2 * E:3 * E], b[3 * E:4 * E]])

        params[f"w_igo_{layer}"] = w_igo.astype(jnp.bfloat16)      # (E, 3E)
        params[f"b_igo_{layer}"] = b_igo.reshape(1, 3 * E)          # (1, 3E) f32

    # nn.Linear(E, num_items): torch weight (N, E) -> stored (E, N).
    params["w_out"] = u(next(k_it), (EMBED_DIM, NUM_ITEMS), bound).astype(
        jnp.bfloat16)
    params["b_out"] = u(next(k_it), (NUM_ITEMS,), bound).reshape(1, NUM_ITEMS)
    return params


def rnn_recommender_forward(inputs, params):
    # TODO(synk): fuse this data-dependent embedding row gather into the kernel
    # (scalar-prefetched ids + DMA gather) once T / table sizes make it pay.
    emb = params["embedding"][inputs].astype(jnp.bfloat16)    # (T, E)

    T = inputs.shape[0]
    E = EMBED_DIM
    N = NUM_ITEMS
    t_pad = ((T + TB - 1) // TB) * TB
    if t_pad != T:
        emb = jnp.pad(emb, ((0, t_pad - T), (0, 0)))          # zero pad rows

    kernel_args = (
        emb,
        params["w_igo_0"], params["b_igo_0"],
        params["w_igo_1"], params["b_igo_1"],
        params["w_igo_2"], params["b_igo_2"],
        params["w_out"], params["b_out"],
    )

    def resident(shape):
        # Constant index_map: the block never changes across the T grid, so the
        # weights/biases stay resident in VMEM (no re-DMA per token block).
        return pl.BlockSpec(shape, lambda i: (0, 0))

    out = pl.pallas_call(
        rnn_recommender_kernel,
        out_shape=jax.ShapeDtypeStruct((t_pad, N), jnp.float32),
        grid=(t_pad // TB,),
        in_specs=[
            pl.BlockSpec((TB, E), lambda i: (i, 0)),           # token block
            resident((E, 3 * E)), resident((1, 3 * E)),
            resident((E, 3 * E)), resident((1, 3 * E)),
            resident((E, 3 * E)), resident((1, 3 * E)),
            resident((E, N)), resident((1, N)),
        ],
        out_specs=pl.BlockSpec((TB, N), lambda i: (i, 0)),
        compiler_params=pltpu.CompilerParams(
            dimension_semantics=("parallel",)),                # v7x: 2 TCs
    )(*kernel_args)
    return out[:T]


def reference_forward(inputs, params):
    """Pure-JAX reference using the exact same math/dtypes as the kernel."""
    E = EMBED_DIM
    h = params["embedding"][inputs].astype(jnp.bfloat16)
    for layer in range(NUM_LAYERS):
        gates = jnp.dot(h, params[f"w_igo_{layer}"],
                        preferred_element_type=jnp.float32)
        gates = gates + params[f"b_igo_{layer}"]
        i_g = jax.nn.sigmoid(gates[:, 0 * E:1 * E])
        g_g = jnp.tanh(gates[:, 1 * E:2 * E])
        o_g = jax.nn.sigmoid(gates[:, 2 * E:3 * E])
        h = (o_g * jnp.tanh(i_g * g_g)).astype(jnp.bfloat16)
    logits = jnp.dot(h, params["w_out"],
                     preferred_element_type=jnp.float32) + params["b_out"]
    return jax.nn.log_softmax(logits, axis=1)


if __name__ == "__main__":
    key = jax.random.PRNGKey(0)
    pkey, ikey = jax.random.split(key)
    params = init_params(pkey)

    # Token-id sequence of length T (includes possibility of pad id 0).
    inputs = jax.random.randint(ikey, (SEQ_LEN,), 0, NUM_ITEMS, dtype=jnp.int32)

    out = rnn_recommender_forward(inputs, params)
    out = jax.block_until_ready(out)

    assert out.shape == (SEQ_LEN, NUM_ITEMS)
    # log_softmax rows must normalize: sum(exp(row)) ~= 1
    row_sums = jnp.sum(jnp.exp(out), axis=1)
    assert bool(jnp.all(jnp.abs(row_sums - 1.0) < 1e-3))
    # Parity against the pure-JAX reference (same bf16 weights / f32 acc).
    ref = reference_forward(inputs, params)
    assert bool(jnp.all(jnp.isfinite(out)))
    assert bool(jnp.max(jnp.abs(out - ref)) < 2e-2)
    print("KERNEL_OK")
</pallas_src>

<mosaic_0001>
module attributes {stable_mosaic.version = 11 : i64} {
  func.func @rnn_recommender_kernel(%arg0: i32, %arg1: memref<128x128xbf16, #tpu.memory_space<vmem>>, %arg2: memref<128x384xbf16, #tpu.memory_space<vmem>>, %arg3: memref<1x384xf32, #tpu.memory_space<vmem>>, %arg4: memref<128x384xbf16, #tpu.memory_space<vmem>>, %arg5: memref<1x384xf32, #tpu.memory_space<vmem>>, %arg6: memref<128x384xbf16, #tpu.memory_space<vmem>>, %arg7: memref<1x384xf32, #tpu.memory_space<vmem>>, %arg8: memref<128x512xbf16, #tpu.memory_space<vmem>>, %arg9: memref<1x512xf32, #tpu.memory_space<vmem>>, %arg10: memref<128x512xf32, #tpu.memory_space<vmem>>) attributes {dimension_semantics = [#tpu.dimension_semantics<parallel>], iteration_bounds = array<i64: 2>, scalar_prefetch = 0 : i64, scratch_operands = 0 : i64, tpu.core_type = #tpu.core_type<tc>, window_params = [{transform_indices = @transform_0, window_bounds = array<i64: 128, 128>}, {pipeline_mode = #tpu.pipeline_mode<synchronous>, transform_indices = @transform_1, window_bounds = array<i64: 128, 384>}, {pipeline_mode = #tpu.pipeline_mode<synchronous>, transform_indices = @transform_2, window_bounds = array<i64: 1, 384>}, {pipeline_mode = #tpu.pipeline_mode<synchronous>, transform_indices = @transform_3, window_bounds = array<i64: 128, 384>}, {pipeline_mode = #tpu.pipeline_mode<synchronous>, transform_indices = @transform_4, window_bounds = array<i64: 1, 384>}, {pipeline_mode = #tpu.pipeline_mode<synchronous>, transform_indices = @transform_5, window_bounds = array<i64: 128, 384>}, {pipeline_mode = #tpu.pipeline_mode<synchronous>, transform_indices = @transform_6, window_bounds = array<i64: 1, 384>}, {pipeline_mode = #tpu.pipeline_mode<synchronous>, transform_indices = @transform_7, window_bounds = array<i64: 128, 512>}, {pipeline_mode = #tpu.pipeline_mode<synchronous>, transform_indices = @transform_8, window_bounds = array<i64: 1, 512>}, {transform_indices = @transform_9, window_bounds = array<i64: 128, 512>}]} {
    %c0 = arith.constant 0 : index
    %c0_0 = arith.constant 0 : index
    %0 = vector.load %arg1[%c0, %c0_0] : memref<128x128xbf16, #tpu.memory_space<vmem>>, vector<128x128xbf16>
    %c0_1 = arith.constant 0 : index
    %c0_2 = arith.constant 0 : index
    %1 = vector.load %arg2[%c0_1, %c0_2] : memref<128x384xbf16, #tpu.memory_space<vmem>>, vector<128x384xbf16>
    %cst = arith.constant dense<0.000000e+00> : vector<128x384xf32>
    %2 = tpu.matmul %0, %1, %cst {dimension_numbers = #tpu.dot_dimension_numbers<[1], [0], [0], [1], [0, 0, 1, 1], [], []>} : vector<128x128xbf16>, vector<128x384xbf16>, vector<128x384xf32> -> vector<128x384xf32>
    %c0_3 = arith.constant 0 : index
    %c0_4 = arith.constant 0 : index
    %3 = vector.load %arg3[%c0_3, %c0_4] : memref<1x384xf32, #tpu.memory_space<vmem>>, vector<1x384xf32>
    %4 = vector.broadcast %3 : vector<1x384xf32> to vector<128x384xf32>
    %5 = arith.addf %2, %4 : vector<128x384xf32>
    %6 = vector.extract_strided_slice %5 {offsets = [0, 0], sizes = [128, 128], strides = [1, 1]} : vector<128x384xf32> to vector<128x128xf32>
    %7 = arith.negf %6 : vector<128x128xf32>
    %8 = math.exp %7 : vector<128x128xf32>
    %cst_5 = arith.constant 1.000000e+00 : f32
    %9 = vector.broadcast %cst_5 : f32 to vector<128x128xf32>
    %10 = arith.addf %9, %8 : vector<128x128xf32>
    %11 = arith.divf %9, %10 : vector<128x128xf32>
    %12 = vector.extract_strided_slice %5 {offsets = [0, 128], sizes = [128, 128], strides = [1, 1]} : vector<128x384xf32> to vector<128x128xf32>
    %13 = math.tanh %12 : vector<128x128xf32>
    %14 = vector.extract_strided_slice %5 {offsets = [0, 256], sizes = [128, 128], strides = [1, 1]} : vector<128x384xf32> to vector<128x128xf32>
    %15 = arith.negf %14 : vector<128x128xf32>
    %16 = math.exp %15 : vector<128x128xf32>
    %cst_6 = arith.constant 1.000000e+00 : f32
    %17 = vector.broadcast %cst_6 : f32 to vector<128x128xf32>
    %18 = arith.addf %17, %16 : vector<128x128xf32>
    %19 = arith.divf %17, %18 : vector<128x128xf32>
    %20 = arith.mulf %11, %13 : vector<128x128xf32>
    %21 = math.tanh %20 : vector<128x128xf32>
    %22 = arith.mulf %19, %21 : vector<128x128xf32>
    %23 = arith.truncf %22 : vector<128x128xf32> to vector<128x128xbf16>
    %c0_7 = arith.constant 0 : index
    %c0_8 = arith.constant 0 : index
    %24 = vector.load %arg4[%c0_7, %c0_8] : memref<128x384xbf16, #tpu.memory_space<vmem>>, vector<128x384xbf16>
    %cst_9 = arith.constant dense<0.000000e+00> : vector<128x384xf32>
    %25 = tpu.matmul %23, %24, %cst_9 {dimension_numbers = #tpu.dot_dimension_numbers<[1], [0], [0], [1], [0, 0, 1, 1], [], []>} : vector<128x128xbf16>, vector<128x384xbf16>, vector<128x384xf32> -> vector<128x384xf32>
    %c0_10 = arith.constant 0 : index
    %c0_11 = arith.constant 0 : index
    %26 = vector.load %arg5[%c0_10, %c0_11] : memref<1x384xf32, #tpu.memory_space<vmem>>, vector<1x384xf32>
    %27 = vector.broadcast %26 : vector<1x384xf32> to vector<128x384xf32>
    %28 = arith.addf %25, %27 : vector<128x384xf32>
    %29 = vector.extract_strided_slice %28 {offsets = [0, 0], sizes = [128, 128], strides = [1, 1]} : vector<128x384xf32> to vector<128x128xf32>
    %30 = arith.negf %29 : vector<128x128xf32>
    %31 = math.exp %30 : vector<128x128xf32>
    %cst_12 = arith.constant 1.000000e+00 : f32
    %32 = vector.broadcast %cst_12 : f32 to vector<128x128xf32>
    %33 = arith.addf %32, %31 : vector<128x128xf32>
    %34 = arith.divf %32, %33 : vector<128x128xf32>
    %35 = vector.extract_strided_slice %28 {offsets = [0, 128], sizes = [128, 128], strides = [1, 1]} : vector<128x384xf32> to vector<128x128xf32>
    %36 = math.tanh %35 : vector<128x128xf32>
    %37 = vector.extract_strided_slice %28 {offsets = [0, 256], sizes = [128, 128], strides = [1, 1]} : vector<128x384xf32> to vector<128x128xf32>
    %38 = arith.negf %37 : vector<128x128xf32>
    %39 = math.exp %38 : vector<128x128xf32>
    %cst_13 = arith.constant 1.000000e+00 : f32
    %40 = vector.broadcast %cst_13 : f32 to vector<128x128xf32>
    %41 = arith.addf %40, %39 : vector<128x128xf32>
    %42 = arith.divf %40, %41 : vector<128x128xf32>
    %43 = arith.mulf %34, %36 : vector<128x128xf32>
    %44 = math.tanh %43 : vector<128x128xf32>
    %45 = arith.mulf %42, %44 : vector<128x128xf32>
    %46 = arith.truncf %45 : vector<128x128xf32> to vector<128x128xbf16>
    %c0_14 = arith.constant 0 : index
    %c0_15 = arith.constant 0 : index
    %47 = vector.load %arg6[%c0_14, %c0_15] : memref<128x384xbf16, #tpu.memory_space<vmem>>, vector<128x384xbf16>
    %cst_16 = arith.constant dense<0.000000e+00> : vector<128x384xf32>
    %48 = tpu.matmul %46, %47, %cst_16 {dimension_numbers = #tpu.dot_dimension_numbers<[1], [0], [0], [1], [0, 0, 1, 1], [], []>} : vector<128x128xbf16>, vector<128x384xbf16>, vector<128x384xf32> -> vector<128x384xf32>
    %c0_17 = arith.constant 0 : index
    %c0_18 = arith.constant 0 : index
    %49 = vector.load %arg7[%c0_17, %c0_18] : memref<1x384xf32, #tpu.memory_space<vmem>>, vector<1x384xf32>
    %50 = vector.broadcast %49 : vector<1x384xf32> to vector<128x384xf32>
    %51 = arith.addf %48, %50 : vector<128x384xf32>
    %52 = vector.extract_strided_slice %51 {offsets = [0, 0], sizes = [128, 128], strides = [1, 1]} : vector<128x384xf32> to vector<128x128xf32>
    %53 = arith.negf %52 : vector<128x128xf32>
    %54 = math.exp %53 : vector<128x128xf32>
    %cst_19 = arith.constant 1.000000e+00 : f32
    %55 = vector.broadcast %cst_19 : f32 to vector<128x128xf32>
    %56 = arith.addf %55, %54 : vector<128x128xf32>
    %57 = arith.divf %55, %56 : vector<128x128xf32>
    %58 = vector.extract_strided_slice %51 {offsets = [0, 128], sizes = [128, 128], strides = [1, 1]} : vector<128x384xf32> to vector<128x128xf32>
    %59 = math.tanh %58 : vector<128x128xf32>
    %60 = vector.extract_strided_slice %51 {offsets = [0, 256], sizes = [128, 128], strides = [1, 1]} : vector<128x384xf32> to vector<128x128xf32>
    %61 = arith.negf %60 : vector<128x128xf32>
    %62 = math.exp %61 : vector<128x128xf32>
    %cst_20 = arith.constant 1.000000e+00 : f32
    %63 = vector.broadcast %cst_20 : f32 to vector<128x128xf32>
    %64 = arith.addf %63, %62 : vector<128x128xf32>
    %65 = arith.divf %63, %64 : vector<128x128xf32>
    %66 = arith.mulf %57, %59 : vector<128x128xf32>
    %67 = math.tanh %66 : vector<128x128xf32>
    %68 = arith.mulf %65, %67 : vector<128x128xf32>
    %69 = arith.truncf %68 : vector<128x128xf32> to vector<128x128xbf16>
    %c0_21 = arith.constant 0 : index
    %c0_22 = arith.constant 0 : index
    %70 = vector.load %arg8[%c0_21, %c0_22] : memref<128x512xbf16, #tpu.memory_space<vmem>>, vector<128x512xbf16>
    %cst_23 = arith.constant dense<0.000000e+00> : vector<128x512xf32>
    %71 = tpu.matmul %69, %70, %cst_23 {dimension_numbers = #tpu.dot_dimension_numbers<[1], [0], [0], [1], [0, 0, 1, 1], [], []>} : vector<128x128xbf16>, vector<128x512xbf16>, vector<128x512xf32> -> vector<128x512xf32>
    %c0_24 = arith.constant 0 : index
    %c0_25 = arith.constant 0 : index
    %72 = vector.load %arg9[%c0_24, %c0_25] : memref<1x512xf32, #tpu.memory_space<vmem>>, vector<1x512xf32>
    %73 = vector.broadcast %72 : vector<1x512xf32> to vector<128x512xf32>
    %74 = arith.addf %71, %73 : vector<128x512xf32>
    %cst_26 = arith.constant dense<0xFF800000> : vector<128xf32>
    %75 = vector.multi_reduction <maximumf>, %74, %cst_26 [1] : vector<128x512xf32> to vector<128xf32>
    %76 = vector.shape_cast %75 : vector<128xf32> to vector<128x1xf32>
    %77 = vector.broadcast %76 : vector<128x1xf32> to vector<128x512xf32>
    %78 = arith.subf %74, %77 : vector<128x512xf32>
    %79 = math.exp %78 : vector<128x512xf32>
    %cst_27 = arith.constant dense<0.000000e+00> : vector<128xf32>
    %80 = vector.multi_reduction <add>, %79, %cst_27 [1] : vector<128x512xf32> to vector<128xf32>
    %81 = vector.shape_cast %80 : vector<128xf32> to vector<128x1xf32>
    %82 = math.log %81 : vector<128x1xf32>
    %83 = vector.broadcast %82 : vector<128x1xf32> to vector<128x512xf32>
    %84 = arith.subf %78, %83 : vector<128x512xf32>
    %c0_28 = arith.constant 0 : index
    %c0_29 = arith.constant 0 : index
    %85 = vector.load %arg10[%c0_28, %c0_29] : memref<128x512xf32, #tpu.memory_space<vmem>>, vector<128x512xf32>
    tpu.vector_store %arg10[%c0_28, %c0_29], %84 {strides = array<i32>} : memref<128x512xf32, #tpu.memory_space<vmem>>, vector<128x512xf32>,
    return
  }
  func.func @transform_0(%arg0: i32) -> (i32, i32) {
    %c0_i32 = arith.constant 0 : i32
    %c0_i32_0 = arith.constant 0 : i32
    return %arg0, %c0_i32 : i32, i32
  }
  func.func @transform_1(%arg0: i32) -> (i32, i32) {
    %c0_i32 = arith.constant 0 : i32
    %c0_i32_0 = arith.constant 0 : i32
    %c0_i32_1 = arith.constant 0 : i32
    return %c0_i32, %c0_i32_0 : i32, i32
  }
  func.func @transform_2(%arg0: i32) -> (i32, i32) {
    %c0_i32 = arith.constant 0 : i32
    %c0_i32_0 = arith.constant 0 : i32
    %c0_i32_1 = arith.constant 0 : i32
    return %c0_i32, %c0_i32_0 : i32, i32
  }
  func.func @transform_3(%arg0: i32) -> (i32, i32) {
    %c0_i32 = arith.constant 0 : i32
    %c0_i32_0 = arith.constant 0 : i32
    %c0_i32_1 = arith.constant 0 : i32
    return %c0_i32, %c0_i32_0 : i32, i32
  }
  func.func @transform_4(%arg0: i32) -> (i32, i32) {
    %c0_i32 = arith.constant 0 : i32
    %c0_i32_0 = arith.constant 0 : i32
    %c0_i32_1 = arith.constant 0 : i32
    return %c0_i32, %c0_i32_0 : i32, i32
  }
  func.func @transform_5(%arg0: i32) -> (i32, i32) {
    %c0_i32 = arith.constant 0 : i32
    %c0_i32_0 = arith.constant 0 : i32
    %c0_i32_1 = arith.constant 0 : i32
    return %c0_i32, %c0_i32_0 : i32, i32
  }
  func.func @transform_6(%arg0: i32) -> (i32, i32) {
    %c0_i32 = arith.constant 0 : i32
    %c0_i32_0 = arith.constant 0 : i32
    %c0_i32_1 = arith.constant 0 : i32
    return %c0_i32, %c0_i32_0 : i32, i32
  }
  func.func @transform_7(%arg0: i32) -> (i32, i32) {
    %c0_i32 = arith.constant 0 : i32
    %c0_i32_0 = arith.constant 0 : i32
    %c0_i32_1 = arith.constant 0 : i32
    return %c0_i32, %c0_i32_0 : i32, i32
  }
  func.func @transform_8(%arg0: i32) -> (i32, i32) {
    %c0_i32 = arith.constant 0 : i32
    %c0_i32_0 = arith.constant 0 : i32
    %c0_i32_1 = arith.constant 0 : i32
    return %c0_i32, %c0_i32_0 : i32, i32
  }
  func.func @transform_9(%arg0: i32) -> (i32, i32) {
    %c0_i32 = arith.constant 0 : i32
    %c0_i32_0 = arith.constant 0 : i32
    return %arg0, %c0_i32 : i32, i32
  }
}

</mosaic_0001>

<bundles_post_ra>
// kernel: tpu_custom_call.1
= control target key start
LH: loop header
LB: loop body
LE: loop exit
PB: predicated region body
PF: predicated region fallthrough
CT: control target
= control target key end

     0   :  { %s6491_s0 = inlined_call_operand.hbm [shape: bf16[256,128], index: 0, kind: input, shape index: {}]   ;;  %s6492_s1 = inlined_call_operand.hbm [shape: bf16[128,384], index: 1, kind: input, shape index: {}]   ;;  %s6493_s2 = inlined_call_operand.vmem [shape: f32[1,384], index: 2, kind: input, shape index: {}]   ;;  %s6494_s3 = inlined_call_operand.hbm [shape: bf16[128,384], index: 3, kind: input, shape index: {}]   ;;  %s6495_s4 = inlined_call_operand.hbm [shape: f32[1,384], index: 4, kind: input, shape index: {}]   ;;  %s6496_s5 = inlined_call_operand.hbm [shape: bf16[128,384], index: 5, kind: input, shape index: {}]   ;;  %s6497_s6 = inlined_call_operand.vmem [shape: f32[1,384], index: 6, kind: input, shape index: {}]   ;;  %s6498_s7 = inlined_call_operand.hbm [shape: bf16[128,512], index: 7, kind: input, shape index: {}]   ;;  %s6499_s8 = inlined_call_operand.vmem [shape: f32[1,512], index: 8, kind: input, shape index: {}]   ;;  %s6500_s9 = inlined_call_operand.hbm [shape: f32[256,512], index: 9, kind: output, shape index: {}]  }
   0x1   :  { %6539 = sst [smem:[#allocation41_spill]] %s6492_s1 }
   0x2   :  { %6540 = sst [smem:[#allocation42_spill]] %s6494_s3 }
   0x3   :  { %6541 = sst [smem:[#allocation43_spill]] %s6495_s4 }
   0x4   :  { %14 = vsyncpa [#allocation3], 0 }
   0x5   :  { %16 = vsyncpa [#allocation3 + $0x1], 0 }
   0x6   :  { %17 = vsyncpa [#allocation6], 0 }
   0x7   :  { %18 = vsyncpa [#allocation9], 0 }
   0x8   :  { %19 = vsyncpa [#allocation12], 0 }
   0x9   :  { %20 = vsyncpa [#allocation4], 0 }
   0xa   :  { %22 = vsyncpa [#allocation4 + $0x1], 0  ;;  %s5222_s30 = smov 0   ;;  %s5224_s10 = smov 0  }
   0xb   :  { %s5226_s11 = smov 0   ;;  %s5228_s12 = smov 0  }
   0xc LB: > { %s5156_s13 = smov [#allocation5]   ;;  %s5243_s15 = sadd.s32 4294967295, %s5154_s12   ;;  %s5154_s12 = sphi %s5228_s12, %s6634_s12   ;;  %s5150_s11 = sphi %s5226_s11, %s6633_s11   ;;  %s5146_s10 = sphi %s5224_s10, %s6632_s10   ;;  %s5142_s30 = sphi %s5222_s30, %s6631_s30  }
   0xd   : > { %s265_s14 = sshll.u32 %s5156_s13, 4  ;;  %p3531_p0 = scmp.ge.s32.totalorder %s5154_s12, 1  ;;  %s266_s14 = int_to_ptr.vmem [resolvable:$true] %s265_s14 }
   0xe   : > { %p6501_p1 = scmp.eq.s32.totalorder %s5243_s15, 0  ;;  %p253_p2 = scmp.lt.s32.totalorder %s5154_s12, 3 }
   0xf   : > { %s5157_s17 = smov [#allocation8]   ;;  %s5158_s20 = smov [#allocation7]  }
  0x10   : > { %p5248_p3 = pnand %p3531_p0, %p253_p2  ;;  %s295_s18 = sshll.u32 %s5157_s17, 4  ;;  %s296_s18 = int_to_ptr.vmem [resolvable:$true] %s295_s18 }
  0x11   : > { %s281_s21 = sshll.u32 %s5158_s20, 4  ;;  %s4931_s23 = scalar_lea.vmem %s266_s14, 3072  ;;  %s5261_s21 = int_to_ptr.vmem [resolvable:$true] %s281_s21 }
  0x12   : > { %s6542_s16 = scalar_select %p5248_p3, 1, 0 }
  0x13   : > { %p3950_p5 = pneg %p5248_p3  ;;  %p4932_p8 = scmp.ne.s32.totalorder %s266_s14, %s4931_s23 }
  0x14   : > { %p4939_p11 = scmp.lt.s32.totalorder %s266_s14, %s266_s14  ;;  %p4940_p12 = scmp.lt.s32.totalorder %s4931_s23, %s4931_s23 }
  0x15   : > { %p5257_p6 = pnand %p3950_p5, %p6501_p1 }
  0x16   : > { %p4941_p13 = por %p4940_p12, %p4939_p11 }
  0x17   : > { %p5265_p7 = pneg %p5257_p6 }
  0x19   : > { %p4934_p9 = pnand %p4932_p8, %p5265_p7 }
  0x1b   : > { %p4935_p10 = pneg %p4934_p9 }
  0x1d   : > { %p4942_p0 = pnand %p4941_p13, %p4935_p10 }
  0x1f   : > { %4945 = shalt.err (!%p4942_p0)
}
  0x20   : > { %s5159_s24 = smov 192   ;;  %s5160_s25 = smov 12  }
  0x21   : > { %s6545_s1 = sld [smem:[#allocation41_spill]]  ;;  %s4957_s28 = scalar_lea.vmem %s296_s18, 48 }
  0x22   : > { %p4958_p2 = scmp.ne.s32.totalorder %s296_s18, %s4957_s28  ;;  %s4964_s29 = scalar_lea.vmem %s296_s18, 64 }
  0x23   : > { %p4965_p9 = scmp.lt.s32.totalorder %s296_s18, %s296_s18  ;;  %p4966_p10 = scmp.lt.s32.totalorder %s4964_s29, %s4957_s28 }
  0x24   : > { %p4960_p5 = pnand %p4958_p2, %p5265_p7 }
  0x25   : > { %p4967_p11 = por %p4966_p10, %p4965_p9 }
  0x26   : > { %p4961_p8 = pneg %p4960_p5 }
  0x27   : > { %3953 = dma.hbm_to_vmem [thread:$0]  (!%p5257_p6), %s6545_s1, 3072, %s266_s14, [#allocation6], %s5159_s24, %s5159_s24, %s5160_s25  }
  0x28   : > { %p4968_p12 = pnand %p4967_p11, %p4961_p8 }
  0x2a   : > { %4971 = shalt.err (!%p4968_p12)
}
  0x2b   : > { %s6546_s4 = sld [smem:[#allocation43_spill]]  ;;  %s4983_s14 = scalar_lea.vmem %s5261_s21, 3072 }
  0x2c   : > { %p4984_p13 = scmp.ne.s32.totalorder %s5261_s21, %s4983_s14  ;;  %p4991_p5 = scmp.lt.s32.totalorder %s5261_s21, %s5261_s21 }
  0x2d   : > { %p4992_p9 = scmp.lt.s32.totalorder %s4983_s14, %s4983_s14 }
  0x2e   : > { %p4986_p0 = pnand %p4984_p13, %p5265_p7 }
  0x2f   : > { %p4993_p8 = por %p4992_p9, %p4991_p5 }
  0x30   : > { %p4987_p2 = pneg %p4986_p0 }
  0x31   : > { %3959 = dma.hbm_to_vmem [thread:$0]  (!%p5257_p6), %s6546_s4, 48, %s296_s18, [#allocation9]  }
  0x32   : > { %p4994_p10 = pnand %p4993_p8, %p4987_p2 }
  0x34   : > { %4997 = shalt.err (!%p4994_p10)
}
  0x35   : > { %s6547_s3 = sld [smem:[#allocation42_spill]]  ;;  %s5161_s18 = smov [#allocation10]  }
  0x36   : > { %s305_s26 = sshll.u32 %s5161_s18, 4  ;;  %s5162_s27 = smov [#allocation11]   ;;  %s306_s26 = int_to_ptr.vmem [resolvable:$true] %s305_s26 }
  0x37   : > { %s321_s28 = sshll.u32 %s5162_s27, 4  ;;  %s5009_s29 = scalar_lea.vmem %s306_s26, 3072  ;;  %s322_s28 = int_to_ptr.vmem [resolvable:$true] %s321_s28 }
  0x38   : > { %p5010_p11 = scmp.ne.s32.totalorder %s306_s26, %s5009_s29  ;;  %p5017_p0 = scmp.lt.s32.totalorder %s306_s26, %s306_s26 }
  0x39   : > { %p5018_p2 = scmp.lt.s32.totalorder %s5009_s29, %s5009_s29 }
  0x3a   : > { %p5012_p12 = pnand %p5010_p11, %p5265_p7 }
  0x3b   : > { %3956 = dma.hbm_to_vmem [thread:$0]  (!%p5257_p6), %s6547_s3, 3072, %s5261_s21, [#allocation6], %s5159_s24, %s5159_s24, %s5160_s25  }
  0x3c   : > { %p5013_p13 = pneg %p5012_p12  ;;  %p5019_p5 = por %p5018_p2, %p5017_p0 }
  0x3e   : > { %p5020_p9 = pnand %p5019_p5, %p5013_p13 }
  0x40   : > { %5023 = shalt.err (!%p5020_p9)
}
  0x41   : > { %3962 = dma.hbm_to_vmem [thread:$0]  (!%p5257_p6), %s6496_s5, 3072, %s306_s26, [#allocation9], %s5159_s24, %s5159_s24, %s5160_s25  }
  0x42   : > { %s5035_s17 = scalar_lea.vmem %s322_s28, 4096  ;;  %p5043_p12 = scmp.lt.s32.totalorder %s322_s28, %s322_s28 }
  0x43   : > { %p5036_p8 = scmp.ne.s32.totalorder %s322_s28, %s5035_s17  ;;  %p5044_p0 = scmp.lt.s32.totalorder %s5035_s17, %s5035_s17 }
  0x45   : > { %p5038_p10 = pnand %p5036_p8, %p5265_p7  ;;  %p5045_p13 = por %p5044_p0, %p5043_p12 }
  0x47   : > { %p5039_p11 = pneg %p5038_p10 }
  0x49   : > { %p5046_p2 = pnand %p5045_p13, %p5039_p11 }
  0x4b   : > { %5049 = shalt.err (!%p5046_p2)
}
  0x4c   : > { %s5163_s14 = smov 256   ;;  %s5164_s22 = smov 16  }
  0x4d   : > { %3965 = dma.hbm_to_vmem [thread:$0]  (!%p5257_p6), %s6498_s7, 4096, %s322_s28, [#allocation12], %s5163_s14, %s5163_s14, %s5164_s22  }
  0x4e   : > { %s3530_s20 = sadd.s32 4294967294, %s5154_s12   ;;  %s5320_s23 = sadd.s32 1, %s5154_s12  }
  0x4f   : > { %s35_s18 = sadd.s32 1, %s5150_s11  ;;  %s32_s26 = ssub.s32 %s5154_s12, %s5320_s23 }
  0x50   : > { %p42_p7 = scmp.ne.s32.totalorder %s5150_s11, %s5146_s10  ;;  %p33_p5 = scmp.eq.s32.totalorder %s32_s26, 0 }
  0x51   : > { %p43_p9 = scmp.eq.s32.totalorder %s5154_s12, 0  ;;  %p48_p8 = scmp.ne.s32.totalorder %s5146_s10, %s5142_s30 }
  0x52   : > { %p240_p10 = scmp.eq.s32.totalorder %s5243_s15, 1  ;;  %p246_p0 = scmp.eq.s32.totalorder %s3530_s20, 1 }
  0x53   : > { %s5332_s27 = scalar_select %p33_p5, %s5150_s11, %s35_s18  }
  0x54   : > { %p44_p11 = por %p43_p9, %p42_p7  ;;  %p5336_p12 = por %p6501_p1, %p48_p8 }
  0x55   : > { %p5340_p6 = por %p240_p10, %p42_p7  ;;  %p3979_p13 = scmp.lt.s32.totalorder %s5154_s12, 2 }
  0x56   : > { %s6548_s19 = scalar_select %p5336_p12, 1, 0 }
  0x57   : > { %s6549_s28 = scalar_select %p5340_p6, 1, 0 }
  0x58   : > { %s338_s29 = sand.u32 1, %s5150_s11   ;;  %p5346_p2 = por %p246_p0, %p48_p8 }
  0x59   : > { %s3538_s13 = sshll.u32 %s338_s29, 6  ;;  %s3763_s17 = sshll.u32 %s5154_s12, 10 }
  0x5a   : > { %s6550_s21 = scalar_select %p5346_p2, 1, 0 }
  0x5b   : > { %s5354_s24 = scalar_lea.hbm %s6491_s0, %s3763_s17  ;;  %s342_s25 = scalar_lea.vmem [#allocation2], %s3538_s13 }
  0x5c   : > { %s349_s18 = sshll.u32 %s342_s25, 4  ;;  %p5356_p7 = pnand %p3979_p13, %p44_p11  ;;  %s5360_s18 = int_to_ptr.vmem [resolvable:$true] %s349_s18 }
  0x5d   : > { %s5362_s26 = scalar_lea.sflag [#allocation3], %s338_s29  ;;  %s5050_s1 = scalar_lea.hbm %s5354_s24, 1024 }
  0x5e   : > { %p5051_p5 = scmp.ne.s32.totalorder %s5354_s24, %s5050_s1  ;;  %p5052_p9 = pneg %p5356_p7 }
  0x5f   : > { %s5055_s13 = scalar_lea.hbm %s6491_s0, 2048  ;;  %p5056_p11 = scmp.lt.s32.totalorder %s5354_s24, %s6491_s0 }
  0x60   : > { %p5053_p8 = pnand %p5052_p9, %p5051_p5  ;;  %p5057_p0 = scmp.lt.s32.totalorder %s5055_s13, %s5050_s1 }
  0x62   : > { %p5054_p10 = pneg %p5053_p8  ;;  %p5058_p13 = por %p5057_p0, %p5056_p11 }
  0x64   : > { %p5059_p4 = pnand %p5058_p13, %p5054_p10 }
  0x66   : > { %5062 = shalt.err (!%p5059_p4)
}
  0x67   : > { %s5063_s29 = scalar_lea.vmem %s5360_s18, 1024  ;;  %s5165_s3 = smov [#allocation2]  }
  0x68   : > { %p5064_p1 = scmp.ne.s32.totalorder %s5360_s18, %s5063_s29  ;;  %s5068_s4 = sshll.u32 %s5165_s3, 4  ;;  %s5069_s4 = int_to_ptr.vmem [resolvable:$false] %s5068_s4 }
  0x69   : > { %s5070_s17 = scalar_lea.vmem %s5069_s4, 2048  ;;  %p5071_p8 = scmp.lt.s32.totalorder %s5360_s18, %s5069_s4 }
  0x6a   : > { %p5066_p2 = pnand %p5064_p1, %p5052_p9  ;;  %p5072_p6 = scmp.lt.s32.totalorder %s5070_s17, %s5063_s29 }
  0x6c   : > { %p5067_p5 = pneg %p5066_p2  ;;  %p5073_p12 = por %p5072_p6, %p5071_p8 }
  0x6e   : > { %p5074_p3 = pnand %p5073_p12, %p5067_p5 }
  0x70   : > { %5077 = shalt.err (!%p5074_p3)
}
  0x71   : > { %s5166_s1 = smov 64   ;;  %s5167_s14 = smov 4  }
  0x72   : > { %3969 = dma.hbm_to_vmem [thread:$0]  (!%p5356_p7), %s5354_s24, 1024, %s5360_s18, %s5362_s26, %s5166_s1, %s5166_s1, %s5167_s14  }
  0x73   : > { %p6552_p1 = scmp.ne.s32.totalorder %s6542_s16, 0 }
  0x75   : > { %361 = sbr.rel (%p6552_p1) target bundleno = 1566 (0x61e), region = 56 }
  0x7a   : > { %s5386_s3 = sand.u32 1, %s5146_s10   ;;  %p6553_p3 = scmp.ne.s32.totalorder %s6548_s19, 0 }
  0x7b   : > { %s3542_s4 = sshll.u32 %s5386_s3, 6  ;;  %s364_s13 = scalar_lea.sflag [#allocation3], %s5386_s3 }
  0x7c   : > { %s5390_s22 = scalar_lea.vmem [#allocation2], %s3542_s4 }
  0x7d   : > { %5121 = dma.done.wait (%p6553_p3), %s364_s13, 1024  }
  0x7e   : > { %5123 = vsyncadd (%p6553_p3), %s364_s13, 4294966272  ;;  %p6554_p4 = scmp.eq.s32.totalorder %s5243_s15, 0 }
  0x80   : > { %5125 = dma.done.wait (%p6554_p4), [#allocation6], 6144   ;;  %p6555_p12 = pmov %p6554_p4 }
  0x81   : > { %p6556_p6 = pmov %p6554_p4 }
  0x82   : > { %5127 = vsyncadd (%p6555_p12), [#allocation6], 4294961152 }
  0x83   : > { %5129 = dma.done.wait (%p6556_p6), [#allocation9], 3120   ;;  %p6557_p2 = pmov %p6554_p4 }
  0x85   : > { %5131 = vsyncadd (%p6557_p2), [#allocation9], 4294964176  ;;  %p6558_p7 = pmov %p6557_p2 }
  0x86   : > { %p6559_p9 = pmov %p6557_p2 }
  0x87   : > { %5133 = dma.done.wait (%p6558_p7), [#allocation12], 4096  }
  0x88   : > { %5135 = vsyncadd (%p6559_p9), [#allocation12], 4294963200  ;;  %v5168_v0 = vmov 0   ;;  %v4032_v1 = vld [vmem:[#allocation5 + $0xac] ss:$12 sps:$4 sm:$0xff]   ;;  %v4062_v19 = vld [vmem:[%s5390_s22] sm:$0xff]   ;;  %v475_v57 = vlaneseq }
  0x89   : > { %698 = vmatprep.mubr.bf16.mxu0 %v5168_v0  ;;  %v4034_v2 = vld [vmem:[#allocation5 + $0xa8] ss:$12 sps:$4 sm:$0xff]   ;;  %666 = vmatprep.subr.bf16.mxu0 %v4032_v1  ;;  %v4037_v4 = vld [vmem:[#allocation5 + $0x90] ss:$12 sps:$4 sm:$0xff]   ;;  %v4044_v7 = vld [vmem:[#allocation5 + $0x98] ss:$12 sps:$4 sm:$0xff]  }
  0x8a   : > { %v4035_v3 = vld [vmem:[#allocation5 + $0x94] ss:$12 sps:$4 sm:$0xff]   ;;  %667 = vmatpush1.bf16.msra.mxu0 %v4034_v2  ;;  %v4038_v5 = vld [vmem:[#allocation5 + $0x7c] ss:$12 sps:$4 sm:$0xff]   ;;  %v4041_v8 = vld [vmem:[#allocation5 + $0x78] ss:$12 sps:$4 sm:$0xff]   ;;  %3830 = vmatprep.mubr.bf16.mxu1 %v4062_v19 }
  0x8b   : > { %668 = vmatprep.subr.bf16.mxu0 %v4035_v3  ;;  %v4040_v6 = vld [vmem:[#allocation5 + $0xb0] ss:$12 sps:$4 sm:$0xff]   ;;  %v4048_v10 = vld [vmem:[#allocation5 + $0x80] ss:$12 sps:$4 sm:$0xff]   ;;  %v4052_v13 = vld [vmem:[#allocation5 + $0x68] ss:$12 sps:$4 sm:$0xff]  }
  0x8c   : > { %3814 = vmatprep.subr.bf16.mxu1 %v4040_v6  ;;  %v4042_v9 = vld [vmem:[#allocation5 + $0x64] ss:$12 sps:$4 sm:$0xff]   ;;  %v4045_v11 = vld [vmem:[#allocation5 + $0x60] ss:$12 sps:$4 sm:$0xff]   ;;  %v4049_v14 = vld [vmem:[#allocation5 + $0x48] ss:$12 sps:$4 sm:$0xff]  }
  0x8d   : > { %3815 = vmatpush3.bf16.msra.mxu1 %v4040_v6  ;;  %v4046_v12 = vld [vmem:[#allocation5 + $0x4c] ss:$12 sps:$4 sm:$0xff]   ;;  %v4050_v15 = vld [vmem:[#allocation5 + $0x34] ss:$12 sps:$4 sm:$0xff]   ;;  %v4056_v16 = vld [vmem:[#allocation5 + $0x50] ss:$12 sps:$4 sm:$0xff]  }
  0x8e   : > { %669 = vmatpush1.bf16.msra.mxu0 %v4037_v4  ;;  %3816 = vmatprep.subr.bf16.mxu1 %v4044_v7  ;;  %v4053_v17 = vld [vmem:[#allocation5 + $0x30] ss:$12 sps:$4 sm:$0xff]   ;;  %v4060_v20 = vld [vmem:[#allocation5 + $0x38] ss:$12 sps:$4 sm:$0xff]   ;;  %v4063_v23 = vld [vmem:[#allocation5 + $0x20] ss:$12 sps:$4 sm:$0xff]  }
  0x8f   : > { %670 = vmatprep.subr.bf16.mxu0 %v4038_v5  ;;  %v4054_v18 = vld [vmem:[#allocation5 + $0x1c] ss:$12 sps:$4 sm:$0xff]   ;;  %v4057_v21 = vld [vmem:[#allocation5 + $0x18] ss:$12 sps:$4 sm:$0xff]   ;;  %v4061_v24 = vld [vmem:[#allocation5] ss:$12 sps:$4 sm:$0xff]  }
  0x90   : > { %v4058_v22 = vld [vmem:[#allocation5 + $0x4] ss:$12 sps:$4 sm:$0xff]   ;;  %v4064_v25 = vld [vmem:[#allocation5 + $0x8] ss:$12 sps:$4 sm:$0xff]   ;;  %v4067_v28 = vld [vmem:[%s5390_s22 + $0x18] sm:$0xff]   ;;  %v5425_v58 = vshrl.u32 %v475_v57, 7 }
  0x91   : > { %3817 = vmatpush3.bf16.msra.mxu1 %v4044_v7  ;;  %v4065_v26 = vld [vmem:[%s5390_s22 + $0x8] sm:$0xff]   ;;  %v4066_v27 = vld [vmem:[%s5390_s22 + $0x10] sm:$0xff]   ;;  %v4068_v29 = vld [vmem:[%s5390_s22 + $0x20] sm:$0xff]   ;;  %s3548_s25 = sshll.u32 %s5386_s3, 9  ;;  %s3765_s17 = sshll.u32 %s5243_s15, 13 }
  0x92   : > { %671 = vmatpush1.bf16.msra.mxu0 %v4041_v8  ;;  %3818 = vmatprep.subr.bf16.mxu1 %v4048_v10  ;;  %v4069_v30 = vld [vmem:[%s5390_s22 + $0x28] sm:$0xff]   ;;  %v4070_v31 = vld [vmem:[%s5390_s22 + $0x30] sm:$0xff]   ;;  %v4071_v32 = vld [vmem:[%s5390_s22 + $0x38] sm:$0xff]   ;;  %v5428_v59 = vsub.s32 0, %v5425_v58  ;;  %v5437_v62 = vsub.s32 2, %v5425_v58  ;;  %v5444_v3 = vsub.s32 1, %v5425_v58  ;;  %s6438_s13 = scalar_lea.hbm %s6500_s9, %s3765_s17 }
  0x93   : > { %672 = vmatprep.subr.bf16.mxu0 %v4042_v9  ;;  %v4077_v33 = vld [vmem:[#allocation7 + $0xac] ss:$12 sps:$4 sm:$0xff]   ;;  %v4075_v34 = vld [vmem:[#allocation7 + $0xa8] ss:$12 sps:$4 sm:$0xff]   ;;  %v4072_v35 = vld [vmem:[#allocation7 + $0xb0] ss:$12 sps:$4 sm:$0xff]  }
  0x94   : > { %v4073_v36 = vld [vmem:[#allocation7 + $0x98] ss:$12 sps:$4 sm:$0xff]   ;;  %v4080_v37 = vld [vmem:[#allocation7 + $0x94] ss:$12 sps:$4 sm:$0xff]   ;;  %v4078_v38 = vld [vmem:[#allocation7 + $0x90] ss:$12 sps:$4 sm:$0xff]  }
  0x95   : > { %3819 = vmatpush3.bf16.msra.mxu1 %v4048_v10  ;;  %v4084_v39 = vld [vmem:[#allocation7 + $0x7c] ss:$12 sps:$4 sm:$0xff]   ;;  %v4082_v40 = vld [vmem:[#allocation7 + $0x78] ss:$12 sps:$4 sm:$0xff]   ;;  %v4074_v41 = vld [vmem:[#allocation7 + $0x80] ss:$12 sps:$4 sm:$0xff]  }
  0x96   : > { %673 = vmatpush1.bf16.msra.mxu0 %v4045_v11  ;;  %3820 = vmatprep.subr.bf16.mxu1 %v4052_v13  ;;  %v4087_v42 = vld [vmem:[#allocation7 + $0x64] ss:$12 sps:$4 sm:$0xff]   ;;  %v4085_v43 = vld [vmem:[#allocation7 + $0x60] ss:$12 sps:$4 sm:$0xff]   ;;  %v4089_v45 = vld [vmem:[#allocation7 + $0x48] ss:$12 sps:$4 sm:$0xff]  }
  0x97   : > { %674 = vmatprep.subr.bf16.mxu0 %v4046_v12  ;;  %v4091_v44 = vld [vmem:[#allocation7 + $0x4c] ss:$12 sps:$4 sm:$0xff]   ;;  %v4081_v46 = vld [vmem:[#allocation7 + $0x68] ss:$12 sps:$4 sm:$0xff]   ;;  %v4088_v47 = vld [vmem:[#allocation7 + $0x50] ss:$12 sps:$4 sm:$0xff]  }
  0x98   : > { %v4094_v48 = vld [vmem:[#allocation7 + $0x34] ss:$12 sps:$4 sm:$0xff]   ;;  %v4092_v49 = vld [vmem:[#allocation7 + $0x30] ss:$12 sps:$4 sm:$0xff]   ;;  %v4096_v51 = vld [vmem:[#allocation7 + $0x18] ss:$12 sps:$4 sm:$0xff]  }
  0x99   : > { %3821 = vmatpush3.bf16.msra.mxu1 %v4052_v13  ;;  %v4098_v50 = vld [vmem:[#allocation7 + $0x1c] ss:$12 sps:$4 sm:$0xff]   ;;  %v4095_v52 = vld [vmem:[#allocation7 + $0x38] ss:$12 sps:$4 sm:$0xff]   ;;  %v4099_v54 = vld [vmem:[#allocation7] ss:$12 sps:$4 sm:$0xff]  }
  0x9a   : > { %675 = vmatpush1.bf16.msra.mxu0 %v4049_v14  ;;  %3822 = vmatprep.subr.bf16.mxu1 %v4056_v16  ;;  %v4101_v53 = vld [vmem:[#allocation7 + $0x4] ss:$12 sps:$4 sm:$0xff]   ;;  %v4102_v55 = vld [vmem:[#allocation7 + $0x20] ss:$12 sps:$4 sm:$0xff]   ;;  %v4103_v56 = vld [vmem:[#allocation7 + $0x8] ss:$12 sps:$4 sm:$0xff]  }
  0x9b   : > { %676 = vmatprep.subr.bf16.mxu0 %v4050_v15  ;;  %v473_v60 = vld [vmem:[%s6493_s2] sm:$0x7]  ;;  %s6315_s29 = scalar_lea.vmem [#allocation13], %s3548_s25  ;;  %s3395_s15 = scalar_lea.sflag [#allocation4], %s5386_s3 }
  0x9c   : > { %v5434_v61 = vrot.slane %v473_v60, %v5428_v59  ;;  %v5441_v2 = vrot.slane %v473_v60, %v5437_v62  ;;  %v5449_v10 = vrot.slane %v473_v60, %v5444_v3  ;;  %s3409_s1 = sshll.u32 %s6315_s29, 4  ;;  %p6628_p11 = scmp.ne.s32.totalorder %s6549_s28, 0  ;;  %s6440_s1 = int_to_ptr.vmem [resolvable:$true] %s3409_s1 }
  0x9d   : > { %3823 = vmatpush3.bf16.msra.mxu1 %v4056_v16  ;;  %s5078_s22 = scalar_lea.vmem %s6440_s1, 8192  ;;  %s5169_s16 = smov [#allocation13]  }
  0x9e   : > { %677 = vmatpush1.bf16.msra.mxu0 %v4053_v17  ;;  %3824 = vmatprep.subr.bf16.mxu1 %v4060_v20  ;;  %p5079_p10 = scmp.ne.s32.totalorder %s6440_s1, %s5078_s22  ;;  %s5082_s19 = sshll.u32 %s5169_s16, 4  ;;  %s5083_s19 = int_to_ptr.vmem [resolvable:$false] %s5082_s19 }
  0x9f   : > { %678 = vmatprep.subr.bf16.mxu0 %v4054_v18  ;;  %s5084_s24 = scalar_lea.vmem %s5083_s19, 16384  ;;  %p5085_p5 = scmp.lt.s32.totalorder %s6440_s1, %s5083_s19 }
  0xa0   : > { %p5080_p0 = pnand %p5079_p10, %p6628_p11  ;;  %p5086_p8 = scmp.lt.s32.totalorder %s5084_s24, %s5078_s22 }
  0xa1   : > { %3825 = vmatpush3.bf16.msra.mxu1 %v4060_v20 }
  0xa2   : > { %679 = vmatpush1.bf16.msra.mxu0 %v4057_v21  ;;  %3826 = vmatprep.subr.bf16.mxu1 %v4063_v23  ;;  %p5081_p13 = pneg %p5080_p0  ;;  %p5087_p1 = por %p5086_p8, %p5085_p5 }
  0xa3   : > { %680 = vmatprep.subr.bf16.mxu0 %v4058_v22 }
  0xa4   : > { %p5088_p3 = pnand %p5087_p1, %p5081_p13 }
  0xa5   : > { %3827 = vmatpush3.bf16.msra.mxu1 %v4063_v23 }
  0xa6   : > { %681 = vmatpush1.bf16.msra.mxu0 %v4061_v24  ;;  %3828 = vmatprep.subr.bf16.mxu1 %v4064_v25 }
  0xa7   : > { %3846 = vmatprep.subr.bf16.mxu0 %v4072_v35 }
  0xa9   : > { %699 = vmatmul.mubr.bf16.vlgmr.msra.gmra.mxu0 %v4062_v19  ;;  %3829 = vmatpush3.bf16.msra.mxu1 %v4064_v25 }
  0xaa   : > { %708 = vmatprep.mubr.bf16.mxu0 %v5168_v0  ;;  %1317 = vmatprep.subr.bf16.mxu1 %v4077_v33 }
  0xab   : > { %3847 = vmatpush3.bf16.msra.mxu0 %v4072_v35 }
  0xac   : > { %3831 = vmatmul.mubr.bf16.vlgmr.msra.gmra.mxu1 %v4065_v26  ;;  %3848 = vmatprep.subr.bf16.mxu0 %v4073_v36 }
  0xad   : > { %3834 = vmatprep.mubr.bf16.mxu1 %v4066_v27  ;;  %1318 = vmatpush1.bf16.msra.mxu1 %v4075_v34 }
  0xae   : > { %1319 = vmatprep.subr.bf16.mxu1 %v4080_v37 }
  0xaf   : > { %3849 = vmatpush3.bf16.msra.mxu0 %v4073_v36 }
  0xb0   : > { %3850 = vmatprep.subr.bf16.mxu0 %v4074_v41 }
  0xb1   : > { %709 = vmatmul.mubr.bf16.gmra.mxu0 %v4065_v26  ;;  %1320 = vmatpush1.bf16.msra.mxu1 %v4078_v38 }
  0xb2   : > { %718 = vmatprep.mubr.bf16.mxu0 %v5168_v0  ;;  %1321 = vmatprep.subr.bf16.mxu1 %v4084_v39 }
  0xb3   : > { %3851 = vmatpush3.bf16.msra.mxu0 %v4074_v41 }
  0xb4   : > { %3835 = vmatmul.mubr.bf16.gmra.mxu1 %v4067_v28  ;;  %3852 = vmatprep.subr.bf16.mxu0 %v4081_v46 }
  0xb5   : > { %3838 = vmatprep.mubr.bf16.mxu1 %v4068_v29  ;;  %1322 = vmatpush1.bf16.msra.mxu1 %v4082_v40 }
  0xb6   : > { %1323 = vmatprep.subr.bf16.mxu1 %v4087_v42 }
  0xb7   : > { %3853 = vmatpush3.bf16.msra.mxu0 %v4081_v46 }
  0xb8   : > { %3854 = vmatprep.subr.bf16.mxu0 %v4088_v47 }
  0xb9   : > { %719 = vmatmul.mubr.bf16.gmra.mxu0 %v4066_v27  ;;  %1324 = vmatpush1.bf16.msra.mxu1 %v4085_v43 }
  0xba   : > { %728 = vmatprep.mubr.bf16.mxu0 %v5168_v0  ;;  %1325 = vmatprep.subr.bf16.mxu1 %v4091_v44 }
  0xbb   : > { %3855 = vmatpush3.bf16.msra.mxu0 %v4088_v47 }
  0xbc   : > { %3839 = vmatmul.mubr.bf16.gmra.mxu1 %v4069_v30  ;;  %3856 = vmatprep.subr.bf16.mxu0 %v4095_v52 }
  0xbd   : > { %3842 = vmatprep.mubr.bf16.mxu1 %v4070_v31  ;;  %1326 = vmatpush1.bf16.msra.mxu1 %v4089_v45 }
  0xbe   : > { %1327 = vmatprep.subr.bf16.mxu1 %v4094_v48 }
  0xbf   : > { %3857 = vmatpush3.bf16.msra.mxu0 %v4095_v52 }
  0xc0   : > { %3858 = vmatprep.subr.bf16.mxu0 %v4102_v55 }
  0xc1   : > { %729 = vmatmul.mubr.bf16.gmra.mxu0 %v4067_v28  ;;  %1328 = vmatpush1.bf16.msra.mxu1 %v4092_v49 }
  0xc2   : > { %738 = vmatprep.mubr.bf16.mxu0 %v5168_v0  ;;  %1329 = vmatprep.subr.bf16.mxu1 %v4098_v50 }
  0xc3   : > { %3859 = vmatpush3.bf16.msra.mxu0 %v4102_v55 }
  0xc4   : > { %3843 = vmatmul.mubr.bf16.gmra.mxu1 %v4071_v32  ;;  %3860 = vmatprep.subr.bf16.mxu0 %v4103_v56 }
  0xc5   : > { %1349 = vmatprep.mubr.bf16.mxu1 %v5168_v0  ;;  %1330 = vmatpush1.bf16.msra.mxu1 %v4096_v51 }
  0xc6   : > { %1331 = vmatprep.subr.bf16.mxu1 %v4101_v53 }
  0xc7   : > { %3861 = vmatpush3.bf16.msra.mxu0 %v4103_v56 }
  0xc9   : > { %739 = vmatmul.mubr.bf16.gmra.mxu0 %v4068_v29  ;;  %1332 = vmatpush1.bf16.msra.mxu1 %v4099_v54 }
  0xca   : > { %748 = vmatprep.mubr.bf16.mxu0 %v5168_v0 }
  0xd1   : > { %749 = vmatmul.mubr.bf16.gmra.mxu0 %v4069_v30 }
  0xd2   : > { %758 = vmatprep.mubr.bf16.mxu0 %v5168_v0 }
  0xd9   : > { %759 = vmatmul.mubr.bf16.gmra.mxu0 %v4070_v31 }
  0xda   : > { %768 = vmatprep.mubr.bf16.mxu0 %v5168_v0 }
  0xe1   : > { %769 = vmatmul.mubr.bf16.gmra.mxu0 %v4071_v32 }
 0x169   : > { %v700_v63 = vpop.f32.mrf.mxu0 }
 0x16a   : > { %v701_v1 = vadd.f32 %v700_v63, %v5434_v61 }
 0x16b   : > { %v702_v4 = vpop.f32.mrf.mxu0 }
 0x16c   : > { %v3581_v5 = vmul.f32 -1.442695, %v701_v1  ;;  %v3832_v7 = vpop.f32.mrf.mxu1  ;;  %v703_v21 = vadd.f32 %v702_v4, %v5449_v10 }
 0x16d   : > { %v704_v6 = vpop.f32.mrf.mxu0  ;;  %v822_v9 = vadd.f32 %v3832_v7, %v5441_v2 }
 0x16e   : > { %4184 = vpow2.f32 %v3581_v5  ;;  %v705_v8 = vadd.f32 %v704_v6, %v5434_v61  ;;  %v813_v12 = vpop.f32.mrf.mxu1 }
 0x16f   : > { %v706_v11 = vpop.f32.mrf.mxu0  ;;  %v3599_v14 = vmul.f32 -1.442695, %v822_v9  ;;  %v814_v15 = vadd.f32 %v813_v12, %v5441_v2 }
 0x170   : > { %v3582_v13 = vmul.f32 -1.442695, %v705_v8  ;;  %v3833_v17 = vpop.f32.mrf.mxu1  ;;  %v707_v30 = vadd.f32 %v706_v11, %v5449_v10 }
 0x171   : > { %v710_v16 = vpop.f32.mrf.mxu0  ;;  %v3597_v19 = vmul.f32 -1.442695, %v814_v15  ;;  %v825_v20 = vadd.f32 %v3833_v17, %v5441_v2 }
 0x172   : > { %4186 = vpow2.f32 %v3582_v13  ;;  %v711_v18 = vadd.f32 %v710_v16, %v5434_v61  ;;  %v816_v23 = vpop.f32.mrf.mxu1 }
 0x173   : > { %v712_v22 = vpop.f32.mrf.mxu0  ;;  %4188 = vpow2.f32 %v3599_v14  ;;  %v3600_v25 = vmul.f32 -1.442695, %v825_v20  ;;  %v817_v27 = vadd.f32 %v816_v23, %v5441_v2 }
 0x174   : > { %v3583_v24 = vmul.f32 -1.442695, %v711_v18  ;;  %4190 = vpow2.f32 %v3597_v19  ;;  %v3836_v29 = vpop.f32.mrf.mxu1  ;;  %v713_v35 = vadd.f32 %v712_v22, %v5449_v10 }
 0x175   : > { %v714_v26 = vpop.f32.mrf.mxu0  ;;  %v3598_v32 = vmul.f32 -1.442695, %v817_v27  ;;  %v838_v34 = vadd.f32 %v3836_v29, %v5441_v2 }
 0x176   : > { %4192 = vpow2.f32 %v3583_v24  ;;  %v715_v28 = vadd.f32 %v714_v26, %v5434_v61  ;;  %v829_v38 = vpop.f32.mrf.mxu1 }
 0x177   : > { %4194 = vtanh.f32 %v703_v21  ;;  %v716_v31 = vpop.f32.mrf.mxu0  ;;  %v3603_v43 = vmul.f32 -1.442695, %v838_v34  ;;  %v830_v44 = vadd.f32 %v829_v38, %v5441_v2 }
 0x178   : > { %v3584_v33 = vmul.f32 -1.442695, %v715_v28  ;;  %4196 = vpow2.f32 %v3600_v25  ;;  %v717_v45 = vadd.f32 %v716_v31, %v5449_v10  ;;  %v3837_v48 = vpop.f32.mrf.mxu1 }
 0x179   : > { %4198 = vpow2.f32 %v3598_v32  ;;  %v720_v36 = vpop.f32.mrf.mxu0  ;;  %v841_v51 = vadd.f32 %v3837_v48, %v5441_v2  ;;  %v3601_v54 = vmul.f32 -1.442695, %v830_v44 }
 0x17a   : > { %4200 = vpow2.f32 %v3584_v33  ;;  %v721_v37 = vadd.f32 %v720_v36, %v5434_v61  ;;  %v832_v29 = vpop.f32.mrf.mxu1 }
 0x17b   : > { %v4185_v39 = vpop.eup %4184  ;;  %4202 = vtanh.f32 %v707_v30  ;;  %v722_v40 = vpop.f32.mrf.mxu0  ;;  %v3604_v5 = vmul.f32 -1.442695, %v841_v51  ;;  %v833_v36 = vadd.f32 %v832_v29, %v5441_v2 }
 0x17c   : > { %v924_v41 = vadd.f32 1.0, %v4185_v39  ;;  %v3585_v42 = vmul.f32 -1.442695, %v721_v37  ;;  %4204 = vtanh.f32 %v713_v35  ;;  %v723_v56 = vadd.f32 %v722_v40, %v5449_v10 }
 0x17d   : > { %v724_v46 = vpop.f32.mrf.mxu0  ;;  %v3602_v48 = vmul.f32 -1.442695, %v833_v36 }
 0x17e   : > { %4206 = vrcp.f32 %v924_v41  ;;  %v725_v47 = vadd.f32 %v724_v46, %v5434_v61 }
 0x17f   : > { %v4187_v49 = vpop.eup %4186  ;;  %4208 = vpow2.f32 %v3585_v42  ;;  %v726_v50 = vpop.f32.mrf.mxu0 }
 0x180   : > { %v925_v52 = vadd.f32 1.0, %v4187_v49  ;;  %v3586_v53 = vmul.f32 -1.442695, %v725_v47  ;;  %4210 = vpow2.f32 %v3603_v43  ;;  %v4189_v55 = vpop.eup %4188  ;;  %v727_v19 = vadd.f32 %v726_v50, %v5449_v10  ;;  %v3840_v49 = vpop.f32.mrf.mxu1 }
 0x181   : > { %4212 = vtanh.f32 %v717_v45  ;;  %v730_v57 = vpop.f32.mrf.mxu0  ;;  %v4191_v60 = vpop.eup %4190  ;;  %v1038_v8 = vadd.f32 1.0, %v4189_v55 }
 0x182   : > { %4214 = vrcp.f32 %v925_v52  ;;  %v731_v1 = vadd.f32 %v730_v57, %v5434_v61  ;;  %v1036_v11 = vadd.f32 1.0, %v4191_v60 }
 0x183   : > { %v4193_v63 = vpop.eup %4192  ;;  %4216 = vpow2.f32 %v3586_v53  ;;  %v732_v4 = vpop.f32.mrf.mxu0 }
 0x184   : > { %v4195_v6 = vpop.eup %4194  ;;  %v926_v7 = vadd.f32 1.0, %v4193_v63  ;;  %4218 = vpow2.f32 %v3601_v54  ;;  %v3587_v15 = vmul.f32 -1.442695, %v731_v1  ;;  %v733_v44 = vadd.f32 %v732_v4, %v5449_v10  ;;  %v845_v4 = vpop.f32.mrf.mxu1 }
 0x185   : > { %v4197_v9 = vpop.eup %4196  ;;  %4220 = vtanh.f32 %v723_v56  ;;  %v734_v12 = vpop.f32.mrf.mxu0 }
 0x186   : > { %v4199_v13 = vpop.eup %4198  ;;  %4222 = vrcp.f32 %v926_v7  ;;  %v1039_v20 = vadd.f32 1.0, %v4197_v9  ;;  %v735_v21 = vadd.f32 %v734_v12, %v5434_v61 }
 0x187   : > { %v4201_v14 = vpop.eup %4200  ;;  %4224 = vpow2.f32 %v3604_v5  ;;  %v5467_v16 = vpop.f32.mrf.mxu0  ;;  %v1037_v24 = vadd.f32 1.0, %v4199_v13 }
 0x188   : > { %v4203_v17 = vpop.eup %4202  ;;  %4226 = vrcp.f32 %v1038_v8  ;;  %v927_v18 = vadd.f32 1.0, %v4201_v14  ;;  %v3588_v32 = vmul.f32 -1.442695, %v735_v21  ;;  %v846_v21 = vadd.f32 %v845_v4, %v5441_v2 }
 0x189   : > { %4228 = vrcp.f32 %v1036_v11  ;;  %v740_v22 = vpop.f32.mrf.mxu0  ;;  %v4205_v23 = vpop.eup %4204 }
 0x18a   : > { %4230 = vrcp.f32 %v927_v18  ;;  %v741_v41 = vadd.f32 %v740_v22, %v5434_v61  ;;  %v737_v18 = vadd.f32 %v5467_v16, %v5449_v10  ;;  %v3605_v16 = vmul.f32 -1.442695, %v846_v21 }
 0x18b   : > { %v4207_v25 = vpop.eup %4206  ;;  %4232 = vpow2.f32 %v3587_v15  ;;  %v5471_v26 = vpop.f32.mrf.mxu0  ;;  %v854_v15 = vadd.f32 %v3840_v49, %v5441_v2 }
 0x18c   : > { %v4209_v27 = vpop.eup %4208  ;;  %v1084_v28 = vmul.f32 %v4207_v25, %v4195_v6  ;;  %4234 = vtanh.f32 %v727_v19  ;;  %v3589_v53 = vmul.f32 -1.442695, %v741_v41  ;;  %v3841_v19 = vpop.f32.mrf.mxu1 }
 0x18d   : > { %v4211_v30 = vpop.eup %4210  ;;  %4236 = vrcp.f32 %v1039_v20  ;;  %v928_v31 = vadd.f32 1.0, %v4209_v27  ;;  %v744_v33 = vpop.f32.mrf.mxu0 }
 0x18e   : > { %v4213_v34 = vpop.eup %4212  ;;  %4238 = vrcp.f32 %v1037_v24  ;;  %v1042_v40 = vadd.f32 1.0, %v4211_v30  ;;  %v745_v54 = vadd.f32 %v744_v33, %v5434_v61 }
 0x18f   : > { %v4215_v35 = vpop.eup %4214  ;;  %4240 = vrcp.f32 %v928_v31  ;;  %v5474_v37 = vpop.f32.mrf.mxu0 }
 0x190   : > { %v4217_v38 = vpop.eup %4216  ;;  %4242 = vtanh.f32 %v1084_v28  ;;  %v1085_v39 = vmul.f32 %v4215_v35, %v4203_v17  ;;  %v3590_v7 = vmul.f32 -1.442695, %v745_v54  ;;  %v3607_v28 = vmul.f32 -1.442695, %v854_v15  ;;  %v848_v31 = vpop.f32.mrf.mxu1 }
 0x191   : > { %v4219_v42 = vpop.eup %4218  ;;  %v929_v43 = vadd.f32 1.0, %v4217_v38  ;;  %4244 = vpow2.f32 %v3588_v32  ;;  %v750_v45 = vpop.f32.mrf.mxu0 }
 0x192   : > { %v4221_v46 = vpop.eup %4220  ;;  %4246 = vtanh.f32 %v1085_v39  ;;  %v1040_v56 = vadd.f32 1.0, %v4219_v42  ;;  %v751_v63 = vadd.f32 %v750_v45, %v5434_v61  ;;  %v743_v42 = vadd.f32 %v5471_v26, %v5449_v10 }
 0x193   : > { %v4223_v47 = vpop.eup %4222  ;;  %4248 = vrcp.f32 %v929_v43  ;;  %v5478_v50 = vpop.f32.mrf.mxu0  ;;  %v849_v43 = vadd.f32 %v848_v31, %v5441_v2 }
 0x194   : > { %v4225_v51 = vpop.eup %4224  ;;  %v1086_v52 = vmul.f32 %v4223_v47, %v4205_v23  ;;  %4250 = vrcp.f32 %v1042_v40  ;;  %v3591_v14 = vmul.f32 -1.442695, %v751_v63  ;;  %v857_v40 = vadd.f32 %v3841_v19, %v5441_v2  ;;  %v3844_v19 = vpop.f32.mrf.mxu1 }
 0x195   : > { %v5481_v55 = vpop.eup %4226  ;;  %4252 = vtanh.f32 %v733_v44  ;;  %v754_v57 = vpop.f32.mrf.mxu0  ;;  %v1043_v12 = vadd.f32 1.0, %v4225_v51  ;;  %v3606_v54 = vmul.f32 -1.442695, %v849_v43 }
 0x196   : > { %v4229_v60 = vpop.eup %4228  ;;  %4254 = vtanh.f32 %v1086_v52  ;;  %v755_v25 = vadd.f32 %v754_v57, %v5434_v61  ;;  %v3608_v51 = vmul.f32 -1.442695, %v857_v40  ;;  %v747_v57 = vadd.f32 %v5474_v37, %v5449_v10 }
 0x197   : > { %v4231_v1 = vpop.eup %4230  ;;  %4256 = vpow2.f32 %v3602_v48  ;;  %v5484_v8 = vpop.f32.mrf.mxu0 }
 0x198   : > { %v4233_v5 = vpop.eup %4232  ;;  %v1087_v6 = vmul.f32 %v4231_v1, %v4213_v34  ;;  %4258 = vpow2.f32 %v3589_v53  ;;  %v3592_v39 = vmul.f32 -1.442695, %v755_v25 }
 0x199   : > { %v4235_v9 = vpop.eup %4234  ;;  %v930_v11 = vadd.f32 1.0, %v4233_v5  ;;  %4260 = vrcp.f32 %v1040_v56  ;;  %v760_v22 = vpop.f32.mrf.mxu0 }
 0x19a   : > { %v5486_v13 = vpop.eup %4236  ;;  %4262 = vtanh.f32 %v1087_v6  ;;  %v761_v52 = vadd.f32 %v760_v22, %v5434_v61 }
 0x19b   : > { %v4239_v17 = vpop.eup %4238  ;;  %4264 = vrcp.f32 %v930_v11  ;;  %v5493_v33 = vpop.f32.mrf.mxu0 }
 0x19c   : > { %v4241_v20 = vpop.eup %4240  ;;  %4266 = vpow2.f32 %v3590_v7  ;;  %v3593_v6 = vmul.f32 -1.442695, %v761_v52 }
 0x19d   : > { %v4243_v23 = vpop.eup %4242  ;;  %v1088_v24 = vmul.f32 %v4241_v20, %v4221_v46  ;;  %4268 = vrcp.f32 %v1043_v12  ;;  %v764_v47 = vpop.f32.mrf.mxu0 }
 0x19e   : > { %v4245_v27 = vpop.eup %4244  ;;  %4270 = vpow2.f32 %v3591_v14  ;;  %v1116_v34 = vmul.f32 %v4243_v23, %v4229_v60  ;;  %v765_v7 = vadd.f32 %v764_v47, %v5434_v61 }
 0x19f   : > { %v4247_v29 = vpop.eup %4246  ;;  %v931_v30 = vadd.f32 1.0, %v4245_v27  ;;  %4272 = vtanh.f32 %v737_v18  ;;  %v766_v63 = vpop.f32.mrf.mxu0  ;;  %v763_v27 = vadd.f32 %v5493_v33, %v5449_v10 }
 0x1a0   : > { %v4249_v32 = vpop.eup %4248  ;;  %4274 = vtanh.f32 %v1088_v24  ;;  %v1117_v35 = vmul.f32 %v4247_v29, %v4239_v17  ;;  %v3594_v21 = vmul.f32 -1.442695, %v765_v7  ;;  %v757_v24 = vadd.f32 %v5484_v8, %v5449_v10 }
 0x1a1   : > { %v5495_v36 = vpop.eup %4250  ;;  %v1089_v38 = vmul.f32 %v4249_v32, %v4235_v9  ;;  %4276 = vrcp.f32 %v931_v30  ;;  %v861_v30 = vpop.f32.mrf.mxu1 }
 0x1a2   : > { %v4253_v41 = vpop.eup %4252  ;;  %4278 = vpow2.f32 %v3607_v28  ;;  %v1132_v44 = vpack.c.bf16 %v1117_v35, %v1116_v34  ;;  %v862_v47 = vadd.f32 %v861_v30, %v5441_v2 }
 0x1a3   : > { %v4255_v45 = vpop.eup %4254  ;;  %4280 = vtanh.f32 %v1089_v38  ;;  %v767_v38 = vadd.f32 %v766_v63, %v5449_v10 }
 0x1a4   : > { %v4257_v46 = vpop.eup %4256  ;;  %4282 = vpow2.f32 %v3605_v16  ;;  %1350 = vmatmul.mubr.bf16.vlgmr.msra.gmra.mxu1 %v1132_v44  ;;  %3862 = vmatprep.mubr.bf16.mxu0 %v1132_v44  ;;  %v1118_v1 = vmul.f32 %v4255_v45, %v5481_v55  ;;  %v753_v55 = vadd.f32 %v5478_v50, %v5449_v10 }
 0x1a5   : > { %v4259_v48 = vpop.eup %4258  ;;  %v1041_v49 = vadd.f32 1.0, %v4257_v46  ;;  %4284 = vpow2.f32 %v3592_v39  ;;  %1359 = vmatprep.mubr.bf16.mxu1 %v5168_v0 }
 0x1a6   : > { %v5503_v26 = vpop.eup %4260  ;;  %v932_v53 = vadd.f32 1.0, %v4259_v48  ;;  %4286 = vtanh.f32 %v743_v42 }
 0x1a7   : > { %v4263_v56 = vpop.eup %4262  ;;  %4288 = vrcp.f32 %v1041_v49 }
 0x1a8   : > { %v4265_v60 = vpop.eup %4264  ;;  %4290 = vrcp.f32 %v932_v53  ;;  %v1119_v4 = vmul.f32 %v4263_v56, %v5486_v13  ;;  %v770_v13 = vpop.f32.mrf.mxu0 }
 0x1a9   : > { %v4267_v5 = vpop.eup %4266  ;;  %4292 = vpow2.f32 %v3608_v51  ;;  %v1090_v11 = vmul.f32 %v4265_v60, %v4253_v41  ;;  %v771_v25 = vadd.f32 %v770_v13, %v5434_v61  ;;  %v3845_v41 = vpop.f32.mrf.mxu1 }
 0x1aa   : > { %v5510_v9 = vpop.eup %4268  ;;  %v933_v12 = vadd.f32 1.0, %v4267_v5  ;;  %4294 = vpow2.f32 %v3606_v54  ;;  %v1133_v14 = vpack.c.bf16 %v1119_v4, %v1118_v1  ;;  %v5520_v29 = vpop.f32.mrf.mxu0  ;;  %v870_v54 = vadd.f32 %v3844_v19, %v5441_v2 }
 0x1ab   : > { %v4271_v15 = vpop.eup %4270  ;;  %4296 = vtanh.f32 %v747_v57  ;;  %v3595_v35 = vmul.f32 -1.442695, %v771_v25  ;;  %v864_v56 = vpop.f32.mrf.mxu1  ;;  %v3609_v4 = vmul.f32 -1.442695, %v862_v47  ;;  %v873_v25 = vadd.f32 %v3845_v41, %v5441_v2 }
 0x1ac   : > { %v4273_v37 = vpop.eup %4272  ;;  %4298 = vrcp.f32 %v933_v12  ;;  %v934_v17 = vadd.f32 1.0, %v4271_v15  ;;  %1360 = vmatmul.mubr.bf16.gmra.mxu1 %v1133_v14  ;;  %3863 = vmatmul.mubr.bf16.vlgmr.msra.gmra.mxu0 %v1133_v14  ;;  %v774_v33 = vpop.f32.mrf.mxu0 }
 0x1ad   : > { %v4275_v18 = vpop.eup %4274  ;;  %4300 = vpow2.f32 %v3593_v6  ;;  %1369 = vmatprep.mubr.bf16.mxu1 %v5168_v0  ;;  %v775_v52 = vadd.f32 %v774_v33, %v5434_v61  ;;  %v865_v6 = vadd.f32 %v864_v56, %v5441_v2  ;;  %v3612_v30 = vmul.f32 -1.442695, %v873_v25  ;;  %v4110_v25 = vld [vmem:[#allocation10 + $0x90] ss:$12 sps:$4 sm:$0xff]  }
 0x1ae   : > { %v4277_v20 = vpop.eup %4276  ;;  %4302 = vtanh.f32 %v1090_v11  ;;  %v1120_v42 = vmul.f32 %v4275_v18, %v5503_v26  ;;  %v3611_v11 = vmul.f32 -1.442695, %v870_v54 }
 0x1af   : > { %v4279_v22 = vpop.eup %4278  ;;  %v1091_v23 = vmul.f32 %v4277_v20, %v4273_v37  ;;  %4304 = vrcp.f32 %v934_v17  ;;  %v3596_v61 = vmul.f32 -1.442695, %v775_v52  ;;  %v3610_v18 = vmul.f32 -1.442695, %v865_v6 }
 0x1b0   : > { %v4281_v50 = vpop.eup %4280  ;;  %4306 = vtanh.f32 %v753_v55  ;;  %v1046_v32 = vadd.f32 1.0, %v4279_v22  ;;  %v773_v22 = vadd.f32 %v5520_v29, %v5449_v10  ;;  %v776_v29 = vpop.f32.mrf.mxu0 }
 0x1b1   : > { %v4283_v28 = vpop.eup %4282  ;;  %4308 = vtanh.f32 %v1091_v23  ;;  %v777_v2 = vadd.f32 %v776_v29, %v5449_v10  ;;  %v4121_v29 = vld [vmem:[#allocation10 + $0x48] ss:$12 sps:$4 sm:$0xff]  }
 0x1b2   : > { %v4285_v31 = vpop.eup %4284  ;;  %4310 = vpow2.f32 %v3594_v21  ;;  %v1044_v40 = vadd.f32 1.0, %v4283_v28 }
 0x1b3   : > { %v4287_v16 = vpop.eup %4286  ;;  %v935_v34 = vadd.f32 1.0, %v4285_v31  ;;  %4312 = vtanh.f32 %v757_v24 }
 0x1b4   : > { %v4289_v8 = vpop.eup %4288  ;;  %4314 = vtanh.f32 %v763_v27 }
 0x1b5   : > { %v4291_v39 = vpop.eup %4290  ;;  %4316 = vrcp.f32 %v935_v34  ;;  %v1121_v43 = vmul.f32 %v4289_v8, %v4281_v50 }
 0x1b6   : > { %v4293_v44 = vpop.eup %4292  ;;  %v1092_v45 = vmul.f32 %v4291_v39, %v4287_v16  ;;  %4318 = vrcp.f32 %v1046_v32 }
 0x1b7   : > { %v4295_v46 = vpop.eup %4294  ;;  %4320 = vpow2.f32 %v3595_v35  ;;  %v1134_v48 = vpack.c.bf16 %v1121_v43, %v1120_v42  ;;  %v1047_v60 = vadd.f32 1.0, %v4293_v44 }
 0x1b8   : > { %v4297_v49 = vpop.eup %4296  ;;  %v1045_v51 = vadd.f32 1.0, %v4295_v46  ;;  %4322 = vtanh.f32 %v767_v38 }
 0x1b9   : > { %v4299_v53 = vpop.eup %4298  ;;  %4324 = vrcp.f32 %v1044_v40  ;;  %1370 = vmatmul.mubr.bf16.gmra.mxu1 %v1134_v48  ;;  %3866 = vmatprep.mubr.bf16.mxu0 %v1134_v48 }
 0x1ba   : > { %v4301_v26 = vpop.eup %4300  ;;  %4326 = vtanh.f32 %v1092_v45  ;;  %v1093_v57 = vmul.f32 %v4299_v53, %v4297_v49  ;;  %1379 = vmatprep.mubr.bf16.mxu1 %v5168_v0 }
 0x1bb   : > { %v4303_v63 = vpop.eup %4302  ;;  %4328 = vrcp.f32 %v1045_v51  ;;  %v936_v1 = vadd.f32 1.0, %v4301_v26 }
 0x1bc   : > { %v4305_v5 = vpop.eup %4304  ;;  %4330 = vtanh.f32 %v1093_v57  ;;  %v1122_v37 = vmul.f32 %v4303_v63, %v5495_v36 }
 0x1bd   : > { %v4307_v7 = vpop.eup %4306  ;;  %4332 = vrcp.f32 %v936_v1 }
 0x1be   : > { %v4309_v12 = vpop.eup %4308  ;;  %4334 = vrcp.f32 %v1047_v60  ;;  %v1094_v15 = vmul.f32 %v4307_v7, %v4305_v5 }
 0x1bf   : > { %v4311_v14 = vpop.eup %4310  ;;  %4336 = vpow2.f32 %v3609_v4  ;;  %v1123_v17 = vmul.f32 %v4309_v12, %v5510_v9 }
 0x1c0   : > { %v4313_v55 = vpop.eup %4312  ;;  %v937_v13 = vadd.f32 1.0, %v4311_v14  ;;  %4338 = vpow2.f32 %v3596_v61 }
 0x1c1   : > { %v4315_v19 = vpop.eup %4314  ;;  %4340 = vpow2.f32 %v3611_v11  ;;  %v1135_v20 = vpack.c.bf16 %v1123_v17, %v1122_v37 }
 0x1c2   : > { %v4317_v21 = vpop.eup %4316  ;;  %4342 = vrcp.f32 %v937_v13 }
 0x1c3   : > { %v4319_v23 = vpop.eup %4318  ;;  %4344 = vtanh.f32 %v1094_v15  ;;  %v1095_v24 = vmul.f32 %v4317_v21, %v4313_v55  ;;  %1380 = vmatmul.mubr.bf16.gmra.mxu1 %v1135_v20  ;;  %3867 = vmatmul.mubr.bf16.gmra.mxu0 %v1135_v20  ;;  %v4104_v20 = vld [vmem:[#allocation10 + $0xb0] ss:$12 sps:$4 sm:$0xff]   ;;  %v4105_v21 = vld [vmem:[#allocation10 + $0x98] ss:$12 sps:$4 sm:$0xff]  }
 0x1c4   : > { %v4321_v36 = vpop.eup %4320  ;;  %4346 = vpow2.f32 %v3610_v18  ;;  %1389 = vmatprep.mubr.bf16.mxu1 %v5168_v0  ;;  %3878 = vmatprep.subr.bf16.mxu1 %v4104_v20 }
 0x1c5   : > { %v4323_v9 = vpop.eup %4322  ;;  %4348 = vtanh.f32 %v1095_v24  ;;  %v938_v50 = vadd.f32 1.0, %v4321_v36  ;;  %3879 = vmatpush3.bf16.msra.mxu1 %v4104_v20  ;;  %v4112_v24 = vld [vmem:[#allocation10 + $0x94] ss:$12 sps:$4 sm:$0xff]   ;;  %v4116_v36 = vld [vmem:[#allocation10 + $0x7c] ss:$12 sps:$4 sm:$0xff]  }
 0x1c6   : > { %v4325_v27 = vpop.eup %4324  ;;  %4350 = vtanh.f32 %v773_v22  ;;  %v4109_v22 = vld [vmem:[#allocation10 + $0xac] ss:$12 sps:$4 sm:$0xff]   ;;  %3880 = vmatprep.subr.bf16.mxu1 %v4105_v21 }
 0x1c7   : > { %v4327_v28 = vpop.eup %4326  ;;  %4352 = vrcp.f32 %v938_v50  ;;  %1968 = vmatprep.subr.bf16.mxu0 %v4109_v22  ;;  %v4119_v50 = vld [vmem:[#allocation10 + $0x64] ss:$12 sps:$4 sm:$0xff]  }
 0x1c8   : > { %v4329_v31 = vpop.eup %4328  ;;  %v1124_v34 = vmul.f32 %v4327_v28, %v4325_v27  ;;  %4354 = vpow2.f32 %v3612_v30  ;;  %v4106_v27 = vld [vmem:[#allocation10 + $0x80] ss:$12 sps:$4 sm:$0xff]  }
 0x1c9   : > { %v4331_v32 = vpop.eup %4330  ;;  %3881 = vmatpush3.bf16.msra.mxu1 %v4105_v21  ;;  %v4117_v28 = vld [vmem:[#allocation10 + $0x60] ss:$12 sps:$4 sm:$0xff]  }
 0x1ca   : > { %v4333_v16 = vpop.eup %4332  ;;  %v1125_v35 = vmul.f32 %v4331_v32, %v4329_v31  ;;  %3882 = vmatprep.subr.bf16.mxu1 %v4106_v27  ;;  %v4123_v30 = vld [vmem:[#allocation10 + $0x4c] ss:$12 sps:$4 sm:$0xff]   ;;  %v4113_v31 = vld [vmem:[#allocation10 + $0x68] ss:$12 sps:$4 sm:$0xff]  }
 0x1cb   : > { %v4335_v8 = vpop.eup %4334  ;;  %v1096_v38 = vmul.f32 %v4333_v16, %v4315_v19  ;;  %v4126_v32 = vld [vmem:[#allocation10 + $0x34] ss:$12 sps:$4 sm:$0xff]   ;;  %v4124_v16 = vld [vmem:[#allocation10 + $0x30] ss:$12 sps:$4 sm:$0xff]  }
 0x1cc   : > { %v4337_v39 = vpop.eup %4336  ;;  %v1136_v40 = vpack.c.bf16 %v1125_v35, %v1124_v34  ;;  %v4130_v34 = vld [vmem:[#allocation10 + $0x1c] ss:$12 sps:$4 sm:$0xff]   ;;  %v4128_v35 = vld [vmem:[#allocation10 + $0x18] ss:$12 sps:$4 sm:$0xff]  }
 0x1cd   : > { %v4339_v33 = vpop.eup %4338  ;;  %4356 = vtanh.f32 %v1096_v38  ;;  %v1048_v41 = vadd.f32 1.0, %v4337_v39  ;;  %3883 = vmatpush3.bf16.msra.mxu1 %v4106_v27  ;;  %v4133_v38 = vld [vmem:[#allocation10 + $0x4] ss:$12 sps:$4 sm:$0xff]   ;;  %v4131_v39 = vld [vmem:[#allocation10] ss:$12 sps:$4 sm:$0xff]  }
 0x1ce   : > { %v4341_v42 = vpop.eup %4340  ;;  %v939_v43 = vadd.f32 1.0, %v4339_v33  ;;  %4358 = vtanh.f32 %v777_v2  ;;  %1390 = vmatmul.mubr.bf16.gmra.mxu1 %v1136_v40  ;;  %3870 = vmatprep.mubr.bf16.mxu0 %v1136_v40  ;;  %v4120_v2 = vld [vmem:[#allocation10 + $0x50] ss:$12 sps:$4 sm:$0xff]   ;;  %v4134_v40 = vld [vmem:[#allocation10 + $0x20] ss:$12 sps:$4 sm:$0xff]  }
 0x1cf   : > { %v4343_v44 = vpop.eup %4342  ;;  %4360 = vrcp.f32 %v1048_v41  ;;  %1399 = vmatprep.mubr.bf16.mxu1 %v5168_v0  ;;  %v1050_v48 = vadd.f32 1.0, %v4341_v42  ;;  %3884 = vmatprep.subr.bf16.mxu1 %v4113_v31  ;;  %v4135_v33 = vld [vmem:[#allocation10 + $0x8] ss:$12 sps:$4 sm:$0xff]   ;;  %v1172_v41 = vld [vmem:[#allocation8] sm:$0x7] }
 0x1d0   : > { %v4345_v10 = vpop.eup %4344  ;;  %v1097_v45 = vmul.f32 %v4343_v44, %v4323_v9  ;;  %4362 = vrcp.f32 %v939_v43  ;;  %v4114_v9 = vld [vmem:[#allocation10 + $0x78] ss:$12 sps:$4 sm:$0xff]   ;;  %v5541_v42 = vrot.slane %v1172_v41, %v5428_v59 }
 0x1d1   : > { %v4347_v46 = vpop.eup %4346  ;;  %v1126_v52 = vmul.f32 %v4345_v10, %v4319_v23  ;;  %v4107_v23 = vld [vmem:[#allocation10 + $0xa8] ss:$12 sps:$4 sm:$0xff]   ;;  %3885 = vmatpush3.bf16.msra.mxu1 %v4113_v31 }
 0x1d2   : > { %v4349_v47 = vpop.eup %4348  ;;  %4364 = vtanh.f32 %v1097_v45  ;;  %v1049_v49 = vadd.f32 1.0, %v4347_v46  ;;  %1969 = vmatpush1.bf16.msra.mxu0 %v4107_v23  ;;  %3886 = vmatprep.subr.bf16.mxu1 %v4120_v2 }
 0x1d3   : > { %v4351_v51 = vpop.eup %4350  ;;  %v1127_v53 = vmul.f32 %v4349_v47, %v4335_v8  ;;  %1970 = vmatprep.subr.bf16.mxu0 %v4112_v24  ;;  %v4127_v8 = vld [vmem:[#allocation10 + $0x38] ss:$12 sps:$4 sm:$0xff]  }
 0x1d4   : > { %v4353_v54 = vpop.eup %4352  ;;  %4366 = vrcp.f32 %v1049_v49 }
 0x1d5   : > { %v1098_v56 = vmul.f32 %v4353_v54, %v4351_v51  ;;  %v1137_v26 = vpack.c.bf16 %v1127_v53, %v1126_v52  ;;  %4368 = vrcp.f32 %v1050_v48  ;;  %v4355_v57 = vpop.eup %4354  ;;  %3887 = vmatpush3.bf16.msra.mxu1 %v4120_v2  ;;  %v5546_v48 = vrot.slane %v1172_v41, %v5437_v62 }
 0x1d6   : > { %v1051_v1 = vadd.f32 1.0, %v4355_v57  ;;  %1971 = vmatpush1.bf16.msra.mxu0 %v4110_v25  ;;  %3888 = vmatprep.subr.bf16.mxu1 %v4127_v8 }
 0x1d7   : > { %4370 = vtanh.f32 %v1098_v56  ;;  %1400 = vmatmul.mubr.bf16.gmra.mxu1 %v1137_v26  ;;  %3871 = vmatmul.mubr.bf16.gmra.mxu0 %v1137_v26 }
 0x1d8   : > { %1409 = vmatprep.mubr.bf16.mxu1 %v5168_v0  ;;  %4372 = vrcp.f32 %v1051_v1  ;;  %1972 = vmatprep.subr.bf16.mxu0 %v4116_v36 }
 0x1d9   : > { %3889 = vmatpush3.bf16.msra.mxu1 %v4127_v8 }
 0x1da   : > { %v4357_v60 = vpop.eup %4356  ;;  %1973 = vmatpush1.bf16.msra.mxu0 %v4114_v9  ;;  %3890 = vmatprep.subr.bf16.mxu1 %v4134_v40 }
 0x1db   : > { %v4359_v63 = vpop.eup %4358  ;;  %1974 = vmatprep.subr.bf16.mxu0 %v4119_v50 }
 0x1dc   : > { %v4361_v4 = vpop.eup %4360 }
 0x1dd   : > { %v4363_v5 = vpop.eup %4362  ;;  %v1128_v61 = vmul.f32 %v4361_v4, %v4357_v60  ;;  %3891 = vmatpush3.bf16.msra.mxu1 %v4134_v40  ;;  %v5551_v60 = vrot.slane %v1172_v41, %v5444_v3 }
 0x1de   : > { %v1099_v6 = vmul.f32 %v4363_v5, %v4359_v63  ;;  %1975 = vmatpush1.bf16.msra.mxu0 %v4117_v28  ;;  %3892 = vmatprep.subr.bf16.mxu1 %v4135_v33 }
 0x1df   : > { %v4365_v7 = vpop.eup %4364  ;;  %1976 = vmatprep.subr.bf16.mxu0 %v4123_v30 }
 0x1e0   : > { %4374 = vtanh.f32 %v1099_v6 }
 0x1e1   : > { %v4367_v11 = vpop.eup %4366  ;;  %3893 = vmatpush3.bf16.msra.mxu1 %v4135_v33 }
 0x1e2   : > { %v1129_v12 = vmul.f32 %v4367_v11, %v4365_v7  ;;  %v4369_v14 = vpop.eup %4368  ;;  %1977 = vmatpush1.bf16.msra.mxu0 %v4121_v29 }
 0x1e3   : > { %1978 = vmatprep.subr.bf16.mxu0 %v4126_v32 }
 0x1e4   : > { %v4371_v15 = vpop.eup %4370  ;;  %v1138_v37 = vpack.c.bf16 %v1129_v12, %v1128_v61 }
 0x1e5   : > { %v1130_v17 = vmul.f32 %v4371_v15, %v4369_v14  ;;  %v4373_v55 = vpop.eup %4372 }
 0x1e6   : > { %1410 = vmatmul.mubr.bf16.gmra.mxu1 %v1138_v37  ;;  %3874 = vmatprep.mubr.bf16.mxu0 %v1138_v37 }
 0x1e7   : > { %1419 = vmatprep.mubr.bf16.mxu1 %v5168_v0  ;;  %1979 = vmatpush1.bf16.msra.mxu0 %v4124_v16 }
 0x1e8   : > { %1980 = vmatprep.subr.bf16.mxu0 %v4130_v34 }
 0x1eb   : > { %1981 = vmatpush1.bf16.msra.mxu0 %v4128_v35 }
 0x1ec   : > { %1982 = vmatprep.subr.bf16.mxu0 %v4133_v38 }
 0x1ed   : > { %v4375_v13 = vpop.eup %4374 }
 0x1ee   : > { %v1131_v18 = vmul.f32 %v4375_v13, %v4373_v55 }
 0x1ef   : > { %1983 = vmatpush1.bf16.msra.mxu0 %v4131_v39 }
 0x1f0   : > { %v1139_v19 = vpack.c.bf16 %v1131_v18, %v1130_v17 }
 0x1f2   : > { %1420 = vmatmul.mubr.bf16.gmra.mxu1 %v1139_v19  ;;  %3875 = vmatmul.mubr.bf16.gmra.mxu0 %v1139_v19 }
 0x1f3   : > { %2000 = vmatprep.mubr.bf16.mxu0 %v5168_v0 }
 0x264   : > { %v1351_v43 = vpop.f32.mrf.mxu1 }
 0x265   : > { %v1352_v44 = vadd.f32 %v1351_v43, %v5541_v42 }
 0x266   : > { %v1353_v10 = vpop.f32.mrf.mxu1 }
 0x267   : > { %v3637_v45 = vmul.f32 -1.442695, %v1352_v44  ;;  %v1354_v14 = vadd.f32 %v1353_v10, %v5551_v60 }
 0x268   : > { %v1355_v46 = vpop.f32.mrf.mxu1 }
 0x269   : > { %4376 = vpow2.f32 %v3637_v45  ;;  %v1356_v47 = vadd.f32 %v1355_v46, %v5541_v42 }
 0x26a   : > { %v1357_v49 = vpop.f32.mrf.mxu1 }
 0x26b   : > { %v3638_v51 = vmul.f32 -1.442695, %v1356_v47  ;;  %v1358_v20 = vadd.f32 %v1357_v49, %v5551_v60 }
 0x26c   : > { %v1361_v52 = vpop.f32.mrf.mxu1  ;;  %v3864_v53 = vpop.f32.mrf.mxu0 }
 0x26d   : > { %4378 = vpow2.f32 %v3638_v51  ;;  %v1362_v54 = vadd.f32 %v1361_v52, %v5541_v42  ;;  %v1473_v56 = vadd.f32 %v3864_v53, %v5546_v48 }
 0x26e   : > { %v1363_v26 = vpop.f32.mrf.mxu1  ;;  %v1464_v57 = vpop.f32.mrf.mxu0 }
 0x26f   : > { %v3639_v63 = vmul.f32 -1.442695, %v1362_v54  ;;  %v3655_v1 = vmul.f32 -1.442695, %v1473_v56  ;;  %v1465_v4 = vadd.f32 %v1464_v57, %v5546_v48  ;;  %v1364_v36 = vadd.f32 %v1363_v26, %v5551_v60 }
 0x270   : > { %v1365_v5 = vpop.f32.mrf.mxu1  ;;  %v3865_v61 = vpop.f32.mrf.mxu0 }
 0x271   : > { %4380 = vpow2.f32 %v3639_v63  ;;  %v3653_v6 = vmul.f32 -1.442695, %v1465_v4  ;;  %v1366_v7 = vadd.f32 %v1365_v5, %v5541_v42  ;;  %v1476_v11 = vadd.f32 %v3865_v61, %v5546_v48 }
 0x272   : > { %4382 = vpow2.f32 %v3655_v1  ;;  %v1467_v12 = vpop.f32.mrf.mxu0  ;;  %v1367_v55 = vpop.f32.mrf.mxu1 }
 0x273   : > { %v3640_v15 = vmul.f32 -1.442695, %v1366_v7  ;;  %v3656_v37 = vmul.f32 -1.442695, %v1476_v11  ;;  %4384 = vpow2.f32 %v3653_v6  ;;  %v1468_v17 = vadd.f32 %v1467_v12, %v5546_v48 }
 0x274   : > { %v1368_v28 = vadd.f32 %v1367_v55, %v5551_v60 }
 0x275   : > { %4386 = vpow2.f32 %v3640_v15  ;;  %v3654_v18 = vmul.f32 -1.442695, %v1468_v17 }
 0x276   : > { %v4377_v13 = vpop.eup %4376  ;;  %4388 = vpow2.f32 %v3656_v37 }
 0x277   : > { %v1575_v19 = vadd.f32 1.0, %v4377_v13  ;;  %4390 = vtanh.f32 %v1354_v14 }
 0x278   : > { %4392 = vpow2.f32 %v3654_v18 }
 0x279   : > { %4394 = vrcp.f32 %v1575_v19  ;;  %v1371_v21 = vpop.f32.mrf.mxu1 }
 0x27a   : > { %v4379_v22 = vpop.eup %4378  ;;  %v1372_v23 = vadd.f32 %v1371_v21, %v5541_v42  ;;  %4396 = vtanh.f32 %v1358_v20 }
 0x27b   : > { %v1576_v24 = vadd.f32 1.0, %v4379_v22  ;;  %v1373_v25 = vpop.f32.mrf.mxu1 }
 0x27c   : > { %v3641_v9 = vmul.f32 -1.442695, %v1372_v23  ;;  %v1374_v16 = vadd.f32 %v1373_v25, %v5551_v60 }
 0x27d   : > { %4398 = vrcp.f32 %v1576_v24  ;;  %v1375_v50 = vpop.f32.mrf.mxu1 }
 0x27e   : > { %v4381_v27 = vpop.eup %4380  ;;  %4400 = vpow2.f32 %v3641_v9  ;;  %v1376_v30 = vadd.f32 %v1375_v50, %v5541_v42 }
 0x27f   : > { %v4383_v29 = vpop.eup %4382  ;;  %v1577_v31 = vadd.f32 1.0, %v4381_v27  ;;  %v1377_v32 = vpop.f32.mrf.mxu1  ;;  %4402 = vtanh.f32 %v1364_v36 }
 0x280   : > { %v3642_v2 = vmul.f32 -1.442695, %v1376_v30  ;;  %v4385_v34 = vpop.eup %4384  ;;  %v1689_v8 = vadd.f32 1.0, %v4383_v29  ;;  %v1378_v55 = vadd.f32 %v1377_v32, %v5551_v60 }
 0x281   : > { %4404 = vrcp.f32 %v1577_v31  ;;  %v1687_v39 = vadd.f32 1.0, %v4385_v34 }
 0x282   : > { %v4387_v35 = vpop.eup %4386  ;;  %4406 = vtanh.f32 %v1368_v28 }
 0x283   : > { %v4389_v38 = vpop.eup %4388  ;;  %v1578_v40 = vadd.f32 1.0, %v4387_v35  ;;  %4408 = vpow2.f32 %v3642_v2  ;;  %v1381_v33 = vpop.f32.mrf.mxu1 }
 0x284   : > { %v3868_v41 = vpop.f32.mrf.mxu0  ;;  %v4391_v43 = vpop.eup %4390  ;;  %v1690_v44 = vadd.f32 1.0, %v4389_v38  ;;  %4410 = vtanh.f32 %v1374_v16  ;;  %v1382_v10 = vadd.f32 %v1381_v33, %v5541_v42 }
 0x285   : > { %v1489_v45 = vadd.f32 %v3868_v41, %v5546_v48  ;;  %v4393_v46 = vpop.eup %4392  ;;  %4412 = vrcp.f32 %v1578_v40  ;;  %v5566_v47 = vpop.f32.mrf.mxu1 }
 0x286   : > { %v1480_v49 = vpop.f32.mrf.mxu0  ;;  %v4395_v51 = vpop.eup %4394  ;;  %4414 = vrcp.f32 %v1689_v8  ;;  %v3643_v52 = vmul.f32 -1.442695, %v1382_v10  ;;  %v1688_v63 = vadd.f32 1.0, %v4393_v46 }
 0x287   : > { %v1735_v53 = vmul.f32 %v4395_v51, %v4391_v43  ;;  %4416 = vrcp.f32 %v1687_v39  ;;  %v3659_v54 = vmul.f32 -1.442695, %v1489_v45  ;;  %v1481_v56 = vadd.f32 %v1480_v49, %v5546_v48  ;;  %v1385_v26 = vpop.f32.mrf.mxu1  ;;  %v4397_v4 = vpop.eup %4396 }
 0x288   : > { %v3869_v57 = vpop.f32.mrf.mxu0  ;;  %4418 = vrcp.f32 %v1690_v44  ;;  %v1386_v1 = vadd.f32 %v1385_v26, %v5541_v42  ;;  %v1384_v39 = vadd.f32 %v5566_v47, %v5551_v60 }
 0x289   : > { %4420 = vtanh.f32 %v1735_v53  ;;  %v1387_v61 = vpop.f32.mrf.mxu1  ;;  %v3657_v11 = vmul.f32 -1.442695, %v1481_v56  ;;  %v1492_v37 = vadd.f32 %v3869_v57, %v5546_v48 }
 0x28a   : > { %v4399_v5 = vpop.eup %4398  ;;  %4422 = vpow2.f32 %v3643_v52  ;;  %v1483_v12 = vpop.f32.mrf.mxu0  ;;  %v3644_v15 = vmul.f32 -1.442695, %v1386_v1  ;;  %v1388_v44 = vadd.f32 %v1387_v61, %v5551_v60 }
 0x28b   : > { %v4401_v6 = vpop.eup %4400  ;;  %v1736_v7 = vmul.f32 %v4399_v5, %v4397_v4  ;;  %4424 = vpow2.f32 %v3659_v54  ;;  %v1484_v18 = vadd.f32 %v1483_v12, %v5546_v48  ;;  %v3660_v24 = vmul.f32 -1.442695, %v1492_v37 }
 0x28c   : > { %4426 = vrcp.f32 %v1688_v63  ;;  %v1579_v14 = vadd.f32 1.0, %v4401_v6  ;;  %v4403_v17 = vpop.eup %4402 }
 0x28d   : > { %4428 = vtanh.f32 %v1736_v7  ;;  %v3658_v27 = vmul.f32 -1.442695, %v1484_v18 }
 0x28e   : > { %v4405_v13 = vpop.eup %4404  ;;  %4430 = vrcp.f32 %v1579_v14  ;;  %v1391_v19 = vpop.f32.mrf.mxu1 }
 0x28f   : > { %v4407_v20 = vpop.eup %4406  ;;  %v1737_v21 = vmul.f32 %v4405_v13, %v4403_v17  ;;  %4432 = vpow2.f32 %v3657_v11  ;;  %v1392_v22 = vadd.f32 %v1391_v19, %v5541_v42 }
 0x290   : > { %v4409_v23 = vpop.eup %4408  ;;  %4434 = vpow2.f32 %v3644_v15  ;;  %v1393_v25 = vpop.f32.mrf.mxu1 }
 0x291   : > { %v4411_v36 = vpop.eup %4410  ;;  %v1580_v9 = vadd.f32 1.0, %v4409_v23  ;;  %4436 = vtanh.f32 %v1378_v55  ;;  %v3645_v31 = vmul.f32 -1.442695, %v1392_v22  ;;  %v1394_v51 = vadd.f32 %v1393_v25, %v5551_v60 }
 0x292   : > { %v4413_v50 = vpop.eup %4412  ;;  %4438 = vtanh.f32 %v1737_v21  ;;  %v1395_v28 = vpop.f32.mrf.mxu1 }
 0x293   : > { %v5574_v30 = vpop.eup %4414  ;;  %v1738_v29 = vmul.f32 %v4413_v50, %v4407_v20  ;;  %4440 = vrcp.f32 %v1580_v9  ;;  %v1396_v32 = vadd.f32 %v1395_v28, %v5541_v42 }
 0x294   : > { %v4417_v16 = vpop.eup %4416  ;;  %4442 = vpow2.f32 %v3660_v24  ;;  %v1397_v2 = vpop.f32.mrf.mxu1 }
 0x295   : > { %v4419_v34 = vpop.eup %4418  ;;  %4444 = vtanh.f32 %v1738_v29  ;;  %v3646_v35 = vmul.f32 -1.442695, %v1396_v32  ;;  %v1398_v1 = vadd.f32 %v1397_v2, %v5551_v60 }
 0x296   : > { %v4421_v8 = vpop.eup %4420  ;;  %4446 = vpow2.f32 %v3658_v27 }
 0x297   : > { %v4423_v38 = vpop.eup %4422  ;;  %4448 = vpow2.f32 %v3645_v31  ;;  %v1401_v40 = vpop.f32.mrf.mxu1  ;;  %v1767_v56 = vmul.f32 %v4421_v8, %v4417_v16 }
 0x298   : > { %v3872_v33 = vpop.f32.mrf.mxu0  ;;  %v4425_v41 = vpop.eup %4424  ;;  %v1581_v43 = vadd.f32 1.0, %v4423_v38  ;;  %v1402_v10 = vadd.f32 %v1401_v40, %v5541_v42  ;;  %4450 = vpow2.f32 %v3646_v35 }
 0x299   : > { %v4427_v45 = vpop.eup %4426  ;;  %v5581_v46 = vpop.f32.mrf.mxu1  ;;  %v1693_v54 = vadd.f32 1.0, %v4425_v41  ;;  %v1505_v20 = vadd.f32 %v3872_v33, %v5546_v48 }
 0x29a   : > { %v4429_v49 = vpop.eup %4428  ;;  %4452 = vrcp.f32 %v1581_v43  ;;  %v3647_v52 = vmul.f32 -1.442695, %v1402_v10  ;;  %v1496_v53 = vpop.f32.mrf.mxu0  ;;  %v1404_v38 = vadd.f32 %v5581_v46, %v5551_v60 }
 0x29b   : > { %v4431_v47 = vpop.eup %4430  ;;  %4454 = vtanh.f32 %v1384_v39  ;;  %v1768_v26 = vmul.f32 %v4429_v49, %v4427_v45  ;;  %v1497_v4 = vadd.f32 %v1496_v53, %v5546_v48  ;;  %v1405_v5 = vpop.f32.mrf.mxu1  ;;  %v3663_v31 = vmul.f32 -1.442695, %v1505_v20 }
 0x29c   : > { %v4433_v57 = vpop.eup %4432  ;;  %4456 = vtanh.f32 %v1388_v44  ;;  %v1739_v7 = vmul.f32 %v4431_v47, %v4411_v36  ;;  %v3873_v15 = vpop.f32.mrf.mxu0  ;;  %v1406_v17 = vadd.f32 %v1405_v5, %v5541_v42 }
 0x29d   : > { %v4435_v63 = vpop.eup %4434  ;;  %4458 = vpow2.f32 %v3647_v52  ;;  %v1783_v61 = vpack.c.bf16 %v1768_v26, %v1767_v56  ;;  %v1691_v14 = vadd.f32 1.0, %v4433_v57  ;;  %v3661_v18 = vmul.f32 -1.442695, %v1497_v4  ;;  %v5589_v21 = vpop.f32.mrf.mxu1 }
 0x29e   : > { %v4437_v6 = vpop.eup %4436  ;;  %v1582_v11 = vadd.f32 1.0, %v4435_v63  ;;  %4460 = vtanh.f32 %v1394_v51  ;;  %v1499_v23 = vpop.f32.mrf.mxu0  ;;  %v3648_v50 = vmul.f32 -1.442695, %v1406_v17  ;;  %v1508_v43 = vadd.f32 %v3873_v15, %v5546_v48 }
 0x29f   : > { %v4439_v12 = vpop.eup %4438  ;;  %4462 = vrcp.f32 %v1693_v54  ;;  %2001 = vmatmul.mubr.bf16.vlgmr.msra.gmra.mxu0 %v1783_v61  ;;  %3894 = vmatprep.mubr.bf16.mxu1 %v1783_v61  ;;  %v1500_v32 = vadd.f32 %v1499_v23, %v5546_v48 }
 0x2a0   : > { %v4441_v37 = vpop.eup %4440  ;;  %4464 = vrcp.f32 %v1582_v11  ;;  %2010 = vmatprep.mubr.bf16.mxu0 %v5168_v0  ;;  %v1769_v24 = vmul.f32 %v4439_v12, %v5574_v30  ;;  %v3664_v56 = vmul.f32 -1.442695, %v1508_v43  ;;  %v1408_v11 = vadd.f32 %v5589_v21, %v5551_v60 }
 0x2a1   : > { %v4443_v55 = vpop.eup %4442  ;;  %v1740_v13 = vmul.f32 %v4441_v37, %v4437_v6  ;;  %4466 = vtanh.f32 %v1398_v1  ;;  %v3662_v44 = vmul.f32 -1.442695, %v1500_v32 }
 0x2a2   : > { %v4445_v19 = vpop.eup %4444  ;;  %4468 = vtanh.f32 %v1739_v7  ;;  %v1694_v35 = vadd.f32 1.0, %v4443_v55 }
 0x2a3   : > { %v4447_v22 = vpop.eup %4446  ;;  %4470 = vrcp.f32 %v1691_v14  ;;  %v1770_v25 = vmul.f32 %v4445_v19, %v4419_v34 }
 0x2a4   : > { %v4449_v36 = vpop.eup %4448  ;;  %4472 = vtanh.f32 %v1740_v13  ;;  %v1692_v9 = vadd.f32 1.0, %v4447_v22 }
 0x2a5   : > { %v1583_v27 = vadd.f32 1.0, %v4449_v36  ;;  %4474 = vpow2.f32 %v3661_v18  ;;  %v1784_v28 = vpack.c.bf16 %v1770_v25, %v1769_v24  ;;  %v4451_v29 = vpop.eup %4450 }
 0x2a6   : > { %4476 = vrcp.f32 %v1692_v9  ;;  %v1411_v16 = vpop.f32.mrf.mxu1  ;;  %v1584_v8 = vadd.f32 1.0, %v4451_v29 }
 0x2a7   : > { %v4453_v2 = vpop.eup %4452  ;;  %4478 = vrcp.f32 %v1583_v27  ;;  %v1412_v30 = vadd.f32 %v1411_v16, %v5541_v42  ;;  %2011 = vmatmul.mubr.bf16.gmra.mxu0 %v1784_v28  ;;  %3895 = vmatmul.mubr.bf16.vlgmr.msra.gmra.mxu1 %v1784_v28 }
 0x2a8   : > { %v4455_v34 = vpop.eup %4454  ;;  %4480 = vpow2.f32 %v3648_v50  ;;  %v1413_v39 = vpop.f32.mrf.mxu1  ;;  %2020 = vmatprep.mubr.bf16.mxu0 %v5168_v0 }
 0x2a9   : > { %v4457_v40 = vpop.eup %4456  ;;  %v1741_v33 = vmul.f32 %v4455_v34, %v4453_v2  ;;  %4482 = vrcp.f32 %v1584_v8  ;;  %v3649_v49 = vmul.f32 -1.442695, %v1412_v30  ;;  %v1414_v18 = vadd.f32 %v1413_v39, %v5551_v60 }
 0x2aa   : > { %v4459_v41 = vpop.eup %4458  ;;  %4484 = vpow2.f32 %v3663_v31  ;;  %v1415_v10 = vpop.f32.mrf.mxu1 }
 0x2ab   : > { %v4461_v45 = vpop.eup %4460  ;;  %4486 = vrcp.f32 %v1694_v35  ;;  %v1416_v51 = vadd.f32 %v1415_v10, %v5541_v42  ;;  %v1585_v53 = vadd.f32 1.0, %v4459_v41 }
 0x2ac   : > { %v5599_v52 = vpop.eup %4462  ;;  %4488 = vtanh.f32 %v1404_v38  ;;  %v1417_v26 = vpop.f32.mrf.mxu1 }
 0x2ad   : > { %v4465_v46 = vpop.eup %4464  ;;  %4490 = vtanh.f32 %v1741_v33  ;;  %v3650_v63 = vmul.f32 -1.442695, %v1416_v51  ;;  %v1418_v30 = vadd.f32 %v1417_v26, %v5551_v60 }
 0x2ae   : > { %v4467_v47 = vpop.eup %4466  ;;  %v1742_v54 = vmul.f32 %v4465_v46, %v4457_v40  ;;  %4492 = vpow2.f32 %v3662_v44 }
 0x2af   : > { %v4469_v57 = vpop.eup %4468  ;;  %4494 = vpow2.f32 %v3649_v49 }
 0x2b0   : > { %v4471_v1 = vpop.eup %4470  ;;  %4496 = vtanh.f32 %v1742_v54 }
 0x2b1   : > { %v4473_v4 = vpop.eup %4472  ;;  %4498 = vrcp.f32 %v1585_v53  ;;  %v1771_v17 = vmul.f32 %v4471_v1, %v4469_v57 }
 0x2b2   : > { %v4475_v5 = vpop.eup %4474  ;;  %4500 = vpow2.f32 %v3664_v56  ;;  %v1421_v61 = vpop.f32.mrf.mxu1 }
 0x2b3   : > { %v5601_v6 = vpop.f32.mrf.mxu0  ;;  %v4477_v7 = vpop.eup %4476  ;;  %4502 = vpow2.f32 %v3650_v63  ;;  %v1422_v12 = vadd.f32 %v1421_v61, %v5541_v42  ;;  %v1695_v28 = vadd.f32 1.0, %v4475_v5 }
 0x2b4   : > { %v4479_v14 = vpop.eup %4478  ;;  %v5606_v15 = vpop.f32.mrf.mxu1  ;;  %v1772_v55 = vmul.f32 %v4477_v7, %v4473_v4  ;;  %4504 = vtanh.f32 %v1408_v11 }
 0x2b5   : > { %v1512_v37 = vpop.f32.mrf.mxu0  ;;  %v4481_v13 = vpop.eup %4480  ;;  %v3651_v22 = vmul.f32 -1.442695, %v1422_v12  ;;  %v1743_v25 = vmul.f32 %v4479_v14, %v4461_v45  ;;  %v1424_v12 = vadd.f32 %v5606_v15, %v5551_v60 }
 0x2b6   : > { %v4483_v19 = vpop.eup %4482  ;;  %v1586_v20 = vadd.f32 1.0, %v4481_v13  ;;  %v1785_v23 = vpack.c.bf16 %v1772_v55, %v1771_v17  ;;  %v1425_v21 = vpop.f32.mrf.mxu1  ;;  %v1513_v29 = vadd.f32 %v1512_v37, %v5546_v48 }
 0x2b7   : > { %v4485_v24 = vpop.eup %4484  ;;  %v3877_v36 = vpop.f32.mrf.mxu0  ;;  %v1744_v50 = vmul.f32 %v4483_v19, %v4467_v47  ;;  %v1426_v32 = vadd.f32 %v1425_v21, %v5541_v42  ;;  %v1521_v47 = vadd.f32 %v5601_v6, %v5546_v48 }
 0x2b8   : > { %v4487_v9 = vpop.eup %4486  ;;  %4506 = vrcp.f32 %v1586_v20  ;;  %2021 = vmatmul.mubr.bf16.gmra.mxu0 %v1785_v23  ;;  %3898 = vmatprep.mubr.bf16.mxu1 %v1785_v23  ;;  %v3665_v39 = vmul.f32 -1.442695, %v1513_v29  ;;  %v1697_v45 = vadd.f32 1.0, %v4485_v24  ;;  %v1524_v26 = vadd.f32 %v3877_v36, %v5546_v48  ;;  %v1427_v14 = vpop.f32.mrf.mxu1 }
 0x2b9   : > { %v4489_v27 = vpop.eup %4488  ;;  %4508 = vtanh.f32 %v1414_v18  ;;  %2030 = vmatprep.mubr.bf16.mxu0 %v5168_v0  ;;  %v1515_v2 = vpop.f32.mrf.mxu0  ;;  %v3652_v41 = vmul.f32 -1.442695, %v1426_v32  ;;  %v3667_v4 = vmul.f32 -1.442695, %v1521_v47  ;;  %v1428_v18 = vadd.f32 %v1427_v14, %v5551_v60  ;;  %v5641_v14 = vld [vmem:[#allocation11 + $0xa8] ss:$16 sps:$4 sm:$0xff]  }
 0x2ba   : > { %v4491_v31 = vpop.eup %4490  ;;  %4510 = vpow2.f32 %v3651_v22  ;;  %v1516_v43 = vadd.f32 %v1515_v2, %v5546_v48  ;;  %v3668_v11 = vmul.f32 -1.442695, %v1524_v26  ;;  %v5627_v26 = vld [vmem:[#allocation11 + $0xec] ss:$16 sps:$4 sm:$0xff]  }
 0x2bb   : > { %v4493_v16 = vpop.eup %4492  ;;  %4512 = vtanh.f32 %v1743_v25  ;;  %v1773_v40 = vmul.f32 %v4491_v31, %v5599_v52  ;;  %2769 = vmatprep.subr.bf16.mxu0 %v5627_v26 }
 0x2bc   : > { %v4495_v35 = vpop.eup %4494  ;;  %4514 = vtanh.f32 %v1744_v50  ;;  %v1696_v8 = vadd.f32 1.0, %v4493_v16  ;;  %v3666_v53 = vmul.f32 -1.442695, %v1516_v43 }
 0x2bd   : > { %v4497_v34 = vpop.eup %4496  ;;  %4516 = vrcp.f32 %v1695_v28  ;;  %v1587_v38 = vadd.f32 1.0, %v4495_v35 }
 0x2be   : > { %v4499_v33 = vpop.eup %4498  ;;  %4518 = vrcp.f32 %v1696_v8  ;;  %v1774_v42 = vmul.f32 %v4497_v34, %v4487_v9 }
 0x2bf   : > { %v4501_v44 = vpop.eup %4500  ;;  %4520 = vrcp.f32 %v1587_v38  ;;  %v1745_v51 = vmul.f32 %v4499_v33, %v4489_v27 }
 0x2c0   : > { %v4503_v10 = vpop.eup %4502  ;;  %4522 = vtanh.f32 %v1418_v30  ;;  %v1786_v49 = vpack.c.bf16 %v1774_v42, %v1773_v40  ;;  %v1698_v52 = vadd.f32 1.0, %v4501_v44 }
 0x2c1   : > { %v1588_v46 = vadd.f32 1.0, %v4503_v10  ;;  %4524 = vpow2.f32 %v3665_v39  ;;  %v4505_v54 = vpop.eup %4504 }
 0x2c2   : > { %4526 = vpow2.f32 %v3652_v41  ;;  %2031 = vmatmul.mubr.bf16.gmra.mxu0 %v1786_v49  ;;  %3899 = vmatmul.mubr.bf16.gmra.mxu1 %v1786_v49 }
 0x2c3   : > { %4528 = vrcp.f32 %v1588_v46  ;;  %2040 = vmatprep.mubr.bf16.mxu0 %v5168_v0 }
 0x2c4   : > { %4530 = vrcp.f32 %v1697_v45 }
 0x2c5   : > { %v4507_v56 = vpop.eup %4506  ;;  %4532 = vtanh.f32 %v1745_v51 }
 0x2c6   : > { %v4509_v57 = vpop.eup %4508  ;;  %v1746_v63 = vmul.f32 %v4507_v56, %v4505_v54  ;;  %4534 = vpow2.f32 %v3666_v53 }
 0x2c7   : > { %v4511_v1 = vpop.eup %4510  ;;  %4536 = vrcp.f32 %v1698_v52 }
 0x2c8   : > { %v4513_v5 = vpop.eup %4512  ;;  %4538 = vtanh.f32 %v1746_v63  ;;  %v1589_v61 = vadd.f32 1.0, %v4511_v1  ;;  %v5629_v63 = vld [vmem:[#allocation11 + $0xe8] ss:$16 sps:$4 sm:$0xff]   ;;  %v4139_v1 = vld [vmem:[#allocation11 + $0xe0] ss:$16 sps:$4 sm:$0xff]  }
 0x2c9   : > { %v4515_v7 = vpop.eup %4514  ;;  %4540 = vpow2.f32 %v3667_v4  ;;  %2770 = vmatpush1.bf16.msra.mxu0 %v5629_v63  ;;  %v5633_v4 = vld [vmem:[#allocation11 + $0xcc] ss:$16 sps:$4 sm:$0xff]  }
 0x2ca   : > { %v4517_v6 = vpop.eup %4516  ;;  %4542 = vrcp.f32 %v1589_v61  ;;  %v5635_v61 = vld [vmem:[#allocation11 + $0xc8] ss:$16 sps:$4 sm:$0xff]   ;;  %2771 = vmatprep.subr.bf16.mxu0 %v5633_v4 }
 0x2cb   : > { %v4519_v37 = vpop.eup %4518  ;;  %v1775_v48 = vmul.f32 %v4517_v6, %v4513_v5  ;;  %4544 = vpow2.f32 %v3668_v11  ;;  %v4147_v5 = vld [vmem:[#allocation11 + $0xc4] ss:$16 sps:$4 sm:$0xff]   ;;  %v5639_v6 = vld [vmem:[#allocation11 + $0xac] ss:$16 sps:$4 sm:$0xff]  }
 0x2cc   : > { %v4521_v17 = vpop.eup %4520  ;;  %v1776_v55 = vmul.f32 %v4519_v37, %v4515_v7  ;;  %4546 = vtanh.f32 %v1424_v12  ;;  %v4145_v7 = vld [vmem:[#allocation11 + $0xc0] ss:$16 sps:$4 sm:$0xff]   ;;  %v4150_v11 = vld [vmem:[#allocation11 + $0xa4] ss:$16 sps:$4 sm:$0xff]  }
 0x2cd   : > { %v4523_v13 = vpop.eup %4522  ;;  %v1747_v23 = vmul.f32 %v4521_v17, %v4509_v57  ;;  %4548 = vtanh.f32 %v1428_v18  ;;  %v4141_v57 = vld [vmem:[#allocation11 + $0xe4] ss:$16 sps:$4 sm:$0xff]   ;;  %2772 = vmatpush1.bf16.msra.mxu0 %v5635_v61  ;;  %v4148_v12 = vld [vmem:[#allocation11 + $0xa0] ss:$16 sps:$4 sm:$0xff]   ;;  %v5645_v17 = vld [vmem:[#allocation11 + $0x8c] ss:$16 sps:$4 sm:$0xff]  }
 0x2ce   : > { %v4525_v19 = vpop.eup %4524  ;;  %v1787_v20 = vpack.c.bf16 %v1776_v55, %v1775_v48  ;;  %2656 = vmatprep.subr.bf16.mxu1 %v4141_v57  ;;  %2773 = vmatprep.subr.bf16.mxu0 %v5639_v6  ;;  %v4156_v37 = vld [vmem:[#allocation11 + $0x84] ss:$16 sps:$4 sm:$0xff]   ;;  %v4154_v48 = vld [vmem:[#allocation11 + $0x80] ss:$16 sps:$4 sm:$0xff]   ;;  %v5647_v55 = vld [vmem:[#allocation11 + $0x88] ss:$16 sps:$4 sm:$0xff]  }
 0x2cf   : > { %v4527_v22 = vpop.eup %4526  ;;  %v1699_v36 = vadd.f32 1.0, %v4525_v19  ;;  %2657 = vmatpush1.bf16.msra.mxu1 %v4139_v1  ;;  %v5651_v18 = vld [vmem:[#allocation11 + $0x6c] ss:$16 sps:$4 sm:$0xff]   ;;  %v4160_v19 = vld [vmem:[#allocation11 + $0x60] ss:$16 sps:$4 sm:$0xff]  }
 0x2d0   : > { %v4529_v24 = vpop.eup %4528  ;;  %v1590_v25 = vadd.f32 1.0, %v4527_v22  ;;  %2041 = vmatmul.mubr.bf16.gmra.mxu0 %v1787_v20  ;;  %3902 = vmatprep.mubr.bf16.mxu1 %v1787_v20  ;;  %v5653_v20 = vld [vmem:[#allocation11 + $0x68] ss:$16 sps:$4 sm:$0xff]   ;;  %v4168_v22 = vld [vmem:[#allocation11 + $0x44] ss:$16 sps:$4 sm:$0xff]  }
 0x2d1   : > { %v4531_v15 = vpop.eup %4530  ;;  %v1748_v21 = vmul.f32 %v4529_v24, %v4523_v13  ;;  %2050 = vmatprep.mubr.bf16.mxu0 %v5168_v0  ;;  %2658 = vmatprep.subr.bf16.mxu1 %v4147_v5  ;;  %v4162_v13 = vld [vmem:[#allocation11 + $0x64] ss:$16 sps:$4 sm:$0xff]   ;;  %v4166_v24 = vld [vmem:[#allocation11 + $0x40] ss:$16 sps:$4 sm:$0xff]  }
 0x2d2   : > { %v4533_v9 = vpop.eup %4532  ;;  %4550 = vrcp.f32 %v1590_v25  ;;  %2774 = vmatpush1.bf16.msra.mxu0 %v5641_v14  ;;  %v5659_v25 = vld [vmem:[#allocation11 + $0x48] ss:$16 sps:$4 sm:$0xff]  }
 0x2d3   : > { %v4535_v50 = vpop.eup %4534  ;;  %4552 = vtanh.f32 %v1747_v23  ;;  %v1777_v29 = vmul.f32 %v4533_v9, %v4531_v15  ;;  %2659 = vmatpush1.bf16.msra.mxu1 %v4145_v7  ;;  %2775 = vmatprep.subr.bf16.mxu0 %v5645_v17  ;;  %v5657_v23 = vld [vmem:[#allocation11 + $0x4c] ss:$16 sps:$4 sm:$0xff]   ;;  %v4174_v15 = vld [vmem:[#allocation11 + $0x24] ss:$16 sps:$4 sm:$0xff]   ;;  %v5665_v9 = vld [vmem:[#allocation11 + $0x28] ss:$16 sps:$4 sm:$0xff]  }
 0x2d4   : > { %v4537_v60 = vpop.eup %4536  ;;  %4554 = vtanh.f32 %v1748_v21  ;;  %v1700_v27 = vadd.f32 1.0, %v4535_v50  ;;  %2660 = vmatprep.subr.bf16.mxu1 %v4150_v11  ;;  %v5663_v21 = vld [vmem:[#allocation11 + $0x2c] ss:$16 sps:$4 sm:$0xff]   ;;  %v4180_v50 = vld [vmem:[#allocation11 + $0x4] ss:$16 sps:$4 sm:$0xff]  }
 0x2d5   : > { %v4539_v28 = vpop.eup %4538  ;;  %4556 = vrcp.f32 %v1699_v36  ;;  %v4172_v36 = vld [vmem:[#allocation11 + $0x20] ss:$16 sps:$4 sm:$0xff]  }
 0x2d6   : > { %4558 = vrcp.f32 %v1700_v27  ;;  %v1778_v31 = vmul.f32 %v4539_v28, %v4537_v60  ;;  %v4541_v32 = vpop.eup %4540  ;;  %2776 = vmatpush1.bf16.msra.mxu0 %v5647_v55  ;;  %v5669_v60 = vld [vmem:[#allocation11 + $0xc] ss:$16 sps:$4 sm:$0xff]   ;;  %v4178_v27 = vld [vmem:[#allocation11] ss:$16 sps:$4 sm:$0xff]   ;;  %v5671_v28 = vld [vmem:[#allocation11 + $0x8] ss:$16 sps:$4 sm:$0xff]  }
 0x2d7   : > { %v4543_v2 = vpop.eup %4542  ;;  %v1701_v30 = vadd.f32 1.0, %v4541_v32  ;;  %2661 = vmatpush1.bf16.msra.mxu1 %v4148_v12  ;;  %2777 = vmatprep.subr.bf16.mxu0 %v5651_v18 }
 0x2d8   : > { %v1788_v16 = vpack.c.bf16 %v1778_v31, %v1777_v29  ;;  %v4545_v35 = vpop.eup %4544  ;;  %2662 = vmatprep.subr.bf16.mxu1 %v4156_v37  ;;  %v1823_v29 = vld [vmem:[%s6497_s6] sm:$0x7] }
 0x2d9   : > { %v4547_v8 = vpop.eup %4546  ;;  %v1702_v38 = vadd.f32 1.0, %v4545_v35  ;;  %4560 = vrcp.f32 %v1701_v30  ;;  %v5680_v31 = vrot.slane %v1823_v29, %v5428_v59 }
 0x2da   : > { %2051 = vmatmul.mubr.bf16.gmra.mxu0 %v1788_v16  ;;  %3903 = vmatmul.mubr.bf16.gmra.mxu1 %v1788_v16  ;;  %v1749_v34 = vmul.f32 %v4547_v8, %v4543_v2  ;;  %v4549_v39 = vpop.eup %4548 }
 0x2db   : > { %2060 = vmatprep.mubr.bf16.mxu0 %v5168_v0  ;;  %2663 = vmatpush1.bf16.msra.mxu1 %v4154_v48 }
 0x2dc   : > { %4562 = vtanh.f32 %v1749_v34  ;;  %2664 = vmatprep.subr.bf16.mxu1 %v4162_v13  ;;  %2778 = vmatpush1.bf16.msra.mxu0 %v5653_v20  ;;  %v5685_v34 = vrot.slane %v1823_v29, %v5437_v62 }
 0x2dd   : > { %4564 = vrcp.f32 %v1702_v38  ;;  %2779 = vmatprep.subr.bf16.mxu0 %v5657_v23 }
 0x2df   : > { %v4551_v40 = vpop.eup %4550  ;;  %2665 = vmatpush1.bf16.msra.mxu1 %v4160_v19 }
 0x2e0   : > { %v4553_v33 = vpop.eup %4552  ;;  %v1750_v41 = vmul.f32 %v4551_v40, %v4549_v39  ;;  %2666 = vmatprep.subr.bf16.mxu1 %v4168_v22  ;;  %2780 = vmatpush1.bf16.msra.mxu0 %v5659_v25 }
 0x2e1   : > { %v4555_v43 = vpop.eup %4554  ;;  %2781 = vmatprep.subr.bf16.mxu0 %v5663_v21 }
 0x2e2   : > { %v4557_v42 = vpop.eup %4556  ;;  %4566 = vtanh.f32 %v1750_v41 }
 0x2e3   : > { %v4559_v44 = vpop.eup %4558  ;;  %v1779_v10 = vmul.f32 %v4557_v42, %v4553_v33  ;;  %2667 = vmatpush1.bf16.msra.mxu1 %v4166_v24 }
 0x2e4   : > { %v1780_v45 = vmul.f32 %v4559_v44, %v4555_v43  ;;  %2668 = vmatprep.subr.bf16.mxu1 %v4174_v15  ;;  %2782 = vmatpush1.bf16.msra.mxu0 %v5665_v9 }
 0x2e5   : > { %2783 = vmatprep.subr.bf16.mxu0 %v5669_v60 }
 0x2e6   : > { %v1789_v49 = vpack.c.bf16 %v1780_v45, %v1779_v10  ;;  %v4561_v51 = vpop.eup %4560  ;;  %v5690_v10 = vrot.slane %v1823_v29, %v5444_v3 }
 0x2e7   : > { %2669 = vmatpush1.bf16.msra.mxu1 %v4172_v36 }
 0x2e8   : > { %2061 = vmatmul.mubr.bf16.gmra.mxu0 %v1789_v49  ;;  %3906 = vmatprep.mubr.bf16.mxu1 %v1789_v49 }
 0x2e9   : > { %2070 = vmatprep.mubr.bf16.mxu0 %v5168_v0  ;;  %v4563_v46 = vpop.eup %4562  ;;  %2670 = vmatprep.subr.bf16.mxu1 %v4180_v50 }
 0x2ea   : > { %v4565_v53 = vpop.eup %4564  ;;  %v1781_v47 = vmul.f32 %v4563_v46, %v4561_v51  ;;  %2784 = vmatpush1.bf16.msra.mxu0 %v5671_v28 }
 0x2eb   : > { %2671 = vmatpush1.bf16.msra.mxu1 %v4178_v27 }
 0x2ec   : > { %3910 = vmatprep.subr.bf16.mxu1 %v5627_v26 }
 0x2ef   : > { %v4567_v52 = vpop.eup %4566 }
 0x2f0   : > { %v1782_v54 = vmul.f32 %v4567_v52, %v4565_v53 }
 0x2f2   : > { %v1790_v56 = vpack.c.bf16 %v1782_v54, %v1781_v47 }
 0x2f4   : > { %2071 = vmatmul.mubr.bf16.gmra.mxu0 %v1790_v56  ;;  %3907 = vmatmul.mubr.bf16.gmra.mxu1 %v1790_v56 }
 0x2f5   : > { %2688 = vmatprep.mubr.bf16.mxu1 %v5168_v0  ;;  %2801 = vmatprep.mubr.bf16.mxu0 %v5168_v0 }
 0x35f   : > { %v2002_v32 = vpop.f32.mrf.mxu0 }
 0x360   : > { %v2003_v16 = vadd.f32 %v2002_v32, %v5680_v31 }
 0x361   : > { %v2004_v2 = vpop.f32.mrf.mxu0 }
 0x362   : > { %v3693_v35 = vmul.f32 -1.442695, %v2003_v16  ;;  %v2005_v26 = vadd.f32 %v2004_v2, %v5690_v10 }
 0x363   : > { %v2006_v8 = vpop.f32.mrf.mxu0 }
 0x364   : > { %4568 = vpow2.f32 %v3693_v35  ;;  %v2007_v30 = vadd.f32 %v2006_v8, %v5680_v31 }
 0x365   : > { %v2008_v38 = vpop.f32.mrf.mxu0 }
 0x366   : > { %v3694_v39 = vmul.f32 -1.442695, %v2007_v30  ;;  %v2009_v37 = vadd.f32 %v2008_v38, %v5690_v10 }
 0x367   : > { %v2012_v40 = vpop.f32.mrf.mxu0  ;;  %v3896_v33 = vpop.f32.mrf.mxu1 }
 0x368   : > { %4570 = vpow2.f32 %v3694_v39  ;;  %v2013_v41 = vadd.f32 %v2012_v40, %v5680_v31  ;;  %v2124_v43 = vadd.f32 %v3896_v33, %v5685_v34 }
 0x369   : > { %v2014_v42 = vpop.f32.mrf.mxu0  ;;  %v2115_v44 = vpop.f32.mrf.mxu1 }
 0x36a   : > { %v3695_v45 = vmul.f32 -1.442695, %v2013_v41  ;;  %v3711_v49 = vmul.f32 -1.442695, %v2124_v43  ;;  %v2116_v51 = vadd.f32 %v2115_v44, %v5685_v34  ;;  %v2015_v22 = vadd.f32 %v2014_v42, %v5690_v10 }
 0x36b   : > { %v2016_v46 = vpop.f32.mrf.mxu0  ;;  %v3897_v53 = vpop.f32.mrf.mxu1 }
 0x36c   : > { %4572 = vpow2.f32 %v3695_v45  ;;  %v3709_v52 = vmul.f32 -1.442695, %v2116_v51  ;;  %v2017_v47 = vadd.f32 %v2016_v46, %v5680_v31  ;;  %v2127_v54 = vadd.f32 %v3897_v53, %v5685_v34 }
 0x36d   : > { %v2118_v56 = vpop.f32.mrf.mxu1  ;;  %4574 = vpow2.f32 %v3711_v49  ;;  %v2018_v48 = vpop.f32.mrf.mxu0 }
 0x36e   : > { %v3696_v57 = vmul.f32 -1.442695, %v2017_v47  ;;  %4576 = vpow2.f32 %v3709_v52  ;;  %v2119_v1 = vadd.f32 %v2118_v56, %v5685_v34  ;;  %v3712_v7 = vmul.f32 -1.442695, %v2127_v54 }
 0x36f   : > { %v2019_v32 = vadd.f32 %v2018_v48, %v5690_v10 }
 0x370   : > { %4578 = vpow2.f32 %v3696_v57  ;;  %v3710_v11 = vmul.f32 -1.442695, %v2119_v1 }
 0x371   : > { %v4569_v5 = vpop.eup %4568  ;;  %4580 = vtanh.f32 %v2005_v26 }
 0x372   : > { %v2226_v12 = vadd.f32 1.0, %v4569_v5  ;;  %4582 = vpow2.f32 %v3710_v11 }
 0x374   : > { %4584 = vrcp.f32 %v2226_v12 }
 0x375   : > { %v4571_v13 = vpop.eup %4570  ;;  %4586 = vpow2.f32 %v3712_v7 }
 0x376   : > { %v2227_v19 = vadd.f32 1.0, %v4571_v13  ;;  %4588 = vtanh.f32 %v2009_v37 }
 0x378   : > { %4590 = vrcp.f32 %v2227_v19  ;;  %v2022_v24 = vpop.f32.mrf.mxu0 }
 0x379   : > { %v4573_v15 = vpop.eup %4572  ;;  %v2023_v36 = vadd.f32 %v2022_v24, %v5680_v31  ;;  %4592 = vtanh.f32 %v2015_v22 }
 0x37a   : > { %v2228_v50 = vadd.f32 1.0, %v4573_v15  ;;  %v2024_v27 = vpop.f32.mrf.mxu0  ;;  %v4575_v29 = vpop.eup %4574 }
 0x37b   : > { %v3697_v16 = vmul.f32 -1.442695, %v2023_v36  ;;  %v4577_v2 = vpop.eup %4576  ;;  %v2340_v38 = vadd.f32 1.0, %v4575_v29 }
 0x37c   : > { %4594 = vrcp.f32 %v2228_v50  ;;  %v2026_v35 = vpop.f32.mrf.mxu0  ;;  %v2338_v41 = vadd.f32 1.0, %v4577_v2 }
 0x37d   : > { %v4579_v8 = vpop.eup %4578  ;;  %v2027_v30 = vadd.f32 %v2026_v35, %v5680_v31  ;;  %4596 = vpow2.f32 %v3697_v16  ;;  %v2025_v16 = vadd.f32 %v2024_v27, %v5690_v10 }
 0x37e   : > { %v2229_v39 = vadd.f32 1.0, %v4579_v8  ;;  %v2028_v40 = vpop.f32.mrf.mxu0  ;;  %v4581_v33 = vpop.eup %4580  ;;  %4598 = vtanh.f32 %v2019_v32 }
 0x37f   : > { %v4583_v43 = vpop.eup %4582  ;;  %v3698_v45 = vmul.f32 -1.442695, %v2027_v30 }
 0x380   : > { %4600 = vrcp.f32 %v2229_v39  ;;  %v2339_v44 = vadd.f32 1.0, %v4583_v43  ;;  %v2029_v43 = vadd.f32 %v2028_v40, %v5690_v10 }
 0x381   : > { %v4585_v42 = vpop.eup %4584  ;;  %4602 = vrcp.f32 %v2340_v38 }
 0x382   : > { %v4587_v49 = vpop.eup %4586  ;;  %v2386_v51 = vmul.f32 %v4585_v42, %v4581_v33  ;;  %v2032_v46 = vpop.f32.mrf.mxu0  ;;  %4604 = vrcp.f32 %v2338_v41 }
 0x383   : > { %v3900_v53 = vpop.f32.mrf.mxu1  ;;  %v2033_v52 = vadd.f32 %v2032_v46, %v5680_v31  ;;  %v4589_v54 = vpop.eup %4588  ;;  %4606 = vrcp.f32 %v2339_v44  ;;  %v2341_v1 = vadd.f32 1.0, %v4587_v49 }
 0x384   : > { %v2140_v47 = vadd.f32 %v3900_v53, %v5685_v34  ;;  %v2034_v56 = vpop.f32.mrf.mxu0  ;;  %4608 = vpow2.f32 %v3698_v45 }
 0x385   : > { %v2131_v26 = vpop.f32.mrf.mxu1  ;;  %v4591_v57 = vpop.eup %4590  ;;  %v3699_v5 = vmul.f32 -1.442695, %v2033_v52  ;;  %4610 = vtanh.f32 %v2386_v51 }
 0x386   : > { %v2387_v7 = vmul.f32 %v4591_v57, %v4589_v54  ;;  %v3715_v11 = vmul.f32 -1.442695, %v2140_v47  ;;  %v2132_v12 = vadd.f32 %v2131_v26, %v5685_v34  ;;  %v2036_v37 = vpop.f32.mrf.mxu0  ;;  %v4593_v19 = vpop.eup %4592 }
 0x387   : > { %v3901_v48 = vpop.f32.mrf.mxu1  ;;  %4612 = vpow2.f32 %v3699_v5  ;;  %v2037_v13 = vadd.f32 %v2036_v37, %v5680_v31 }
 0x388   : > { %4614 = vtanh.f32 %v2387_v7  ;;  %v3713_v22 = vmul.f32 -1.442695, %v2132_v12  ;;  %v2143_v8 = vadd.f32 %v3901_v48, %v5685_v34  ;;  %v2038_v30 = vpop.f32.mrf.mxu0 }
 0x389   : > { %v2134_v24 = vpop.f32.mrf.mxu1  ;;  %v4595_v15 = vpop.eup %4594  ;;  %4616 = vrcp.f32 %v2341_v1  ;;  %v3700_v36 = vmul.f32 -1.442695, %v2037_v13  ;;  %v2035_v1 = vadd.f32 %v2034_v56, %v5690_v10  ;;  %v2039_v13 = vadd.f32 %v2038_v30, %v5690_v10 }
 0x38a   : > { %v2388_v50 = vmul.f32 %v4595_v15, %v4593_v19  ;;  %4618 = vpow2.f32 %v3715_v11  ;;  %v2135_v29 = vadd.f32 %v2134_v24, %v5685_v34  ;;  %v4597_v32 = vpop.eup %4596  ;;  %v3716_v27 = vmul.f32 -1.442695, %v2143_v8 }
 0x38b   : > { %4620 = vpow2.f32 %v3713_v22  ;;  %v4599_v2 = vpop.eup %4598  ;;  %v2230_v35 = vadd.f32 1.0, %v4597_v32 }
 0x38c   : > { %4622 = vtanh.f32 %v2388_v50  ;;  %v3714_v33 = vmul.f32 -1.442695, %v2135_v29 }
 0x38d   : > { %v4601_v38 = vpop.eup %4600  ;;  %4624 = vpow2.f32 %v3700_v36 }
 0x38e   : > { %v2389_v39 = vmul.f32 %v4601_v38, %v4599_v2  ;;  %4626 = vrcp.f32 %v2230_v35  ;;  %v5709_v41 = vpop.eup %4602 }
 0x38f   : > { %4628 = vtanh.f32 %v2025_v16  ;;  %v4605_v42 = vpop.eup %4604 }
 0x390   : > { %4630 = vtanh.f32 %v2389_v39  ;;  %v2042_v44 = vpop.f32.mrf.mxu0  ;;  %v4607_v45 = vpop.eup %4606 }
 0x391   : > { %v2043_v49 = vadd.f32 %v2042_v44, %v5680_v31  ;;  %v4609_v51 = vpop.eup %4608  ;;  %4632 = vpow2.f32 %v3714_v33 }
 0x392   : > { %v2044_v46 = vpop.f32.mrf.mxu0  ;;  %v4611_v53 = vpop.eup %4610  ;;  %v2231_v52 = vadd.f32 1.0, %v4609_v51  ;;  %4634 = vtanh.f32 %v2029_v43 }
 0x393   : > { %v3701_v47 = vmul.f32 -1.442695, %v2043_v49  ;;  %4636 = vpow2.f32 %v3716_v27  ;;  %v2418_v12 = vmul.f32 %v4611_v53, %v4605_v42  ;;  %v2045_v24 = vadd.f32 %v2044_v46, %v5690_v10 }
 0x394   : > { %v4613_v54 = vpop.eup %4612  ;;  %v2046_v26 = vpop.f32.mrf.mxu0  ;;  %4638 = vrcp.f32 %v2231_v52 }
 0x395   : > { %v4615_v57 = vpop.eup %4614  ;;  %v2232_v40 = vadd.f32 1.0, %v4613_v54  ;;  %v2047_v5 = vadd.f32 %v2046_v26, %v5680_v31  ;;  %4640 = vpow2.f32 %v3701_v47 }
 0x396   : > { %v4617_v7 = vpop.eup %4616  ;;  %v2048_v11 = vpop.f32.mrf.mxu0  ;;  %v2419_v37 = vmul.f32 %v4615_v57, %v4607_v45 }
 0x397   : > { %v4619_v48 = vpop.eup %4618  ;;  %4642 = vrcp.f32 %v2232_v40  ;;  %v3702_v19 = vmul.f32 -1.442695, %v2047_v5 }
 0x398   : > { %v4621_v22 = vpop.eup %4620  ;;  %v2434_v15 = vpack.c.bf16 %v2419_v37, %v2418_v12  ;;  %4644 = vtanh.f32 %v2035_v1  ;;  %v2344_v16 = vadd.f32 1.0, %v4619_v48  ;;  %v2049_v1 = vadd.f32 %v2048_v11, %v5690_v10 }
 0x399   : > { %v4623_v36 = vpop.eup %4622  ;;  %4646 = vpow2.f32 %v3702_v19  ;;  %v2342_v33 = vadd.f32 1.0, %v4621_v22 }
 0x39a   : > { %v4625_v50 = vpop.eup %4624  ;;  %v2052_v56 = vpop.f32.mrf.mxu0  ;;  %2689 = vmatmul.mubr.bf16.vlgmr.msra.gmra.mxu1 %v2434_v15  ;;  %2802 = vmatmul.mubr.bf16.vlgmr.msra.gmra.mxu0 %v2434_v15  ;;  %4648 = vtanh.f32 %v2039_v13  ;;  %v2420_v45 = vmul.f32 %v4623_v36, %v5709_v41 }
 0x39b   : > { %v3904_v29 = vpop.f32.mrf.mxu1  ;;  %v4627_v32 = vpop.eup %4626  ;;  %v2233_v2 = vadd.f32 1.0, %v4625_v50  ;;  %v2053_v35 = vadd.f32 %v2052_v56, %v5680_v31  ;;  %3918 = vmatpush1.bf16.msra.mxu1 %v5629_v63  ;;  %2698 = vmatprep.mubr.bf16.mxu1 %v5168_v0  ;;  %4650 = vtanh.f32 %v2045_v24 }
 0x39c   : > { %v4629_v8 = vpop.eup %4628  ;;  %v5720_v30 = vpop.f32.mrf.mxu0  ;;  %3911 = vmatprep.subr.bf16.mxu1 %v5633_v4  ;;  %2811 = vmatprep.mubr.bf16.mxu0 %v5168_v0  ;;  %v2156_v11 = vadd.f32 %v3904_v29, %v5685_v34 }
 0x39d   : > { %v2147_v38 = vpop.f32.mrf.mxu1  ;;  %v4631_v39 = vpop.eup %4630  ;;  %4652 = vrcp.f32 %v2233_v2  ;;  %v3703_v43 = vmul.f32 -1.442695, %v2053_v35  ;;  %v2390_v42 = vmul.f32 %v4629_v8, %v4627_v32 }
 0x39e   : > { %v2148_v27 = vadd.f32 %v2147_v38, %v5685_v34  ;;  %v2056_v44 = vpop.f32.mrf.mxu0  ;;  %v2421_v49 = vmul.f32 %v4631_v39, %v4617_v7  ;;  %v4633_v51 = vpop.eup %4632  ;;  %4654 = vrcp.f32 %v2344_v16  ;;  %v3719_v56 = vmul.f32 -1.442695, %v2156_v11 }
 0x39f   : > { %v3905_v63 = vpop.f32.mrf.mxu1  ;;  %v2057_v46 = vadd.f32 %v2056_v44, %v5680_v31  ;;  %3919 = vmatpush1.bf16.msra.mxu1 %v5635_v61  ;;  %v4635_v4 = vpop.eup %4634  ;;  %v2343_v53 = vadd.f32 1.0, %v4633_v51  ;;  %4656 = vpow2.f32 %v3703_v43 }
 0x3a0   : > { %v3717_v52 = vmul.f32 -1.442695, %v2148_v27  ;;  %v2435_v47 = vpack.c.bf16 %v2421_v49, %v2420_v45  ;;  %3912 = vmatprep.subr.bf16.mxu1 %v5639_v6  ;;  %v4637_v54 = vpop.eup %4636  ;;  %4658 = vrcp.f32 %v2342_v33  ;;  %v2058_v7 = vpop.f32.mrf.mxu0  ;;  %v2159_v16 = vadd.f32 %v3905_v63, %v5685_v34 }
 0x3a1   : > { %v2150_v26 = vpop.f32.mrf.mxu1  ;;  %v4639_v57 = vpop.eup %4638  ;;  %4660 = vtanh.f32 %v2390_v42  ;;  %v3704_v6 = vmul.f32 -1.442695, %v2057_v46  ;;  %v2345_v37 = vadd.f32 1.0, %v4637_v54  ;;  %v2059_v45 = vadd.f32 %v2058_v7, %v5690_v10 }
 0x3a2   : > { %2699 = vmatmul.mubr.bf16.gmra.mxu1 %v2435_v47  ;;  %2812 = vmatmul.mubr.bf16.gmra.mxu0 %v2435_v47  ;;  %v4641_v41 = vpop.eup %4640  ;;  %v2391_v40 = vmul.f32 %v4639_v57, %v4635_v4  ;;  %4662 = vrcp.f32 %v2343_v53  ;;  %v2151_v12 = vadd.f32 %v2150_v26, %v5685_v34  ;;  %v3720_v42 = vmul.f32 -1.442695, %v2159_v16 }
 0x3a3   : > { %2708 = vmatprep.mubr.bf16.mxu1 %v5168_v0  ;;  %2821 = vmatprep.mubr.bf16.mxu0 %v5168_v0  ;;  %v2234_v5 = vadd.f32 1.0, %v4641_v41  ;;  %4664 = vpow2.f32 %v3717_v52 }
 0x3a4   : > { %v4643_v61 = vpop.eup %4642  ;;  %3920 = vmatpush1.bf16.msra.mxu1 %v5641_v14  ;;  %4666 = vtanh.f32 %v2391_v40  ;;  %v3718_v15 = vmul.f32 -1.442695, %v2151_v12 }
 0x3a5   : > { %3913 = vmatprep.subr.bf16.mxu1 %v5645_v17  ;;  %v4645_v48 = vpop.eup %4644  ;;  %4668 = vrcp.f32 %v2234_v5 }
 0x3a6   : > { %v4647_v13 = vpop.eup %4646  ;;  %v2392_v19 = vmul.f32 %v4645_v48, %v4643_v61  ;;  %4670 = vtanh.f32 %v2049_v1 }
 0x3a7   : > { %v4649_v22 = vpop.eup %4648  ;;  %v2235_v24 = vadd.f32 1.0, %v4647_v13  ;;  %4672 = vpow2.f32 %v3704_v6 }
 0x3a8   : > { %v2062_v36 = vpop.f32.mrf.mxu0  ;;  %3921 = vmatpush1.bf16.msra.mxu1 %v5647_v55  ;;  %v4651_v50 = vpop.eup %4650  ;;  %4674 = vrcp.f32 %v2345_v37  ;;  %v2055_v55 = vadd.f32 %v5720_v30, %v5690_v10 }
 0x3a9   : > { %v2063_v14 = vadd.f32 %v2062_v36, %v5680_v31  ;;  %3914 = vmatprep.subr.bf16.mxu1 %v5651_v18  ;;  %4676 = vrcp.f32 %v2235_v24 }
 0x3aa   : > { %v4653_v17 = vpop.eup %4652  ;;  %v5739_v29 = vpop.f32.mrf.mxu0  ;;  %4678 = vtanh.f32 %v2392_v19 }
 0x3ab   : > { %v2393_v32 = vmul.f32 %v4653_v17, %v4649_v22  ;;  %v3705_v2 = vmul.f32 -1.442695, %v2063_v14  ;;  %v5742_v35 = vpop.eup %4654  ;;  %4680 = vpow2.f32 %v3718_v15  ;;  %v2065_v13 = vadd.f32 %v5739_v29, %v5690_v10 }
 0x3ac   : > { %v2066_v8 = vpop.f32.mrf.mxu0  ;;  %3922 = vmatpush1.bf16.msra.mxu1 %v5653_v20  ;;  %v4657_v18 = vpop.eup %4656 }
 0x3ad   : > { %4682 = vtanh.f32 %v2393_v32  ;;  %v2067_v38 = vadd.f32 %v2066_v8, %v5680_v31  ;;  %3915 = vmatprep.subr.bf16.mxu1 %v5657_v23  ;;  %v4659_v39 = vpop.eup %4658  ;;  %v2236_v33 = vadd.f32 1.0, %v4657_v18 }
 0x3ae   : > { %4684 = vpow2.f32 %v3705_v2  ;;  %v4661_v43 = vpop.eup %4660  ;;  %v2068_v30 = vpop.f32.mrf.mxu0 }
 0x3af   : > { %4686 = vpow2.f32 %v3719_v56  ;;  %v3706_v27 = vmul.f32 -1.442695, %v2067_v38  ;;  %v4663_v44 = vpop.eup %4662  ;;  %v2422_v51 = vmul.f32 %v4661_v43, %v4659_v39  ;;  %v2069_v19 = vadd.f32 %v2068_v30, %v5690_v10 }
 0x3b0   : > { %4688 = vtanh.f32 %v2055_v55  ;;  %3923 = vmatpush1.bf16.msra.mxu1 %v5659_v25  ;;  %v4665_v63 = vpop.eup %4664 }
 0x3b1   : > { %4690 = vrcp.f32 %v2236_v33  ;;  %3916 = vmatprep.subr.bf16.mxu1 %v5663_v21  ;;  %v4667_v20 = vpop.eup %4666  ;;  %v2346_v49 = vadd.f32 1.0, %v4665_v63 }
 0x3b2   : > { %4692 = vpow2.f32 %v3706_v27  ;;  %v4669_v23 = vpop.eup %4668  ;;  %v2423_v46 = vmul.f32 %v4667_v20, %v4663_v44 }
 0x3b3   : > { %4694 = vpow2.f32 %v3720_v42  ;;  %v4671_v4 = vpop.eup %4670  ;;  %v2394_v47 = vmul.f32 %v4669_v23, %v4651_v50 }
 0x3b4   : > { %v2072_v53 = vpop.f32.mrf.mxu0  ;;  %v5752_v52 = vpop.f32.mrf.mxu1  ;;  %3924 = vmatpush1.bf16.msra.mxu1 %v5665_v9  ;;  %v2436_v21 = vpack.c.bf16 %v2423_v46, %v2422_v51  ;;  %4696 = vtanh.f32 %v2059_v45 }
 0x3b5   : > { %v4673_v25 = vpop.eup %4672  ;;  %v2073_v54 = vadd.f32 %v2072_v53, %v5680_v31  ;;  %3917 = vmatprep.subr.bf16.mxu1 %v5669_v60  ;;  %4698 = vrcp.f32 %v2346_v49  ;;  %v2172_v43 = vadd.f32 %v5752_v52, %v5685_v34 }
 0x3b6   : > { %v4675_v26 = vpop.eup %4674  ;;  %v2237_v57 = vadd.f32 1.0, %v4673_v25  ;;  %v5757_v41 = vpop.f32.mrf.mxu0  ;;  %2709 = vmatmul.mubr.bf16.gmra.mxu1 %v2436_v21  ;;  %2822 = vmatmul.mubr.bf16.gmra.mxu0 %v2436_v21 }
 0x3b7   : > { %v2163_v40 = vpop.f32.mrf.mxu1  ;;  %v4677_v1 = vpop.eup %4676  ;;  %v3707_v61 = vmul.f32 -1.442695, %v2073_v54  ;;  %2718 = vmatprep.mubr.bf16.mxu1 %v5168_v0  ;;  %2831 = vmatprep.mubr.bf16.mxu0 %v5168_v0  ;;  %v3723_v45 = vmul.f32 -1.442695, %v2172_v43  ;;  %v2075_v52 = vadd.f32 %v5757_v41, %v5690_v10 }
 0x3b8   : > { %v4679_v5 = vpop.eup %4678  ;;  %v2395_v9 = vmul.f32 %v4677_v1, %v4671_v4  ;;  %4700 = vrcp.f32 %v2237_v57  ;;  %v2076_v6 = vpop.f32.mrf.mxu0  ;;  %v2164_v12 = vadd.f32 %v2163_v40, %v5685_v34  ;;  %3925 = vmatpush1.bf16.msra.mxu1 %v5671_v28 }
 0x3b9   : > { %v3909_v7 = vpop.f32.mrf.mxu1  ;;  %v4681_v60 = vpop.eup %4680  ;;  %4702 = vtanh.f32 %v2394_v47  ;;  %v2077_v22 = vadd.f32 %v2076_v6, %v5680_v31  ;;  %v2424_v50 = vmul.f32 %v4679_v5, %v5742_v35 }
 0x3ba   : > { %v4683_v37 = vpop.eup %4682  ;;  %4704 = vtanh.f32 %v2395_v9  ;;  %v2347_v48 = vadd.f32 1.0, %v4681_v60  ;;  %v3721_v17 = vmul.f32 -1.442695, %v2164_v12  ;;  %v2175_v30 = vadd.f32 %v3909_v7, %v5685_v34  ;;  %v2078_v46 = vpop.f32.mrf.mxu0 }
 0x3bb   : > { %v4685_v11 = vpop.eup %4684  ;;  %4706 = vpow2.f32 %v3707_v61  ;;  %v2166_v24 = vpop.f32.mrf.mxu1  ;;  %v2425_v14 = vmul.f32 %v4683_v37, %v4675_v26  ;;  %v3708_v2 = vmul.f32 -1.442695, %v2077_v22  ;;  %v2079_v21 = vadd.f32 %v2078_v46, %v5690_v10 }
 0x3bc   : > { %v4687_v15 = vpop.eup %4686  ;;  %4708 = vrcp.f32 %v2347_v48  ;;  %v2238_v36 = vadd.f32 1.0, %v4685_v11  ;;  %v2167_v32 = vadd.f32 %v2166_v24, %v5685_v34  ;;  %v3724_v51 = vmul.f32 -1.442695, %v2175_v30 }
 0x3bd   : > { %v4689_v28 = vpop.eup %4688  ;;  %v2437_v16 = vpack.c.bf16 %v2425_v14, %v2424_v50  ;;  %v2348_v8 = vadd.f32 1.0, %v4687_v15  ;;  %v2490_v30 = vsub.s32 3, %v5425_v58 }
 0x3be   : > { %v4691_v56 = vpop.eup %4690  ;;  %4710 = vrcp.f32 %v2238_v36  ;;  %v3722_v35 = vmul.f32 -1.442695, %v2167_v32 }
 0x3bf   : > { %v4693_v29 = vpop.eup %4692  ;;  %4712 = vtanh.f32 %v2065_v13  ;;  %2719 = vmatmul.mubr.bf16.gmra.mxu1 %v2437_v16  ;;  %2832 = vmatmul.mubr.bf16.gmra.mxu0 %v2437_v16  ;;  %v2396_v18 = vmul.f32 %v4691_v56, %v4689_v28 }
 0x3c0   : > { %v4695_v55 = vpop.eup %4694  ;;  %v2239_v31 = vadd.f32 1.0, %v4693_v29  ;;  %4714 = vtanh.f32 %v2069_v19  ;;  %2728 = vmatprep.mubr.bf16.mxu1 %v5168_v0  ;;  %2841 = vmatprep.mubr.bf16.mxu0 %v5168_v0 }
 0x3c1   : > { %4716 = vpow2.f32 %v3721_v17  ;;  %v4697_v38 = vpop.eup %4696  ;;  %v2349_v39 = vadd.f32 1.0, %v4695_v55 }
 0x3c2   : > { %4718 = vrcp.f32 %v2239_v31  ;;  %v4699_v33 = vpop.eup %4698 }
 0x3c3   : > { %4720 = vpow2.f32 %v3708_v2 }
 0x3c4   : > { %4722 = vrcp.f32 %v2348_v8 }
 0x3c5   : > { %v4701_v42 = vpop.eup %4700  ;;  %4724 = vtanh.f32 %v2396_v18 }
 0x3c6   : > { %v4703_v27 = vpop.eup %4702  ;;  %v2397_v44 = vmul.f32 %v4701_v42, %v4697_v38  ;;  %4726 = vpow2.f32 %v3722_v35  ;;  %v2474_v42 = vld [vmem:[%s6499_s8] sm:$0xf] }
 0x3c7   : > { %v4705_v63 = vpop.eup %4704  ;;  %4728 = vrcp.f32 %v2349_v39  ;;  %v2426_v4 = vmul.f32 %v4703_v27, %v4699_v33  ;;  %v5787_v27 = vrot.slane %v2474_v42, %v5428_v59  ;;  %v5802_v59 = vrot.slane %v2474_v42, %v2490_v30 }
 0x3c8   : > { %v4707_v20 = vpop.eup %4706  ;;  %4730 = vtanh.f32 %v2397_v44  ;;  %v5790_v44 = vrot.slane %v2474_v42, %v5444_v3 }
 0x3c9   : > { %v4709_v23 = vpop.eup %4708  ;;  %v2240_v49 = vadd.f32 1.0, %v4707_v20  ;;  %4732 = vpow2.f32 %v3723_v45  ;;  %v5794_v45 = vrot.slane %v2474_v42, %v5437_v62 }
 0x3ca   : > { %v2427_v53 = vmul.f32 %v4709_v23, %v4705_v63 }
 0x3cb   : > { %v4711_v25 = vpop.eup %4710  ;;  %4734 = vrcp.f32 %v2240_v49 }
 0x3cc   : > { %v4713_v47 = vpop.eup %4712  ;;  %v2438_v54 = vpack.c.bf16 %v2427_v53, %v2426_v4  ;;  %4736 = vpow2.f32 %v3724_v51 }
 0x3cd   : > { %v4715_v34 = vpop.eup %4714  ;;  %v2398_v57 = vmul.f32 %v4713_v47, %v4711_v25  ;;  %4738 = vtanh.f32 %v2075_v52 }
 0x3ce   : > { %v4717_v26 = vpop.eup %4716  ;;  %2729 = vmatmul.mubr.bf16.gmra.mxu1 %v2438_v54  ;;  %2842 = vmatmul.mubr.bf16.gmra.mxu0 %v2438_v54  ;;  %4740 = vtanh.f32 %v2079_v21 }
 0x3cf   : > { %v4719_v40 = vpop.eup %4718  ;;  %2738 = vmatprep.mubr.bf16.mxu1 %v5168_v0  ;;  %2851 = vmatprep.mubr.bf16.mxu0 %v5168_v0  ;;  %v2350_v5 = vadd.f32 1.0, %v4717_v26  ;;  %4742 = vtanh.f32 %v2398_v57 }
 0x3d0   : > { %v4721_v1 = vpop.eup %4720  ;;  %v2399_v41 = vmul.f32 %v4719_v40, %v4715_v34 }
 0x3d1   : > { %v4723_v61 = vpop.eup %4722  ;;  %v2241_v9 = vadd.f32 1.0, %v4721_v1 }
 0x3d2   : > { %v4725_v6 = vpop.eup %4724 }
 0x3d3   : > { %v4727_v10 = vpop.eup %4726  ;;  %4744 = vrcp.f32 %v2241_v9  ;;  %v2428_v37 = vmul.f32 %v4725_v6, %v4723_v61 }
 0x3d4   : > { %v4729_v7 = vpop.eup %4728  ;;  %4746 = vtanh.f32 %v2399_v41  ;;  %v2351_v60 = vadd.f32 1.0, %v4727_v10 }
 0x3d5   : > { %v4731_v12 = vpop.eup %4730  ;;  %4748 = vrcp.f32 %v2350_v5 }
 0x3d6   : > { %4750 = vrcp.f32 %v2351_v60  ;;  %v2429_v48 = vmul.f32 %v4731_v12, %v4729_v7  ;;  %v4733_v13 = vpop.eup %4732 }
 0x3d7   : > { %v2352_v15 = vadd.f32 1.0, %v4733_v13 }
 0x3d8   : > { %v2439_v11 = vpack.c.bf16 %v2429_v48, %v2428_v37  ;;  %v4735_v19 = vpop.eup %4734 }
 0x3d9   : > { %v4737_v22 = vpop.eup %4736  ;;  %4752 = vrcp.f32 %v2352_v15 }
 0x3da   : > { %2739 = vmatmul.mubr.bf16.gmra.mxu1 %v2439_v11  ;;  %2852 = vmatmul.mubr.bf16.gmra.mxu0 %v2439_v11  ;;  %v4739_v24 = vpop.eup %4738  ;;  %v2353_v14 = vadd.f32 1.0, %v4737_v22 }
 0x3db   : > { %2748 = vmatprep.mubr.bf16.mxu1 %v5168_v0  ;;  %v2400_v36 = vmul.f32 %v4739_v24, %v4735_v19  ;;  %v4741_v50 = vpop.eup %4740 }
 0x3dc   : > { %v4743_v28 = vpop.eup %4742 }
 0x3dd   : > { %4754 = vtanh.f32 %v2400_v36 }
 0x3de   : > { %4756 = vrcp.f32 %v2353_v14 }
 0x3e0   : > { %v4745_v17 = vpop.eup %4744 }
 0x3e1   : > { %v4747_v56 = vpop.eup %4746  ;;  %v2401_v32 = vmul.f32 %v4745_v17, %v4741_v50 }
 0x3e2   : > { %v4749_v16 = vpop.eup %4748 }
 0x3e3   : > { %v4751_v29 = vpop.eup %4750  ;;  %4758 = vtanh.f32 %v2401_v32  ;;  %v2430_v2 = vmul.f32 %v4749_v16, %v4743_v28 }
 0x3e4   : > { %v2431_v55 = vmul.f32 %v4751_v29, %v4747_v56 }
 0x3e6   : > { %v2440_v8 = vpack.c.bf16 %v2431_v55, %v2430_v2  ;;  %v4753_v31 = vpop.eup %4752 }
 0x3e8   : > { %2749 = vmatmul.mubr.bf16.gmra.mxu1 %v2440_v8 }
 0x3e9   : > { %2758 = vmatprep.mubr.bf16.mxu1 %v5168_v0 }
 0x3ea   : > { %v4755_v18 = vpop.eup %4754 }
 0x3eb   : > { %v4757_v35 = vpop.eup %4756  ;;  %v2432_v39 = vmul.f32 %v4755_v18, %v4753_v31 }
 0x3f0   : > { %v4759_v38 = vpop.eup %4758 }
 0x3f1   : > { %v2433_v33 = vmul.f32 %v4759_v38, %v4757_v35 }
 0x3f3   : > { %v2441_v43 = vpack.c.bf16 %v2433_v33, %v2432_v39 }
 0x3f5   : > { %2759 = vmatmul.mubr.bf16.gmra.mxu1 %v2441_v43 }
 0x3f6   : > { %2861 = vmatprep.mubr.bf16.mxu1 %v5168_v0 }
 0x3fd   : > { %2862 = vmatmul.mubr.bf16.vlgmr.msra.gmra.mxu1 %v2440_v8 }
 0x3fe   : > { %2871 = vmatprep.mubr.bf16.mxu1 %v5168_v0 }
 0x405   : > { %2872 = vmatmul.mubr.bf16.gmra.mxu1 %v2441_v43 }
 0x45a   : > { %v2690_v63 = vpop.f32.mrf.mxu1  ;;  %v2803_v20 = vpop.f32.mrf.mxu0 }
 0x45b   : > { %v5797_v49 = vadd.f32 %v2690_v63, %v5787_v27  ;;  %v5805_v4 = vadd.f32 %v2803_v20, %v5794_v45 }
 0x45c   : > { %v2692_v23 = vpop.f32.mrf.mxu1  ;;  %v2805_v0 = vpop.f32.mrf.mxu0 }
 0x45d   : > { %v5800_v51 = vadd.f32 %v2692_v23, %v5790_v44  ;;  %v5810_v25 = vadd.f32 %v2805_v0, %v5802_v59 }
 0x45e   : > { %v2694_v46 = vpop.f32.mrf.mxu1  ;;  %v2807_v3 = vpop.f32.mrf.mxu0 }
 0x45f   : > { %v2882_v58 = vmax.f32 %v5797_v49, %v5800_v51  ;;  %v5813_v52 = vadd.f32 %v2694_v46, %v5787_v27  ;;  %v5820_v26 = vadd.f32 %v2807_v3, %v5794_v45 }
 0x460   : > { %v2696_v62 = vpop.f32.mrf.mxu1  ;;  %v2809_v53 = vpop.f32.mrf.mxu0 }
 0x461   : > { %v5816_v47 = vadd.f32 %v2696_v62, %v5790_v44  ;;  %v2883_v54 = vmax.f32 %v2882_v58, %v5805_v4  ;;  %v5826_v61 = vadd.f32 %v2809_v53, %v5802_v59 }
 0x462   : > { %v2700_v34 = vpop.f32.mrf.mxu1  ;;  %v2813_v21 = vpop.f32.mrf.mxu0 }
 0x463   : > { %v2887_v57 = vmax.f32 %v5813_v52, %v5816_v47  ;;  %v2884_v40 = vmax.f32 %v2883_v54, %v5810_v25  ;;  %v5829_v5 = vadd.f32 %v2700_v34, %v5787_v27  ;;  %v5836_v60 = vadd.f32 %v2813_v21, %v5794_v45 }
 0x464   : > { %v2702_v1 = vpop.f32.mrf.mxu1  ;;  %v2815_v41 = vpop.f32.mrf.mxu0 }
 0x465   : > { %v5832_v9 = vadd.f32 %v2702_v1, %v5790_v44  ;;  %2885 = vmax.xlane.f32.xlu0 %v2884_v40  ;;  %v2888_v6 = vmax.f32 %v2887_v57, %v5820_v26  ;;  %v5842_v11 = vadd.f32 %v2815_v41, %v5802_v59 }
 0x466   : > { %v2704_v10 = vpop.f32.mrf.mxu1  ;;  %v2817_v7 = vpop.f32.mrf.mxu0 }
 0x467   : > { %v2892_v12 = vmax.f32 %v5829_v5, %v5832_v9  ;;  %v2889_v37 = vmax.f32 %v2888_v6, %v5826_v61  ;;  %v5845_v13 = vadd.f32 %v2704_v10, %v5787_v27  ;;  %v5852_v15 = vadd.f32 %v2817_v7, %v5794_v45 }
 0x468   : > { %v2706_v48 = vpop.f32.mrf.mxu1  ;;  %v2819_v24 = vpop.f32.mrf.mxu0 }
 0x469   : > { %v5848_v19 = vadd.f32 %v2706_v48, %v5790_v44  ;;  %2890 = vmax.xlane.f32.xlu0 %v2889_v37  ;;  %v2893_v22 = vmax.f32 %v2892_v12, %v5836_v60  ;;  %v5858_v14 = vadd.f32 %v2819_v24, %v5802_v59 }
 0x46b   : > { %v2897_v36 = vmax.f32 %v5845_v13, %v5848_v19  ;;  %v2894_v50 = vmax.f32 %v2893_v22, %v5842_v11 }
 0x46d   : > { %2895 = vmax.xlane.f32.xlu1 %v2894_v50  ;;  %v2898_v28 = vmax.f32 %v2897_v36, %v5852_v15 }
 0x46f   : > { %v2899_v17 = vmax.f32 %v2898_v28, %v5858_v14 }
 0x471   : > { %2900 = vmax.xlane.f32.xlu1 %v2899_v17 }
 0x476   : > { %v2710_v56 = vpop.f32.mrf.mxu1  ;;  %v2823_v32 = vpop.f32.mrf.mxu0 }
 0x477   : > { %v5863_v2 = vadd.f32 %v2710_v56, %v5787_v27  ;;  %v5869_v18 = vadd.f32 %v2823_v32, %v5794_v45 }
 0x478   : > { %v2712_v16 = vpop.f32.mrf.mxu1  ;;  %v2825_v29 = vpop.f32.mrf.mxu0 }
 0x479   : > { %v5866_v55 = vadd.f32 %v2712_v16, %v5790_v44  ;;  %v5874_v33 = vadd.f32 %v2825_v29, %v5802_v59 }
 0x47a   : > { %v2714_v8 = vpop.f32.mrf.mxu1  ;;  %v2827_v31 = vpop.f32.mrf.mxu0 }
 0x47b   : > { %v2902_v35 = vmax.f32 %v5863_v2, %v5866_v55  ;;  %v5877_v43 = vadd.f32 %v2714_v8, %v5787_v27  ;;  %v5884_v63 = vadd.f32 %v2827_v31, %v5794_v45 }
 0x47c   : > { %v2716_v38 = vpop.f32.mrf.mxu1  ;;  %v2829_v39 = vpop.f32.mrf.mxu0 }
 0x47d   : > { %v5880_v42 = vadd.f32 %v2716_v38, %v5790_v44  ;;  %v2903_v30 = vmax.f32 %v2902_v35, %v5869_v18  ;;  %v5890_v3 = vadd.f32 %v2829_v39, %v5802_v59 }
 0x47f   : > { %v2907_v20 = vmax.f32 %v5877_v43, %v5880_v42  ;;  %v2720_v23 = vpop.f32.mrf.mxu1  ;;  %v2833_v0 = vpop.f32.mrf.mxu0  ;;  %v2904_v46 = vmax.f32 %v2903_v30, %v5874_v33 }
 0x480   : > { %v5894_v54 = vadd.f32 %v2720_v23, %v5787_v27  ;;  %v5901_v1 = vadd.f32 %v2833_v0, %v5794_v45 }
 0x481   : > { %v2722_v58 = vpop.f32.mrf.mxu1  ;;  %v2835_v62 = vpop.f32.mrf.mxu0  ;;  %2905 = vmax.xlane.f32.xlu0 %v2904_v46  ;;  %v2908_v53 = vmax.f32 %v2907_v20, %v5884_v63 }
 0x482   : > { %v5897_v34 = vadd.f32 %v2722_v58, %v5790_v44  ;;  %v5906_v10 = vadd.f32 %v2835_v62, %v5802_v59 }
 0x483   : > { %v2724_v21 = vpop.f32.mrf.mxu1  ;;  %v2837_v57 = vpop.f32.mrf.mxu0  ;;  %v2909_v40 = vmax.f32 %v2908_v53, %v5890_v3 }
 0x484   : > { %v2912_v41 = vmax.f32 %v5894_v54, %v5897_v34  ;;  %v5909_v7 = vadd.f32 %v2724_v21, %v5787_v27  ;;  %v5916_v22 = vadd.f32 %v2837_v57, %v5794_v45 }
 0x485   : > { %v2726_v6 = vpop.f32.mrf.mxu1  ;;  %2910 = vmax.xlane.f32.xlu1 %v2909_v40  ;;  %v2839_v48 = vpop.f32.mrf.mxu0 }
 0x486   : > { %v5912_v12 = vadd.f32 %v2726_v6, %v5790_v44  ;;  %v2913_v37 = vmax.f32 %v2912_v41, %v5901_v1  ;;  %v5922_v50 = vadd.f32 %v2839_v48, %v5802_v59 }
 0x488   : > { %v2917_v24 = vmax.f32 %v5909_v7, %v5912_v12  ;;  %v2914_v36 = vmax.f32 %v2913_v37, %v5906_v10 }
 0x48a   : > { %2915 = vmax.xlane.f32.xlu0 %v2914_v36  ;;  %v2918_v28 = vmax.f32 %v2917_v24, %v5916_v22 }
 0x48c   : > { %v2919_v17 = vmax.f32 %v2918_v28, %v5922_v50 }
 0x48e   : > { %v2730_v56 = vpop.f32.mrf.mxu1  ;;  %v2843_v32 = vpop.f32.mrf.mxu0  ;;  %2920 = vmax.xlane.f32.xlu1 %v2919_v17 }
 0x48f   : > { %v5927_v8 = vadd.f32 %v2730_v56, %v5787_v27  ;;  %v5933_v39 = vadd.f32 %v2843_v32, %v5794_v45 }
 0x490   : > { %v2732_v16 = vpop.f32.mrf.mxu1  ;;  %v2845_v29 = vpop.f32.mrf.mxu0 }
 0x491   : > { %v5930_v31 = vadd.f32 %v2732_v16, %v5790_v44  ;;  %v5938_v23 = vadd.f32 %v2845_v29, %v5802_v59 }
 0x492   : > { %v2734_v35 = vpop.f32.mrf.mxu1  ;;  %v2847_v38 = vpop.f32.mrf.mxu0 }
 0x493   : > { %v2922_v30 = vmax.f32 %v5927_v8, %v5930_v31  ;;  %v5941_v0 = vadd.f32 %v2734_v35, %v5787_v27  ;;  %v5948_v53 = vadd.f32 %v2847_v38, %v5794_v45 }
 0x494   : > { %v2736_v20 = vpop.f32.mrf.mxu1  ;;  %v2849_v62 = vpop.f32.mrf.mxu0 }
 0x495   : > { %v5944_v46 = vadd.f32 %v2736_v20, %v5790_v44  ;;  %v2923_v58 = vmax.f32 %v2922_v30, %v5933_v39  ;;  %v5954_v40 = vadd.f32 %v2849_v62, %v5802_v59 }
 0x497   : > { %v2927_v21 = vmax.f32 %v5941_v0, %v5944_v46  ;;  %v2924_v57 = vmax.f32 %v2923_v58, %v5938_v23 }
 0x499   : > { %2925 = vmax.xlane.f32.xlu0 %v2924_v57  ;;  %v2928_v41 = vmax.f32 %v2927_v21, %v5948_v53 }
 0x49a   : > { %v2740_v6 = vpop.f32.mrf.mxu1  ;;  %v2853_v37 = vpop.f32.mrf.mxu0 }
 0x49b   : > { %v2929_v48 = vmax.f32 %v2928_v41, %v5954_v40  ;;  %v5959_v28 = vadd.f32 %v2740_v6, %v5787_v27  ;;  %v5965_v16 = vadd.f32 %v2853_v37, %v5794_v45 }
 0x49c   : > { %v2742_v24 = vpop.f32.mrf.mxu1  ;;  %v2855_v36 = vpop.f32.mrf.mxu0 }
 0x49d   : > { %v5962_v17 = vadd.f32 %v2742_v24, %v5790_v44  ;;  %2930 = vmax.xlane.f32.xlu1 %v2929_v48  ;;  %6560 = vst [vmem:[#allocation19_spill] sm:$0xff] %v5965_v16  ;;  %v5970_v38 = vadd.f32 %v2855_v36, %v5802_v59 }
 0x49e   : > { %v2744_v56 = vpop.f32.mrf.mxu1  ;;  %v2857_v32 = vpop.f32.mrf.mxu0 }
 0x49f   : > { %v2932_v29 = vmax.f32 %v5959_v28, %v5962_v17  ;;  %6561 = vst [vmem:[#allocation20_spill] sm:$0xff] %v5970_v38  ;;  %v5973_v30 = vadd.f32 %v2744_v56, %v5787_v27  ;;  %v5980_v21 = vadd.f32 %v2857_v32, %v5794_v45 }
 0x4a0   : > { %v2746_v35 = vpop.f32.mrf.mxu1  ;;  %v2859_v62 = vpop.f32.mrf.mxu0 }
 0x4a1   : > { %6562 = vst [vmem:[#allocation21_spill] sm:$0xff] %v5973_v30  ;;  %v5976_v20 = vadd.f32 %v2746_v35, %v5790_v44  ;;  %v2933_v58 = vmax.f32 %v2932_v29, %v5965_v16  ;;  %6564 = vst [vmem:[#allocation23_spill] sm:$0xff] %v5980_v21  ;;  %v5986_v6 = vadd.f32 %v2859_v62, %v5802_v59 }
 0x4a3   : > { %6563 = vst [vmem:[#allocation22_spill] sm:$0xff] %v5976_v20  ;;  %v2937_v57 = vmax.f32 %v5973_v30, %v5976_v20  ;;  %v2934_v41 = vmax.f32 %v2933_v58, %v5970_v38  ;;  %6565 = vst [vmem:[#allocation24_spill] sm:$0xff] %v5986_v6 }
 0x4a5   : > { %2935 = vmax.xlane.f32.xlu0 %v2934_v41  ;;  %v2938_v37 = vmax.f32 %v2937_v57, %v5980_v21 }
 0x4a7   : > { %v2939_v48 = vmax.f32 %v2938_v37, %v5986_v6 }
 0x4a8   : > { %v2750_v24 = vpop.f32.mrf.mxu1 }
 0x4a9   : > { %2940 = vmax.xlane.f32.xlu1 %v2939_v48  ;;  %v5994_v62 = vadd.f32 %v2750_v24, %v5787_v27 }
 0x4aa   : > { %v2752_v36 = vpop.f32.mrf.mxu1 }
 0x4ab   : > { %v5991_v20 = vadd.f32 %v2752_v36, %v5790_v44  ;;  %6567 = vst [vmem:[#allocation26_spill] sm:$0xff] %v5994_v62 }
 0x4ac   : > { %v2754_v56 = vpop.f32.mrf.mxu1 }
 0x4ad   : > { %6566 = vst [vmem:[#allocation25_spill] sm:$0xff] %v5991_v20  ;;  %v2942_v57 = vmax.f32 %v5994_v62, %v5991_v20  ;;  %v6005_v21 = vadd.f32 %v2754_v56, %v5787_v27 }
 0x4ae   : > { %v2756_v29 = vpop.f32.mrf.mxu1 }
 0x4af   : > { %v5999_v37 = vadd.f32 %v2756_v29, %v5790_v44  ;;  %6570 = vst [vmem:[#allocation29_spill] sm:$0xff] %v6005_v21 }
 0x4b1   : > { %6568 = vst [vmem:[#allocation27_spill] sm:$0xff] %v5999_v37  ;;  %v2947_v38 = vmax.f32 %v6005_v21, %v5999_v37 }
 0x4b5   : > { %v2760_v32 = vpop.f32.mrf.mxu1 }
 0x4b6   : > { %v6021_v56 = vadd.f32 %v2760_v32, %v5787_v27 }
 0x4b7   : > { %v2762_v35 = vpop.f32.mrf.mxu1 }
 0x4b8   : > { %v6014_v20 = vadd.f32 %v2762_v35, %v5790_v44 }
 0x4b9   : > { %v2764_v16 = vpop.f32.mrf.mxu1 }
 0x4ba   : > { %6571 = vst [vmem:[#allocation30_spill] sm:$0xff] %v6014_v20  ;;  %v2952_v35 = vmax.f32 %v6021_v56, %v6014_v20  ;;  %v6037_v21 = vadd.f32 %v2764_v16, %v5787_v27 }
 0x4bb   : > { %v2766_v58 = vpop.f32.mrf.mxu1 }
 0x4bc   : > { %v6030_v37 = vadd.f32 %v2766_v58, %v5790_v44 }
 0x4bd   : > { %v2863_v41 = vpop.f32.mrf.mxu1 }
 0x4be   : > { %v6002_v48 = vadd.f32 %v2863_v41, %v5794_v45  ;;  %v2957_v44 = vmax.f32 %v6037_v21, %v6030_v37 }
 0x4bf   : > { %v2865_v6 = vpop.f32.mrf.mxu1 }
 0x4c0   : > { %6569 = vst [vmem:[#allocation28_spill] sm:$0xff] %v6002_v48  ;;  %v2943_v36 = vmax.f32 %v2942_v57, %v6002_v48  ;;  %v6009_v30 = vadd.f32 %v2865_v6, %v5802_v59 }
 0x4c1   : > { %v2867_v24 = vpop.f32.mrf.mxu1 }
 0x4c2   : > { %v6017_v29 = vadd.f32 %v2867_v24, %v5794_v45  ;;  %v2944_v41 = vmax.f32 %v2943_v36, %v6009_v30 }
 0x4c3   : > { %v2869_v62 = vpop.f32.mrf.mxu1 }
 0x4c4   : > { %v2948_v57 = vmax.f32 %v2947_v38, %v6017_v29  ;;  %v6025_v6 = vadd.f32 %v2869_v62, %v5802_v59  ;;  %2945 = vmax.xlane.f32.xlu0 %v2944_v41 }
 0x4c5   : > { %v2873_v48 = vpop.f32.mrf.mxu1 }
 0x4c6   : > { %v6033_v24 = vadd.f32 %v2873_v48, %v5794_v45  ;;  %v2949_v36 = vmax.f32 %v2948_v57, %v6025_v6 }
 0x4c7   : > { %v2875_v32 = vpop.f32.mrf.mxu1 }
 0x4c8   : > { %v2953_v38 = vmax.f32 %v2952_v35, %v6033_v24  ;;  %v6041_v62 = vadd.f32 %v2875_v32, %v5802_v59  ;;  %2950 = vmax.xlane.f32.xlu1 %v2949_v36 }
 0x4c9   : > { %v2877_v41 = vpop.f32.mrf.mxu1 }
 0x4ca   : > { %v6046_v58 = vadd.f32 %v2877_v41, %v5794_v45  ;;  %v2954_v48 = vmax.f32 %v2953_v38, %v6041_v62 }
 0x4cb   : > { %v2879_v57 = vpop.f32.mrf.mxu1 }
 0x4cc   : > { %v2958_v20 = vmax.f32 %v2957_v44, %v6046_v58  ;;  %v6051_v27 = vadd.f32 %v2879_v57, %v5802_v59  ;;  %2955 = vmax.xlane.f32.xlu0 %v2954_v48 }
 0x4ce   : > { %v2959_v16 = vmax.f32 %v2958_v20, %v6051_v27 }
 0x4d0   : > { %2960 = vmax.xlane.f32.xlu1 %v2959_v16 }
 0x4ee   : > { %v2886_v35 = vpop.xlane.xlu0 %2885 }
 0x4ef   : > { %v6055_v36 = vsub.f32 %v5797_v49, %v2886_v35  ;;  %v6058_v32 = vsub.f32 %v5800_v51, %v2886_v35  ;;  %v6061_v45 = vsub.f32 %v5805_v4, %v2886_v35  ;;  %v6064_v38 = vsub.f32 %v5810_v25, %v2886_v35 }
 0x4f1   : > { %v3026_v59 = vmul.f32 1.442695, %v6055_v36  ;;  %v3028_v41 = vmul.f32 1.442695, %v6058_v32  ;;  %v3030_v20 = vmul.f32 1.442695, %v6061_v45 }
 0x4f2   : > { %v3032_v44 = vmul.f32 1.442695, %v6064_v38  ;;  %v2891_v48 = vpop.xlane.xlu0 %2890 }
 0x4f3   : > { %4760 = vpow2.f32 %v3026_v59  ;;  %v6071_v49 = vsub.f32 %v5813_v52, %v2891_v48  ;;  %v6074_v51 = vsub.f32 %v5816_v47, %v2891_v48  ;;  %v6077_v4 = vsub.f32 %v5820_v26, %v2891_v48 }
 0x4f4   : > { %4762 = vpow2.f32 %v3028_v41  ;;  %v6080_v25 = vsub.f32 %v5826_v61, %v2891_v48 }
 0x4f5   : > { %6572 = vst [vmem:[#allocation31_spill] sm:$0xff] %v6077_v4  ;;  %4764 = vpow2.f32 %v3030_v20  ;;  %v3034_v57 = vmul.f32 1.442695, %v6071_v49  ;;  %v3036_v16 = vmul.f32 1.442695, %v6074_v51 }
 0x4f6   : > { %6573 = vst [vmem:[#allocation32_spill] sm:$0xff] %v6080_v25  ;;  %v3038_v35 = vmul.f32 1.442695, %v6077_v4  ;;  %4766 = vpow2.f32 %v3032_v44  ;;  %v3040_v52 = vmul.f32 1.442695, %v6080_v25  ;;  %v2896_v59 = vpop.xlane.xlu1 %2895 }
 0x4f7   : > { %4768 = vpow2.f32 %v3034_v57  ;;  %v6087_v47 = vsub.f32 %v5829_v5, %v2896_v59  ;;  %v6090_v26 = vsub.f32 %v5832_v9, %v2896_v59  ;;  %v6093_v61 = vsub.f32 %v5836_v60, %v2896_v59 }
 0x4f8   : > { %4770 = vpow2.f32 %v3036_v16  ;;  %v6096_v41 = vsub.f32 %v5842_v11, %v2896_v59 }
 0x4f9   : > { %6574 = vst [vmem:[#allocation33_spill] sm:$0xff] %v6087_v47  ;;  %6575 = vst [vmem:[#allocation34_spill] sm:$0xff] %v6090_v26  ;;  %4772 = vpow2.f32 %v3038_v35  ;;  %v3042_v20 = vmul.f32 1.442695, %v6087_v47  ;;  %v3044_v44 = vmul.f32 1.442695, %v6090_v26 }
 0x4fa   : > { %6576 = vst [vmem:[#allocation35_spill] sm:$0xff] %v6093_v61  ;;  %6577 = vst [vmem:[#allocation36_spill] sm:$0xff] %v6096_v41  ;;  %4774 = vpow2.f32 %v3040_v52  ;;  %v3046_v48 = vmul.f32 1.442695, %v6093_v61  ;;  %v2901_v5 = vpop.xlane.xlu1 %2900  ;;  %v3048_v11 = vmul.f32 1.442695, %v6096_v41 }
 0x4fb   : > { %4776 = vpow2.f32 %v3042_v20  ;;  %v6102_v9 = vsub.f32 %v5845_v13, %v2901_v5  ;;  %v6105_v60 = vsub.f32 %v5848_v19, %v2901_v5  ;;  %v6108_v57 = vsub.f32 %v5852_v15, %v2901_v5 }
 0x4fc   : > { %4778 = vpow2.f32 %v3044_v44  ;;  %v6112_v16 = vsub.f32 %v5858_v14, %v2901_v5 }
 0x4fd   : > { %6578 = vst [vmem:[#allocation37_spill] sm:$0xff] %v6102_v9  ;;  %6579 = vst [vmem:[#allocation38_spill] sm:$0xff] %v6105_v60  ;;  %v3050_v35 = vmul.f32 1.442695, %v6102_v9  ;;  %v3052_v52 = vmul.f32 1.442695, %v6105_v60  ;;  %4780 = vpow2.f32 %v3046_v48 }
 0x4fe   : > { %6580 = vst [vmem:[#allocation39_spill] sm:$0xff] %v6108_v57  ;;  %6581 = vst [vmem:[#allocation40_spill] sm:$0xff] %v6112_v16  ;;  %v3054_v13 = vmul.f32 1.442695, %v6108_v57  ;;  %v3056_v15 = vmul.f32 1.442695, %v6112_v16 }
 0x4ff   : > { %4782 = vpow2.f32 %v3050_v35 }
 0x500   : > { %v4761_v59 = vpop.eup %4760  ;;  %4784 = vpow2.f32 %v3052_v52 }
 0x501   : > { %v4763_v19 = vpop.eup %4762  ;;  %4786 = vpow2.f32 %v3048_v11 }
 0x502   : > { %v4765_v20 = vpop.eup %4764  ;;  %v3154_v44 = vadd.f32 %v4763_v19, %v4761_v59  ;;  %4788 = vpow2.f32 %v3054_v13 }
 0x503   : > { %v4767_v41 = vpop.eup %4766  ;;  %4790 = vpow2.f32 %v3056_v15 }
 0x504   : > { %v4769_v14 = vpop.eup %4768  ;;  %v3155_v5 = vadd.f32 %v4765_v20, %v3154_v44 }
 0x505   : > { %v4771_v61 = vpop.eup %4770 }
 0x506   : > { %v4773_v9 = vpop.eup %4772  ;;  %v3156_v60 = vadd.f32 %v4767_v41, %v3155_v5  ;;  %v3159_v48 = vadd.f32 %v4771_v61, %v4769_v14 }
 0x507   : > { %v4775_v35 = vpop.eup %4774 }
 0x508   : > { %v4777_v26 = vpop.eup %4776  ;;  %3157 = vadd.xlane.f32.xlu0 %v3156_v60  ;;  %v3160_v57 = vadd.f32 %v4773_v9, %v3159_v48 }
 0x509   : > { %v4779_v52 = vpop.eup %4778 }
 0x50a   : > { %v3161_v47 = vadd.f32 %v4775_v35, %v3160_v57  ;;  %v3164_v11 = vadd.f32 %v4779_v52, %v4777_v26  ;;  %v4781_v25 = vpop.eup %4780  ;;  %v2906_v16 = vpop.xlane.xlu0 %2905 }
 0x50b   : > { %v6119_v59 = vsub.f32 %v5863_v2, %v2906_v16  ;;  %v6122_v13 = vsub.f32 %v5866_v55, %v2906_v16  ;;  %v6125_v19 = vsub.f32 %v5869_v18, %v2906_v16  ;;  %v6128_v9 = vsub.f32 %v5874_v33, %v2906_v16 }
 0x50c   : > { %v4783_v4 = vpop.eup %4782  ;;  %3162 = vadd.xlane.f32.xlu1 %v3161_v47  ;;  %v3165_v41 = vadd.f32 %v4781_v25, %v3164_v11 }
 0x50d   : > { %v4785_v61 = vpop.eup %4784  ;;  %v3058_v26 = vmul.f32 1.442695, %v6119_v59  ;;  %v3060_v57 = vmul.f32 1.442695, %v6122_v13  ;;  %v3062_v2 = vmul.f32 1.442695, %v6125_v19 }
 0x50e   : > { %v4787_v60 = vpop.eup %4786  ;;  %v3169_v15 = vadd.f32 %v4785_v61, %v4783_v4  ;;  %v2911_v20 = vpop.xlane.xlu1 %2910  ;;  %v3064_v14 = vmul.f32 1.442695, %v6128_v9 }
 0x50f   : > { %v3166_v55 = vadd.f32 %v4787_v60, %v3165_v41  ;;  %v4789_v44 = vpop.eup %4788  ;;  %4792 = vpow2.f32 %v3058_v26  ;;  %v6134_v18 = vsub.f32 %v5877_v43, %v2911_v20  ;;  %v6137_v25 = vsub.f32 %v5880_v42, %v2911_v20 }
 0x510   : > { %v6140_v33 = vsub.f32 %v5884_v63, %v2911_v20  ;;  %4794 = vpow2.f32 %v3060_v57  ;;  %v6143_v47 = vsub.f32 %v5890_v3, %v2911_v20  ;;  %v3170_v4 = vadd.f32 %v4789_v44, %v3169_v15  ;;  %v4791_v16 = vpop.eup %4790 }
 0x511   : > { %3167 = vadd.xlane.f32.xlu0 %v3166_v55  ;;  %v3066_v5 = vmul.f32 1.442695, %v6134_v18  ;;  %v3068_v43 = vmul.f32 1.442695, %v6137_v25  ;;  %4796 = vpow2.f32 %v3062_v2 }
 0x512   : > { %v3070_v42 = vmul.f32 1.442695, %v6140_v33  ;;  %v3171_v48 = vadd.f32 %v4791_v16, %v3170_v4  ;;  %v3072_v63 = vmul.f32 1.442695, %v6143_v47 }
 0x513   : > { %4798 = vpow2.f32 %v3066_v5  ;;  %v2916_v35 = vpop.xlane.xlu0 %2915 }
 0x514   : > { %4800 = vpow2.f32 %v3068_v43  ;;  %v6151_v3 = vsub.f32 %v5894_v54, %v2916_v35  ;;  %v6154_v52 = vsub.f32 %v5897_v34, %v2916_v35  ;;  %v6157_v11 = vsub.f32 %v5901_v1, %v2916_v35  ;;  %3172 = vadd.xlane.f32.xlu1 %v3171_v48 }
 0x515   : > { %4802 = vpow2.f32 %v3064_v14  ;;  %v6160_v61 = vsub.f32 %v5906_v10, %v2916_v35 }
 0x516   : > { %4804 = vpow2.f32 %v3070_v42  ;;  %v3074_v41 = vmul.f32 1.442695, %v6151_v3  ;;  %v3076_v60 = vmul.f32 1.442695, %v6154_v52  ;;  %v3078_v26 = vmul.f32 1.442695, %v6157_v11 }
 0x517   : > { %4806 = vpow2.f32 %v3072_v63  ;;  %v3080_v54 = vmul.f32 1.442695, %v6160_v61  ;;  %v2921_v34 = vpop.xlane.xlu1 %2920 }
 0x518   : > { %4808 = vpow2.f32 %v3074_v41  ;;  %v6167_v1 = vsub.f32 %v5909_v7, %v2921_v34  ;;  %v6170_v57 = vsub.f32 %v5912_v12, %v2921_v34  ;;  %v6173_v10 = vsub.f32 %v5916_v22, %v2921_v34 }
 0x519   : > { %4810 = vpow2.f32 %v3076_v60  ;;  %v6176_v15 = vsub.f32 %v5922_v50, %v2921_v34 }
 0x51a   : > { %4812 = vpow2.f32 %v3078_v26  ;;  %v3082_v2 = vmul.f32 1.442695, %v6167_v1  ;;  %v3084_v20 = vmul.f32 1.442695, %v6170_v57  ;;  %v3086_v55 = vmul.f32 1.442695, %v6173_v10 }
 0x51b   : > { %4814 = vpow2.f32 %v3080_v54  ;;  %v3088_v12 = vmul.f32 1.442695, %v6176_v15 }
 0x51c   : > { %v4793_v7 = vpop.eup %4792  ;;  %4816 = vpow2.f32 %v3082_v2 }
 0x51d   : > { %v4795_v44 = vpop.eup %4794  ;;  %4818 = vpow2.f32 %v3084_v20 }
 0x51e   : > { %v3174_v22 = vadd.f32 %v4795_v44, %v4793_v7  ;;  %v4797_v4 = vpop.eup %4796  ;;  %4820 = vpow2.f32 %v3086_v55 }
 0x51f   : > { %4822 = vpow2.f32 %v3088_v12 }
 0x520   : > { %v4799_v16 = vpop.eup %4798  ;;  %v3175_v50 = vadd.f32 %v4797_v4, %v3174_v22 }
 0x521   : > { %v4801_v14 = vpop.eup %4800 }
 0x522   : > { %v2926_v5 = vpop.xlane.xlu0 %2925  ;;  %v4803_v43 = vpop.eup %4802  ;;  %v3179_v26 = vadd.f32 %v4801_v14, %v4799_v16 }
 0x523   : > { %v6183_v42 = vsub.f32 %v5927_v8, %v2926_v5  ;;  %v6186_v48 = vsub.f32 %v5930_v31, %v2926_v5  ;;  %v6189_v63 = vsub.f32 %v5933_v39, %v2926_v5  ;;  %v6192_v35 = vsub.f32 %v5938_v23, %v2926_v5  ;;  %v4805_v41 = vpop.eup %4804 }
 0x524   : > { %v3176_v60 = vadd.f32 %v4803_v43, %v3175_v50  ;;  %v4807_v54 = vpop.eup %4806  ;;  %v3180_v39 = vadd.f32 %v4805_v41, %v3179_v26 }
 0x525   : > { %v3090_v34 = vmul.f32 1.442695, %v6183_v42  ;;  %v3092_v2 = vmul.f32 1.442695, %v6186_v48  ;;  %v3094_v8 = vmul.f32 1.442695, %v6189_v63  ;;  %v4809_v20 = vpop.eup %4808 }
 0x526   : > { %v3096_v31 = vmul.f32 1.442695, %v6192_v35  ;;  %v2931_v55 = vpop.xlane.xlu1 %2930  ;;  %3177 = vadd.xlane.f32.xlu0 %v3176_v60  ;;  %v4811_v7 = vpop.eup %4810  ;;  %v3181_v16 = vadd.f32 %v4807_v54, %v3180_v39 }
 0x527   : > { %4824 = vpow2.f32 %v3090_v34  ;;  %v6199_v23 = vsub.f32 %v5941_v0, %v2931_v55  ;;  %v6202_v44 = vsub.f32 %v5944_v46, %v2931_v55  ;;  %v6205_v12 = vsub.f32 %v5948_v53, %v2931_v55  ;;  %v4813_v22 = vpop.eup %4812 }
 0x528   : > { %4826 = vpow2.f32 %v3092_v2  ;;  %v6208_v4 = vsub.f32 %v5954_v40, %v2931_v55  ;;  %v3184_v50 = vadd.f32 %v4811_v7, %v4809_v20  ;;  %v4815_v14 = vpop.eup %4814  ;;  %3182 = vadd.xlane.f32.xlu1 %v3181_v16  ;;  %v6582_v55 = vld [vmem:[#allocation19_spill] sm:$0xff]  ;;  %v6584_v7 = vld [vmem:[#allocation20_spill] sm:$0xff] }
 0x529   : > { %4828 = vpow2.f32 %v3094_v8  ;;  %v3098_v5 = vmul.f32 1.442695, %v6199_v23  ;;  %v3100_v0 = vmul.f32 1.442695, %v6202_v44  ;;  %v4817_v43 = vpop.eup %4816  ;;  %v3102_v46 = vmul.f32 1.442695, %v6205_v12 }
 0x52a   : > { %4830 = vpow2.f32 %v3096_v31  ;;  %v3185_v53 = vadd.f32 %v4813_v22, %v3184_v50  ;;  %v4819_v41 = vpop.eup %4818  ;;  %v3104_v40 = vmul.f32 1.442695, %v6208_v4 }
 0x52b   : > { %4832 = vpow2.f32 %v3098_v5  ;;  %v3189_v26 = vadd.f32 %v4819_v41, %v4817_v43  ;;  %v4821_v54 = vpop.eup %4820  ;;  %v6590_v41 = vld [vmem:[#allocation23_spill] sm:$0xff] }
 0x52c   : > { %4834 = vpow2.f32 %v3100_v0  ;;  %v3186_v60 = vadd.f32 %v4815_v14, %v3185_v53  ;;  %v4823_v8 = vpop.eup %4822 }
 0x52d   : > { %4836 = vpow2.f32 %v3102_v46  ;;  %v3190_v2 = vadd.f32 %v4821_v54, %v3189_v26  ;;  %v6588_v46 = vld [vmem:[#allocation22_spill] sm:$0xff]  ;;  %v6592_v26 = vld [vmem:[#allocation24_spill] sm:$0xff] }
 0x52e   : > { %v2936_v34 = vpop.xlane.xlu0 %2935  ;;  %3187 = vadd.xlane.f32.xlu0 %v3186_v60  ;;  %4838 = vpow2.f32 %v3104_v40 }
 0x52f   : > { %v6215_v20 = vsub.f32 %v5959_v28, %v2936_v34  ;;  %v6218_v31 = vsub.f32 %v5962_v17, %v2936_v34  ;;  %v6221_v39 = vsub.f32 %v6582_v55, %v2936_v34  ;;  %v6224_v22 = vsub.f32 %v6584_v7, %v2936_v34  ;;  %v6586_v17 = vld [vmem:[#allocation21_spill] sm:$0xff] }
 0x530   : > { %v3191_v16 = vadd.f32 %v4823_v8, %v3190_v2 }
 0x531   : > { %6583 = vst [vmem:[#allocation19_spill] sm:$0xff] %v6221_v39  ;;  %6585 = vst [vmem:[#allocation20_spill] sm:$0xff] %v6224_v22  ;;  %v3106_v50 = vmul.f32 1.442695, %v6215_v20  ;;  %v3108_v14 = vmul.f32 1.442695, %v6218_v31 }
 0x532   : > { %v3110_v5 = vmul.f32 1.442695, %v6221_v39  ;;  %v3112_v28 = vmul.f32 1.442695, %v6224_v22  ;;  %v2941_v0 = vpop.xlane.xlu1 %2940  ;;  %3192 = vadd.xlane.f32.xlu1 %v3191_v16 }
 0x533   : > { %4840 = vpow2.f32 %v3106_v50  ;;  %v6231_v43 = vsub.f32 %v6586_v17, %v2941_v0  ;;  %v6234_v53 = vsub.f32 %v6588_v46, %v2941_v0  ;;  %v6237_v40 = vsub.f32 %v6590_v41, %v2941_v0 }
 0x534   : > { %v4825_v60 = vpop.eup %4824  ;;  %4842 = vpow2.f32 %v3108_v14  ;;  %v6240_v54 = vsub.f32 %v6592_v26, %v2941_v0 }
 0x535   : > { %6587 = vst [vmem:[#allocation21_spill] sm:$0xff] %v6231_v43  ;;  %6589 = vst [vmem:[#allocation22_spill] sm:$0xff] %v6234_v53  ;;  %v4827_v34 = vpop.eup %4826  ;;  %4844 = vpow2.f32 %v3110_v5  ;;  %v3114_v2 = vmul.f32 1.442695, %v6231_v43  ;;  %v3116_v8 = vmul.f32 1.442695, %v6234_v53 }
 0x536   : > { %6591 = vst [vmem:[#allocation23_spill] sm:$0xff] %v6237_v40  ;;  %6593 = vst [vmem:[#allocation24_spill] sm:$0xff] %v6240_v54  ;;  %v4829_v55 = vpop.eup %4828  ;;  %4846 = vpow2.f32 %v3112_v28  ;;  %v3118_v7 = vmul.f32 1.442695, %v6237_v40  ;;  %v3194_v16 = vadd.f32 %v4827_v34, %v4825_v60  ;;  %v3120_v14 = vmul.f32 1.442695, %v6240_v54 }
 0x537   : > { %v4831_v50 = vpop.eup %4830  ;;  %4848 = vpow2.f32 %v3114_v2 }
 0x538   : > { %v4833_v17 = vpop.eup %4832  ;;  %4850 = vpow2.f32 %v3116_v8  ;;  %v3195_v46 = vadd.f32 %v4829_v55, %v3194_v16 }
 0x539   : > { %v4835_v0 = vpop.eup %4834  ;;  %4852 = vpow2.f32 %v3118_v7 }
 0x53a   : > { %v3196_v41 = vadd.f32 %v4831_v50, %v3195_v46  ;;  %v3199_v5 = vadd.f32 %v4835_v0, %v4833_v17  ;;  %v4837_v26 = vpop.eup %4836  ;;  %4854 = vpow2.f32 %v3120_v14  ;;  %v6594_v0 = vld [vmem:[#allocation26_spill] sm:$0xff] }
 0x53b   : > { %v4839_v43 = vpop.eup %4838 }
 0x53c   : > { %3197 = vadd.xlane.f32.xlu0 %v3196_v41  ;;  %v3200_v53 = vadd.f32 %v4837_v26, %v3199_v5 }
 0x53e   : > { %v3201_v28 = vadd.f32 %v4839_v43, %v3200_v53  ;;  %v6595_v53 = vld [vmem:[#allocation25_spill] sm:$0xff] }
 0x540   : > { %v4841_v22 = vpop.eup %4840  ;;  %3202 = vadd.xlane.f32.xlu1 %v3201_v28 }
 0x541   : > { %v4843_v60 = vpop.eup %4842 }
 0x542   : > { %v4845_v34 = vpop.eup %4844  ;;  %v3204_v2 = vadd.f32 %v4843_v60, %v4841_v22  ;;  %v6596_v22 = vld [vmem:[#allocation28_spill] sm:$0xff] }
 0x543   : > { %v4847_v40 = vpop.eup %4846 }
 0x544   : > { %v4849_v8 = vpop.eup %4848  ;;  %v3205_v39 = vadd.f32 %v4845_v34, %v3204_v2  ;;  %v6597_v34 = vld [vmem:[#allocation29_spill] sm:$0xff] }
 0x545   : > { %v4851_v54 = vpop.eup %4850 }
 0x546   : > { %v3206_v55 = vadd.f32 %v4847_v40, %v3205_v39  ;;  %v3209_v16 = vadd.f32 %v4851_v54, %v4849_v8  ;;  %v4853_v7 = vpop.eup %4852  ;;  %v6598_v8 = vld [vmem:[#allocation27_spill] sm:$0xff] }
 0x547   : > { %v4855_v17 = vpop.eup %4854 }
 0x548   : > { %3207 = vadd.xlane.f32.xlu0 %v3206_v55  ;;  %v3210_v50 = vadd.f32 %v4853_v7, %v3209_v16 }
 0x54a   : > { %v3211_v14 = vadd.f32 %v4855_v17, %v3210_v50 }
 0x54c   : > { %3212 = vadd.xlane.f32.xlu1 %v3211_v14 }
 0x54d   : > { %v2946_v46 = vpop.xlane.xlu0 %2945 }
 0x54e   : > { %v6247_v43 = vsub.f32 %v6594_v0, %v2946_v46  ;;  %v6250_v41 = vsub.f32 %v6595_v53, %v2946_v46  ;;  %v6253_v5 = vsub.f32 %v6596_v22, %v2946_v46  ;;  %v6256_v26 = vsub.f32 %v6009_v30, %v2946_v46 }
 0x550   : > { %v3122_v39 = vmul.f32 1.442695, %v6247_v43  ;;  %v3124_v40 = vmul.f32 1.442695, %v6250_v41  ;;  %v3126_v54 = vmul.f32 1.442695, %v6253_v5 }
 0x551   : > { %v3128_v28 = vmul.f32 1.442695, %v6256_v26  ;;  %v2951_v60 = vpop.xlane.xlu1 %2950 }
 0x552   : > { %4856 = vpow2.f32 %v3122_v39  ;;  %v6263_v2 = vsub.f32 %v6597_v34, %v2951_v60  ;;  %v6266_v55 = vsub.f32 %v6598_v8, %v2951_v60  ;;  %v6269_v16 = vsub.f32 %v6017_v29, %v2951_v60  ;;  %v6599_v29 = vld [vmem:[#allocation30_spill] sm:$0xff] }
 0x553   : > { %4858 = vpow2.f32 %v3124_v40  ;;  %v6272_v30 = vsub.f32 %v6025_v6, %v2951_v60 }
 0x554   : > { %4860 = vpow2.f32 %v3126_v54  ;;  %v3130_v7 = vmul.f32 1.442695, %v6263_v2  ;;  %v3132_v50 = vmul.f32 1.442695, %v6266_v55  ;;  %v3134_v17 = vmul.f32 1.442695, %v6269_v16 }
 0x555   : > { %4862 = vpow2.f32 %v3128_v28  ;;  %v3136_v14 = vmul.f32 1.442695, %v6272_v30  ;;  %v2956_v46 = vpop.xlane.xlu0 %2955 }
 0x556   : > { %4864 = vpow2.f32 %v3130_v7  ;;  %v6279_v0 = vsub.f32 %v6021_v56, %v2956_v46  ;;  %v6282_v53 = vsub.f32 %v6599_v29, %v2956_v46  ;;  %v6285_v6 = vsub.f32 %v6033_v24, %v2956_v46 }
 0x557   : > { %4866 = vpow2.f32 %v3132_v50  ;;  %v6288_v22 = vsub.f32 %v6041_v62, %v2956_v46 }
 0x558   : > { %6600 = vst [vmem:[#allocation26_spill] sm:$0xff] %v6285_v6  ;;  %4868 = vpow2.f32 %v3134_v17  ;;  %v3138_v39 = vmul.f32 1.442695, %v6279_v0  ;;  %v3140_v40 = vmul.f32 1.442695, %v6282_v53 }
 0x559   : > { %6601 = vst [vmem:[#allocation25_spill] sm:$0xff] %v6288_v22  ;;  %v3142_v54 = vmul.f32 1.442695, %v6285_v6  ;;  %4870 = vpow2.f32 %v3136_v14  ;;  %v3144_v56 = vmul.f32 1.442695, %v6288_v22  ;;  %v2961_v28 = vpop.xlane.xlu1 %2960 }
 0x55a   : > { %4872 = vpow2.f32 %v3138_v39  ;;  %v6295_v60 = vsub.f32 %v6037_v21, %v2961_v28  ;;  %v6298_v24 = vsub.f32 %v6030_v37, %v2961_v28  ;;  %v6301_v62 = vsub.f32 %v6046_v58, %v2961_v28 }
 0x55b   : > { %4874 = vpow2.f32 %v3140_v40  ;;  %v6304_v34 = vsub.f32 %v6051_v27, %v2961_v28 }
 0x55c   : > { %6602 = vst [vmem:[#allocation28_spill] sm:$0xff] %v6295_v60  ;;  %6603 = vst [vmem:[#allocation29_spill] sm:$0xff] %v6298_v24  ;;  %4876 = vpow2.f32 %v3142_v54  ;;  %v3146_v8 = vmul.f32 1.442695, %v6295_v60  ;;  %v3148_v7 = vmul.f32 1.442695, %v6298_v24 }
 0x55d   : > { %6604 = vst [vmem:[#allocation27_spill] sm:$0xff] %v6301_v62  ;;  %6605 = vst [vmem:[#allocation30_spill] sm:$0xff] %v6304_v34  ;;  %4878 = vpow2.f32 %v3144_v56  ;;  %v3150_v50 = vmul.f32 1.442695, %v6301_v62  ;;  %v3152_v37 = vmul.f32 1.442695, %v6304_v34 }
 0x55e   : > { %4880 = vpow2.f32 %v3146_v8 }
 0x55f   : > { %v4857_v21 = vpop.eup %4856  ;;  %4882 = vpow2.f32 %v3148_v7 }
 0x560   : > { %v4859_v17 = vpop.eup %4858  ;;  %4884 = vpow2.f32 %v3150_v50 }
 0x561   : > { %v4861_v58 = vpop.eup %4860  ;;  %v3214_v14 = vadd.f32 %v4859_v17, %v4857_v21  ;;  %4886 = vpow2.f32 %v3152_v37 }
 0x562   : > { %v4863_v46 = vpop.eup %4862 }
 0x563   : > { %v4865_v27 = vpop.eup %4864  ;;  %v3215_v29 = vadd.f32 %v4861_v58, %v3214_v14 }
 0x564   : > { %v4867_v39 = vpop.eup %4866 }
 0x565   : > { %v4869_v40 = vpop.eup %4868  ;;  %v3216_v54 = vadd.f32 %v4863_v46, %v3215_v29  ;;  %v3219_v28 = vadd.f32 %v4867_v39, %v4865_v27 }
 0x566   : > { %v4871_v56 = vpop.eup %4870 }
 0x567   : > { %v4873_v24 = vpop.eup %4872  ;;  %3217 = vadd.xlane.f32.xlu0 %v3216_v54  ;;  %v3220_v8 = vadd.f32 %v4869_v40, %v3219_v28 }
 0x568   : > { %v4875_v62 = vpop.eup %4874 }
 0x569   : > { %v4877_v7 = vpop.eup %4876  ;;  %v3221_v60 = vadd.f32 %v4871_v56, %v3220_v8  ;;  %v3224_v34 = vadd.f32 %v4875_v62, %v4873_v24  ;;  %v6607_v8 = vld [vmem:[#allocation32_spill] sm:$0xff] }
 0x56a   : > { %v4879_v22 = vpop.eup %4878 }
 0x56b   : > { %v4881_v6 = vpop.eup %4880  ;;  %3222 = vadd.xlane.f32.xlu1 %v3221_v60  ;;  %v3225_v50 = vadd.f32 %v4877_v7, %v3224_v34 }
 0x56c   : > { %v4883_v21 = vpop.eup %4882 }
 0x56d   : > { %v3226_v37 = vadd.f32 %v4879_v22, %v3225_v50  ;;  %v3229_v17 = vadd.f32 %v4883_v21, %v4881_v6  ;;  %v4885_v58 = vpop.eup %4884 }
 0x56e   : > { %v4887_v46 = vpop.eup %4886 }
 0x56f   : > { %3227 = vadd.xlane.f32.xlu0 %v3226_v37  ;;  %v3230_v14 = vadd.f32 %v4885_v58, %v3229_v17  ;;  %v6608_v37 = vld [vmem:[#allocation33_spill] sm:$0xff]  ;;  %v6609_v58 = vld [vmem:[#allocation34_spill] sm:$0xff] }
 0x571   : > { %v3231_v27 = vadd.f32 %v4887_v46, %v3230_v14  ;;  %v6610_v14 = vld [vmem:[#allocation35_spill] sm:$0xff]  ;;  %v6611_v46 = vld [vmem:[#allocation36_spill] sm:$0xff] }
 0x573   : > { %3232 = vadd.xlane.f32.xlu1 %v3231_v27 }
 0x591   : > { %v3158_v29 = vpop.xlane.xlu0 %3157 }
 0x592   : > { %4888 = vlog2.f32 %v3158_v29 }
 0x595   : > { %v3163_v39 = vpop.xlane.xlu1 %3162 }
 0x596   : > { %4890 = vlog2.f32 %v3163_v39 }
 0x59a   : > { %v3168_v40 = vpop.xlane.xlu0 %3167 }
 0x59b   : > { %4892 = vlog2.f32 %v3168_v40  ;;  %v6612_v40 = vld [vmem:[#allocation37_spill] sm:$0xff] }
 0x59d   : > { %v3173_v24 = vpop.xlane.xlu1 %3172 }
 0x59e   : > { %4894 = vlog2.f32 %v3173_v24 }
 0x59f   : > { %v4889_v60 = vpop.eup %4888 }
 0x5a0   : > { %v3235_v62 = vmul.f32 0.6931472, %v4889_v60  ;;  %v6613_v60 = vld [vmem:[#allocation38_spill] sm:$0xff] }
 0x5a2   : > { %v3266_v22 = vsub.f32 %v6055_v36, %v3235_v62  ;;  %v3267_v6 = vsub.f32 %v6058_v32, %v3235_v62  ;;  %v3268_v34 = vsub.f32 %v6061_v45, %v3235_v62  ;;  %v3269_v54 = vsub.f32 %v6064_v38, %v3235_v62  ;;  %v6606_v38 = vld [vmem:[#allocation31_spill] sm:$0xff] }
 0x5a3   : > { %v4891_v28 = vpop.eup %4890 }
 0x5a4   : > { %3330 = vst [vmem:[%s6315_s29] sm:$0xff] %v3266_v22  ;;  %3331 = vst [vmem:[%s6315_s29 + $0x8] sm:$0xff] %v3267_v6  ;;  %v3237_v36 = vmul.f32 0.6931472, %v4891_v28  ;;  %v6614_v22 = vld [vmem:[#allocation39_spill] sm:$0xff] }
 0x5a5   : > { %3332 = vst [vmem:[%s6315_s29 + $0x10] sm:$0xff] %v3268_v34  ;;  %3333 = vst [vmem:[%s6315_s29 + $0x18] sm:$0xff] %v3269_v54  ;;  %v6615_v34 = vld [vmem:[#allocation40_spill] sm:$0xff] }
 0x5a6   : > { %v3270_v32 = vsub.f32 %v6071_v49, %v3237_v36  ;;  %v3271_v45 = vsub.f32 %v6074_v51, %v3237_v36  ;;  %v3272_v56 = vsub.f32 %v6606_v38, %v3237_v36  ;;  %v3273_v7 = vsub.f32 %v6607_v8, %v3237_v36 }
 0x5a8   : > { %v4893_v50 = vpop.eup %4892  ;;  %3334 = vst [vmem:[%s6315_s29 + $0x20] sm:$0xff] %v3270_v32  ;;  %3335 = vst [vmem:[%s6315_s29 + $0x28] sm:$0xff] %v3271_v45 }
 0x5a9   : > { %3336 = vst [vmem:[%s6315_s29 + $0x30] sm:$0xff] %v3272_v56  ;;  %3337 = vst [vmem:[%s6315_s29 + $0x38] sm:$0xff] %v3273_v7  ;;  %v3239_v21 = vmul.f32 0.6931472, %v4893_v50 }
 0x5ab   : > { %v3274_v17 = vsub.f32 %v6608_v37, %v3239_v21  ;;  %v3275_v49 = vsub.f32 %v6609_v58, %v3239_v21  ;;  %v3276_v51 = vsub.f32 %v6610_v14, %v3239_v21  ;;  %v3277_v27 = vsub.f32 %v6611_v46, %v3239_v21  ;;  %v4895_v29 = vpop.eup %4894 }
 0x5ac   : > { %v3241_v39 = vmul.f32 0.6931472, %v4895_v29 }
 0x5ad   : > { %3338 = vst [vmem:[%s6315_s29 + $0x40] sm:$0xff] %v3274_v17  ;;  %3339 = vst [vmem:[%s6315_s29 + $0x48] sm:$0xff] %v3275_v49 }
 0x5ae   : > { %3340 = vst [vmem:[%s6315_s29 + $0x50] sm:$0xff] %v3276_v51  ;;  %3341 = vst [vmem:[%s6315_s29 + $0x58] sm:$0xff] %v3277_v27  ;;  %v3278_v24 = vsub.f32 %v6612_v40, %v3241_v39  ;;  %v3279_v62 = vsub.f32 %v6613_v60, %v3241_v39  ;;  %v3280_v6 = vsub.f32 %v6614_v22, %v3241_v39 }
 0x5af   : > { %v3281_v54 = vsub.f32 %v6615_v34, %v3241_v39  ;;  %v3178_v28 = vpop.xlane.xlu0 %3177 }
 0x5b0   : > { %4896 = vlog2.f32 %v3178_v28  ;;  %3342 = vst [vmem:[%s6315_s29 + $0x60] sm:$0xff] %v3278_v24  ;;  %3343 = vst [vmem:[%s6315_s29 + $0x68] sm:$0xff] %v3279_v62 }
 0x5b1   : > { %3344 = vst [vmem:[%s6315_s29 + $0x70] sm:$0xff] %v3280_v6  ;;  %3345 = vst [vmem:[%s6315_s29 + $0x78] sm:$0xff] %v3281_v54  ;;  %v3183_v36 = vpop.xlane.xlu1 %3182 }
 0x5b2   : > { %4898 = vlog2.f32 %v3183_v36 }
 0x5b7   : > { %v3188_v32 = vpop.xlane.xlu0 %3187 }
 0x5b8   : > { %4900 = vlog2.f32 %v3188_v32  ;;  %v6618_v32 = vld [vmem:[#allocation21_spill] sm:$0xff] }
 0x5bb   : > { %v3193_v45 = vpop.xlane.xlu1 %3192 }
 0x5bc   : > { %4902 = vlog2.f32 %v3193_v45 }
 0x5bd   : > { %v4897_v38 = vpop.eup %4896 }
 0x5be   : > { %v3243_v56 = vmul.f32 0.6931472, %v4897_v38  ;;  %v6619_v38 = vld [vmem:[#allocation22_spill] sm:$0xff] }
 0x5bf   : > { %v4899_v37 = vpop.eup %4898 }
 0x5c0   : > { %v3282_v8 = vsub.f32 %v6119_v59, %v3243_v56  ;;  %v3283_v7 = vsub.f32 %v6122_v13, %v3243_v56  ;;  %v3284_v50 = vsub.f32 %v6125_v19, %v3243_v56  ;;  %v3285_v21 = vsub.f32 %v6128_v9, %v3243_v56 }
 0x5c1   : > { %v3245_v17 = vmul.f32 0.6931472, %v4899_v37 }
 0x5c2   : > { %3346 = vst [vmem:[%s6315_s29 + $0x80] sm:$0xff] %v3282_v8  ;;  %3347 = vst [vmem:[%s6315_s29 + $0x88] sm:$0xff] %v3283_v7  ;;  %v6620_v8 = vld [vmem:[#allocation23_spill] sm:$0xff]  ;;  %v6621_v7 = vld [vmem:[#allocation24_spill] sm:$0xff] }
 0x5c3   : > { %3348 = vst [vmem:[%s6315_s29 + $0x90] sm:$0xff] %v3284_v50  ;;  %3349 = vst [vmem:[%s6315_s29 + $0x98] sm:$0xff] %v3285_v21  ;;  %v3286_v58 = vsub.f32 %v6134_v18, %v3245_v17  ;;  %v3287_v59 = vsub.f32 %v6137_v25, %v3245_v17  ;;  %v3288_v49 = vsub.f32 %v6140_v33, %v3245_v17 }
 0x5c4   : > { %v3289_v13 = vsub.f32 %v6143_v47, %v3245_v17 }
 0x5c5   : > { %v4901_v19 = vpop.eup %4900  ;;  %v3198_v9 = vpop.xlane.xlu0 %3197  ;;  %3350 = vst [vmem:[%s6315_s29 + $0xa0] sm:$0xff] %v3286_v58  ;;  %3351 = vst [vmem:[%s6315_s29 + $0xa8] sm:$0xff] %v3287_v59 }
 0x5c6   : > { %3352 = vst [vmem:[%s6315_s29 + $0xb0] sm:$0xff] %v3288_v49  ;;  %3353 = vst [vmem:[%s6315_s29 + $0xb8] sm:$0xff] %v3289_v13  ;;  %v3247_v14 = vmul.f32 0.6931472, %v4901_v19  ;;  %4904 = vlog2.f32 %v3198_v9 }
 0x5c8   : > { %v3290_v18 = vsub.f32 %v6151_v3, %v3247_v14  ;;  %v3291_v25 = vsub.f32 %v6154_v52, %v3247_v14  ;;  %v3292_v33 = vsub.f32 %v6157_v11, %v3247_v14  ;;  %v3293_v47 = vsub.f32 %v6160_v61, %v3247_v14 }
 0x5c9   : > { %v4903_v51 = vpop.eup %4902  ;;  %v3203_v46 = vpop.xlane.xlu1 %3202 }
 0x5ca   : > { %3354 = vst [vmem:[%s6315_s29 + $0xc0] sm:$0xff] %v3290_v18  ;;  %3355 = vst [vmem:[%s6315_s29 + $0xc8] sm:$0xff] %v3291_v25  ;;  %v3249_v27 = vmul.f32 0.6931472, %v4903_v51  ;;  %4906 = vlog2.f32 %v3203_v46  ;;  %v6622_v51 = vld [vmem:[#allocation26_spill] sm:$0xff]  ;;  %v6623_v46 = vld [vmem:[#allocation25_spill] sm:$0xff] }
 0x5cb   : > { %3356 = vst [vmem:[%s6315_s29 + $0xd0] sm:$0xff] %v3292_v33  ;;  %3357 = vst [vmem:[%s6315_s29 + $0xd8] sm:$0xff] %v3293_v47 }
 0x5cc   : > { %v3294_v3 = vsub.f32 %v6167_v1, %v3249_v27  ;;  %v3295_v29 = vsub.f32 %v6170_v57, %v3249_v27  ;;  %v3296_v52 = vsub.f32 %v6173_v10, %v3249_v27  ;;  %v3297_v11 = vsub.f32 %v6176_v15, %v3249_v27 }
 0x5ce   : > { %3358 = vst [vmem:[%s6315_s29 + $0xe0] sm:$0xff] %v3294_v3  ;;  %3359 = vst [vmem:[%s6315_s29 + $0xe8] sm:$0xff] %v3295_v29  ;;  %v6625_v3 = vld [vmem:[#allocation29_spill] sm:$0xff] }
 0x5cf   : > { %3360 = vst [vmem:[%s6315_s29 + $0xf0] sm:$0xff] %v3296_v52  ;;  %3361 = vst [vmem:[%s6315_s29 + $0xf8] sm:$0xff] %v3297_v11  ;;  %v6626_v52 = vld [vmem:[#allocation27_spill] sm:$0xff] }
 0x5d1   : > { %v3208_v61 = vpop.xlane.xlu0 %3207 }
 0x5d2   : > { %4908 = vlog2.f32 %v3208_v61  ;;  %v6627_v61 = vld [vmem:[#allocation30_spill] sm:$0xff] }
 0x5d3   : > { %v4905_v39 = vpop.eup %4904 }
 0x5d4   : > { %v3251_v40 = vmul.f32 0.6931472, %v4905_v39 }
 0x5d5   : > { %v3213_v24 = vpop.xlane.xlu1 %3212 }
 0x5d6   : > { %v3298_v1 = vsub.f32 %v6183_v42, %v3251_v40  ;;  %v3299_v57 = vsub.f32 %v6186_v48, %v3251_v40  ;;  %v3300_v10 = vsub.f32 %v6189_v63, %v3251_v40  ;;  %v3301_v15 = vsub.f32 %v6192_v35, %v3251_v40 }
 0x5d7   : > { %v4907_v60 = vpop.eup %4906  ;;  %4910 = vlog2.f32 %v3213_v24 }
 0x5d8   : > { %3362 = vst [vmem:[%s6315_s29 + $0x100] sm:$0xff] %v3298_v1  ;;  %3363 = vst [vmem:[%s6315_s29 + $0x108] sm:$0xff] %v3299_v57  ;;  %v3253_v62 = vmul.f32 0.6931472, %v4907_v60 }
 0x5d9   : > { %3364 = vst [vmem:[%s6315_s29 + $0x110] sm:$0xff] %v3300_v10  ;;  %3365 = vst [vmem:[%s6315_s29 + $0x118] sm:$0xff] %v3301_v15 }
 0x5da   : > { %v3302_v22 = vsub.f32 %v6199_v23, %v3253_v62  ;;  %v3303_v42 = vsub.f32 %v6202_v44, %v3253_v62  ;;  %v3304_v48 = vsub.f32 %v6205_v12, %v3253_v62  ;;  %v3305_v63 = vsub.f32 %v6208_v4, %v3253_v62  ;;  %v6616_v44 = vld [vmem:[#allocation19_spill] sm:$0xff]  ;;  %v6617_v12 = vld [vmem:[#allocation20_spill] sm:$0xff] }
 0x5dc   : > { %3366 = vst [vmem:[%s6315_s29 + $0x120] sm:$0xff] %v3302_v22  ;;  %3367 = vst [vmem:[%s6315_s29 + $0x128] sm:$0xff] %v3303_v42 }
 0x5dd   : > { %3368 = vst [vmem:[%s6315_s29 + $0x130] sm:$0xff] %v3304_v48  ;;  %3369 = vst [vmem:[%s6315_s29 + $0x138] sm:$0xff] %v3305_v63 }
 0x5df   : > { %v4909_v35 = vpop.eup %4908 }
 0x5e0   : > { %v3255_v6 = vmul.f32 0.6931472, %v4909_v35 }
 0x5e2   : > { %v3306_v34 = vsub.f32 %v6215_v20, %v3255_v6  ;;  %v3307_v23 = vsub.f32 %v6218_v31, %v3255_v6  ;;  %v3308_v54 = vsub.f32 %v6616_v44, %v3255_v6  ;;  %v3309_v28 = vsub.f32 %v6617_v12, %v3255_v6 }
 0x5e4   : > { %v4911_v36 = vpop.eup %4910  ;;  %3370 = vst [vmem:[%s6315_s29 + $0x140] sm:$0xff] %v3306_v34  ;;  %3371 = vst [vmem:[%s6315_s29 + $0x148] sm:$0xff] %v3307_v23 }
 0x5e5   : > { %3372 = vst [vmem:[%s6315_s29 + $0x150] sm:$0xff] %v3308_v54  ;;  %3373 = vst [vmem:[%s6315_s29 + $0x158] sm:$0xff] %v3309_v28  ;;  %v3257_v4 = vmul.f32 0.6931472, %v4911_v36 }
 0x5e7   : > { %v3310_v45 = vsub.f32 %v6618_v32, %v3257_v4  ;;  %v3311_v56 = vsub.f32 %v6619_v38, %v3257_v4  ;;  %v3312_v20 = vsub.f32 %v6620_v8, %v3257_v4  ;;  %v3313_v50 = vsub.f32 %v6621_v7, %v3257_v4 }
 0x5e9   : > { %3374 = vst [vmem:[%s6315_s29 + $0x160] sm:$0xff] %v3310_v45  ;;  %3375 = vst [vmem:[%s6315_s29 + $0x168] sm:$0xff] %v3311_v56 }
 0x5ea   : > { %3376 = vst [vmem:[%s6315_s29 + $0x170] sm:$0xff] %v3312_v20  ;;  %3377 = vst [vmem:[%s6315_s29 + $0x178] sm:$0xff] %v3313_v50 }
 0x5f0   : > { %v3218_v31 = vpop.xlane.xlu0 %3217 }
 0x5f1   : > { %4912 = vlog2.f32 %v3218_v31 }
 0x5f4   : > { %v3223_v21 = vpop.xlane.xlu1 %3222 }
 0x5f5   : > { %4914 = vlog2.f32 %v3223_v21 }
 0x5f8   : > { %v3228_v37 = vpop.xlane.xlu0 %3227 }
 0x5f9   : > { %4916 = vlog2.f32 %v3228_v37 }
 0x5fc   : > { %v3233_v17 = vpop.xlane.xlu1 %3232 }
 0x5fd   : > { %4918 = vlog2.f32 %v3233_v17 }
 0x5fe   : > { %v4913_v58 = vpop.eup %4912 }
 0x5ff   : > { %v3259_v59 = vmul.f32 0.6931472, %v4913_v58 }
 0x601   : > { %v3314_v49 = vsub.f32 %v6247_v43, %v3259_v59  ;;  %v3315_v13 = vsub.f32 %v6250_v41, %v3259_v59  ;;  %v3316_v19 = vsub.f32 %v6253_v5, %v3259_v59  ;;  %v3317_v9 = vsub.f32 %v6256_v26, %v3259_v59 }
 0x602   : > { %v4915_v14 = vpop.eup %4914 }
 0x603   : > { %3378 = vst [vmem:[%s6315_s29 + $0x180] sm:$0xff] %v3314_v49  ;;  %3379 = vst [vmem:[%s6315_s29 + $0x188] sm:$0xff] %v3315_v13  ;;  %v3261_v18 = vmul.f32 0.6931472, %v4915_v14 }
 0x604   : > { %3380 = vst [vmem:[%s6315_s29 + $0x190] sm:$0xff] %v3316_v19  ;;  %3381 = vst [vmem:[%s6315_s29 + $0x198] sm:$0xff] %v3317_v9 }
 0x605   : > { %v3318_v25 = vsub.f32 %v6263_v2, %v3261_v18  ;;  %v3319_v43 = vsub.f32 %v6266_v55, %v3261_v18  ;;  %v3320_v41 = vsub.f32 %v6269_v16, %v3261_v18  ;;  %v3321_v5 = vsub.f32 %v6272_v30, %v3261_v18 }
 0x606   : > { %v4917_v26 = vpop.eup %4916 }
 0x607   : > { %3382 = vst [vmem:[%s6315_s29 + $0x1a0] sm:$0xff] %v3318_v25  ;;  %3383 = vst [vmem:[%s6315_s29 + $0x1a8] sm:$0xff] %v3319_v43  ;;  %v3263_v33 = vmul.f32 0.6931472, %v4917_v26 }
 0x608   : > { %3384 = vst [vmem:[%s6315_s29 + $0x1b0] sm:$0xff] %v3320_v41  ;;  %3385 = vst [vmem:[%s6315_s29 + $0x1b8] sm:$0xff] %v3321_v5 }
 0x609   : > { %v3322_v47 = vsub.f32 %v6279_v0, %v3263_v33  ;;  %v3323_v2 = vsub.f32 %v6282_v53, %v3263_v33  ;;  %v3324_v55 = vsub.f32 %v6622_v51, %v3263_v33  ;;  %v3325_v16 = vsub.f32 %v6623_v46, %v3263_v33  ;;  %v6624_v53 = vld [vmem:[#allocation28_spill] sm:$0xff] }
 0x60a   : > { %v4919_v30 = vpop.eup %4918 }
 0x60b   : > { %3386 = vst [vmem:[%s6315_s29 + $0x1c0] sm:$0xff] %v3322_v47  ;;  %3387 = vst [vmem:[%s6315_s29 + $0x1c8] sm:$0xff] %v3323_v2  ;;  %v3265_v0 = vmul.f32 0.6931472, %v4919_v30 }
 0x60c   : > { %3388 = vst [vmem:[%s6315_s29 + $0x1d0] sm:$0xff] %v3324_v55  ;;  %3389 = vst [vmem:[%s6315_s29 + $0x1d8] sm:$0xff] %v3325_v16 }
 0x60d   : > { %v3326_v27 = vsub.f32 %v6624_v53, %v3265_v0  ;;  %v3327_v29 = vsub.f32 %v6625_v3, %v3265_v0  ;;  %v3328_v11 = vsub.f32 %v6626_v52, %v3265_v0  ;;  %v3329_v39 = vsub.f32 %v6627_v61, %v3265_v0 }
 0x60f   : > { %3390 = vst [vmem:[%s6315_s29 + $0x1e0] sm:$0xff] %v3326_v27  ;;  %3391 = vst [vmem:[%s6315_s29 + $0x1e8] sm:$0xff] %v3327_v29 }
 0x610   : > { %3392 = vst [vmem:[%s6315_s29 + $0x1f0] sm:$0xff] %v3328_v11  ;;  %3393 = vst [vmem:[%s6315_s29 + $0x1f8] sm:$0xff] %v3329_v39 }
 0x611   : > { %5091 = shalt.err (!%p5088_p3)
}
 0x612   : > { %s5092_s18 = scalar_lea.hbm %s6438_s13, 8192  ;;  %s5096_s25 = scalar_lea.hbm %s6500_s9, 16384 }
 0x613   : > { %p5093_p4 = scmp.ne.s32.totalorder %s6438_s13, %s5092_s18  ;;  %p5097_p2 = scmp.lt.s32.totalorder %s6438_s13, %s6500_s9 }
 0x614   : > { %p5098_p7 = scmp.lt.s32.totalorder %s5096_s25, %s5092_s18 }
 0x615   : > { %p5094_p12 = pnand %p5093_p4, %p6628_p11 }
 0x616   : > { %p5099_p9 = por %p5098_p7, %p5097_p2 }
 0x617   : > { %p5095_p6 = pneg %p5094_p12 }
 0x619   : > { %p5100_p10 = pnand %p5099_p9, %p5095_p6 }
 0x61b   : > { %5103 = shalt.err (!%p5100_p10)
}
 0x61c   : > { %s5170_s14 = smov 512   ;;  %s5171_s4 = smov 32  }
 0x61d   : > { %3948 = dma.vmem_to_hbm [thread:$0]  (%p6628_p11), %s6440_s1, 8192, %s6438_s13, %s3395_s15, %s5170_s14, %s5170_s14, %s5171_s4  }
 0x61e PF: > { %s3424_s22 = sand.u32 1, %s5142_s30   ;;  %p6629_p0 = scmp.ne.s32.totalorder %s6550_s21, 0 }
 0x61f   : > { %p6630_p13 = scmp.ge.s32.totalorder %s5154_s12, 2  ;;  %s3425_s16 = scalar_lea.sflag [#allocation4], %s3424_s22 }
 0x621   : > { %p3971_p5 = pnand %p6630_p13, %p6629_p0 }
 0x623   : > { %p3972_p8 = pneg %p3971_p5 }
 0x625   : > { %5137 = dma.done.wait (%p3972_p8), %s3425_s16, 8192  }
 0x626   : > { %5139 = vsyncadd (%p3972_p8), %s3425_s16, 4294959104  ;;  %p25_p1 = scmp.ge.s32.totalorder %s5320_s23, 4   ;;  %s6631_s30 = smov %s5146_s10 }
 0x627   : > { %s6632_s10 = smov %s5150_s11  ;;  %s6633_s11 = smov %s5332_s27 }
 0x628   : > { %s6634_s12 = smov %s5320_s23  ;;  %27 = sbr.rel (!%p25_p1) target bundleno = 12 (0xc), region = 121 }
 0x62d   :  { %3430 = vsyncpa [#allocation3], 1 }
 0x62e   :  { %3432 = vsyncpa [#allocation3 + $0x1], 1 }
 0x62f   :  { %3433 = vsyncpa [#allocation6], 1 }
 0x630   :  { %3434 = vsyncpa [#allocation9], 1 }
 0x631   :  { %3435 = vsyncpa [#allocation12], 1 }
 0x632   :  { %3436 = vsyncpa [#allocation4], 1 }
 0x633   :  { %3438 = vsyncpa [#allocation4 + $0x1], 1 }

</bundles_post_ra>
